<compile_context>
chip_gen: v7x
topology: tpu7x:2x2x1
jax: 0.10.0
libtpu: 0.0.40
codegen_flags: <defaults>
</compile_context>

<pallas_src>
import jax
import jax.numpy as jnp
from jax.experimental import pallas as pl
from jax.experimental.pallas import tpu as pltpu

_MASK_NEG = -1e30   # finite "minus infinity": avoids NaN for fully-masked rows


def _align128(n):
    return ((n + 127) // 128) * 128


def _vmem_limit_bytes():
    cap = 128 * 1024 * 1024
    try:
        cap = int(getattr(pltpu.get_tpu_info(), "vmem_capacity_bytes", cap))
    except Exception:
        pass
    # leave headroom for Mosaic internals; cap well below physical on v7x (64 MiB)
    return max(32 * 1024 * 1024, min(cap - 16 * 1024 * 1024, 100 * 1024 * 1024))


_VMEM_LIMIT = _vmem_limit_bytes()


def _softplus(x):
    # stable softplus without relying on log1p lowering
    return jnp.maximum(x, 0.0) + jnp.log(1.0 + jnp.exp(-jnp.abs(x)))


def _softmax_lastdim(x):
    """Softmax over the last axis; the divide runs on the EUP (approx recip)."""
    m = jnp.max(x, axis=-1, keepdims=True)
    e = jnp.exp(x - m)
    return e * pl.reciprocal(jnp.sum(e, axis=-1, keepdims=True), approx=True)


def _content_weights(mem, inv_mem_norm, key, beta, eps):
    """Cosine-similarity content addressing WITHOUT materializing normalized memory.

    mem:(B,N,W) f32, inv_mem_norm:(B,N)=rsqrt(||row||^2+eps), key:(B,W), beta:(B,1) -> (B,N)
    """
    inv_key = jax.lax.rsqrt(jnp.sum(key * key, axis=-1, keepdims=True) + eps)   # (B,1)
    # small-B batched M=1 contraction: VPU broadcast-multiply + lane reduce
    # (co-issues with the MXU gate/projection matmuls; keep on MXU if B is padded to fill it).
    sim = jnp.sum(key[:, None, :] * mem, axis=-1)                               # (B,N)
    return _softmax_lastdim(sim * (inv_key * inv_mem_norm) * beta)


def decoder_step_kernel(
    # per-batch data (blocked over the batch grid axis)
    xr_ref, h0_ref, c0_ref, mem_ref, ctx_ref, mask_ref,
    # weights (constant index_map -> single VMEM-resident block)
    w_lstm_x_ref, w_lstm_h_ref, b_lstm_ref,
    w_if_ref, b_if_ref,
    w_out_h_ref, w_out_r_ref, b_o_ref,
    w_ain_ref, w_aout_c_ref, w_aout_h_ref,
    w_dec_ref, b_dec_ref,
    # outputs: lane-aligned packed slab + in-place (aliased, bf16) memory
    slab_ref, mem1_ref,
):
    f32, bf16 = jnp.float32, jnp.bfloat16
    h0 = h0_ref[...]
    c0 = c0_ref[...]
    mem = mem_ref[...].astype(f32)        # bf16 storage, f32 math
    ctx = ctx_ref[...].astype(f32)        # f32 for the VPU reduce path (v5e VPU has no bf16)
    mask = mask_ref[...]

    B, H = h0.shape
    W = mem.shape[2]
    eps = 1e-6

    # ---- DNC controller: LSTM gates as split accumulating MXU matmuls (no concat) ----
    gates = (jnp.dot(xr_ref[...].astype(bf16), w_lstm_x_ref[...], preferred_element_type=f32)
             + jnp.dot(h0.astype(bf16), w_lstm_h_ref[...], preferred_element_type=f32)
             + b_lstm_ref[...])
    # NOTE: at production H (multiple of 128) these gate slices are free address
    # arithmetic; at the demo H=32 they cut inside a vreg (unavoidable here).
    i_g = jax.nn.sigmoid(gates[:, 0 * H:1 * H])
    f_g = jax.nn.sigmoid(gates[:, 1 * H:2 * H])
    g_g = jnp.tanh(gates[:, 2 * H:3 * H])
    o_g = jax.nn.sigmoid(gates[:, 3 * H:4 * H])
    c1 = f_g * c0 + i_g * g_g
    h1 = o_g * jnp.tanh(c1)

    # ---- DNC memory interface (content-based addressing; read_heads = 1) -------------
    # interface layout: [read_key(W) | write_key(W) | erase(W) | write_vec(W) | scalars(3)]
    xi = jnp.dot(h1.astype(bf16), w_if_ref[...], preferred_element_type=f32) + b_if_ref[...]
    read_key   = xi[:, 0 * W:1 * W]
    write_key  = xi[:, 1 * W:2 * W]
    erase_vec  = jax.nn.sigmoid(xi[:, 2 * W:3 * W])
    write_vec  = xi[:, 3 * W:4 * W]
    read_beta  = 1.0 + _softplus(xi[:, 4 * W + 0:4 * W + 1])
    write_beta = 1.0 + _softplus(xi[:, 4 * W + 1:4 * W + 2])
    write_gate = jax.nn.sigmoid(xi[:, 4 * W + 2:4 * W + 3])

    inv_mem_norm = jax.lax.rsqrt(jnp.sum(mem * mem, axis=-1) + eps)           # (B,N)
    w_w = write_gate * _content_weights(mem, inv_mem_norm, write_key, write_beta, eps)
    w_w3 = w_w[:, :, None]                                                    # hoisted (used twice)
    mem1 = (mem * (1.0 - w_w3 * erase_vec[:, None, :])
            + w_w3 * write_vec[:, None, :])                                   # (B,N,W) f32

    inv_mem1_norm = jax.lax.rsqrt(jnp.sum(mem1 * mem1, axis=-1) + eps)
    w_r = _content_weights(mem1, inv_mem1_norm, read_key, read_beta, eps)     # (B,N)
    r1 = jnp.sum(w_r[:, :, None] * mem1, axis=1)                              # (B,W) read vector

    # DNC output projection: split accumulating matmuls instead of concat([h1 ; read])
    out = (jnp.dot(h1.astype(bf16), w_out_h_ref[...], preferred_element_type=f32)
           + jnp.dot(r1.astype(bf16), w_out_r_ref[...], preferred_element_type=f32)
           + b_o_ref[...])
    # self.drop(output) is identity at inference time.

    # ---- SoftDotAttention --------------------------------------------------------------
    target = jnp.dot(out.astype(bf16), w_ain_ref[...], preferred_element_type=f32)  # (B,H)
    attn = jnp.sum(target[:, None, :] * ctx, axis=-1)                               # (B,S)
    attn = jnp.where(mask > 0.5, _MASK_NEG, attn)                                   # masked_fill
    alpha = _softmax_lastdim(attn)
    weighted = jnp.sum(alpha[:, :, None] * ctx, axis=1)                             # (B,H)
    h_tilde = jnp.tanh(
        jnp.dot(weighted.astype(bf16), w_aout_c_ref[...], preferred_element_type=f32)
        + jnp.dot(out.astype(bf16), w_aout_h_ref[...], preferred_element_type=f32))

    # ---- decoder2action ------------------------------------------------------------------
    logit = (jnp.dot(h_tilde.astype(bf16), w_dec_ref[...], preferred_element_type=f32)
             + b_dec_ref[...])

    # ---- 128-lane-aligned packed output slab + in-place bf16 memory update ----------------
    slab_ref[...] = jnp.zeros(slab_ref.shape, dtype=slab_ref.dtype)
    off = 0
    for piece in (h1, c1, r1, alpha, logit):
        w = piece.shape[1]
        slab_ref[:, off:off + w] = piece         # aligned start -> no lane rotates
        off += _align128(w)
    mem1_ref[...] = mem1.astype(mem1_ref.dtype)


def decoder_single_dnc_step(params, action, feature, h0, c0, memory, read0, ctx, ctx_mask):
    """Embedding lookup, batch padding and output-slab unpack are host glue; the
    rest of the step runs inside one fused Pallas kernel.  Memory is carried in
    bf16 (deliberate inference-time choice) and updated in place."""
    B = action.shape[0]
    H = h0.shape[1]
    N, W = memory.shape[1], memory.shape[2]
    S = ctx.shape[1]
    A = params["w_dec"].shape[1]
    RW = read0.shape[1]

    # nn.Embedding(action).squeeze() -> (B, E); concat with feature and previous
    # read vectors so the LSTM-gate matmul is a single fused contraction.
    emb = jnp.take(params["embedding"], action[:, 0], axis=0)
    xr = jnp.concatenate([emb, feature, read0], axis=1).astype(jnp.float32)
    # self.drop(concat_input) is identity at inference time.

    # Pad batch to a sublane multiple (production: batch/beam to 128/256 to fill the MXU).
    BB = 8
    Bp = ((B + BB - 1) // BB) * BB

    def pad_b(a):
        if Bp == B:
            return a
        return jnp.pad(a, [(0, Bp - B)] + [(0, 0)] * (a.ndim - 1))

    xr_p   = pad_b(xr)
    h0_p   = pad_b(h0.astype(jnp.float32))
    c0_p   = pad_b(c0.astype(jnp.float32))
    mem_p  = pad_b(memory.astype(jnp.bfloat16))    # bf16 memory in HBM (halves the big tensor)
    ctx_p  = pad_b(ctx.astype(jnp.bfloat16))
    mask_p = pad_b(ctx_mask.astype(jnp.float32))

    # Output slab layout: each field starts at a 128-lane boundary.
    offs, off = [], 0
    for wdt in (H, H, RW, S, A):
        offs.append(off)
        off += _align128(wdt)
    slab_w = off

    inputs = (
        xr_p, h0_p, c0_p, mem_p, ctx_p, mask_p,
        params["w_lstm_x"], params["w_lstm_h"], params["b_lstm"],
        params["w_if"], params["b_if"],
        params["w_out_h"], params["w_out_r"], params["b_o"],
        params["w_attn_in"], params["w_attn_out_c"], params["w_attn_out_h"],
        params["w_dec"], params["b_dec"],
    )

    def batched2(d):
        return pl.BlockSpec((BB, d), lambda b: (b, 0))

    def whole(shape):
        nd = len(shape)
        return pl.BlockSpec(shape, lambda b, _nd=nd: (0,) * _nd)

    in_specs = [
        batched2(xr_p.shape[1]), batched2(H), batched2(H),
        pl.BlockSpec((BB, N, W), lambda b: (b, 0, 0)),
        pl.BlockSpec((BB, S, H), lambda b: (b, 0, 0)),
        batched2(S),
    ] + [whole(p.shape) for p in inputs[6:]]

    out_shapes = (
        jax.ShapeDtypeStruct((Bp, slab_w), jnp.float32),   # [h1|c1|read|alpha|logit] 128-aligned
        jax.ShapeDtypeStruct((Bp, N, W), jnp.bfloat16),    # memory (aliased: in-place update)
    )
    out_specs = (
        pl.BlockSpec((BB, slab_w), lambda b: (b, 0)),
        pl.BlockSpec((BB, N, W), lambda b: (b, 0, 0)),
    )

    # Advisory cost estimate so XLA schedules the surrounding glue sensibly.
    IF = params["w_if"].shape[1]
    flops = int(2 * Bp * ((xr_p.shape[1] + H) * 4 * H + H * IF + 5 * N * W
                          + (H + RW) * H + 3 * H * H + 2 * S * H + H * A))
    transcendentals = int(Bp * (7 * H + W + 2 * N + S + 8))
    bytes_accessed = int(sum(a.size * a.dtype.itemsize for a in inputs)
                         + 4 * Bp * slab_w + 2 * Bp * N * W)

    slab, mem1 = pl.pallas_call(
        decoder_step_kernel,
        grid=(Bp // BB,),                       # "parallel" -> shards across v7x TensorCores
        in_specs=in_specs,
        out_specs=out_specs,
        out_shape=out_shapes,
        input_output_aliases={3: 1},            # memory (input 3) -> mem1 (output 1), in place
        compiler_params=pltpu.CompilerParams(
            dimension_semantics=("parallel",),
            vmem_limit_bytes=_VMEM_LIMIT),
        cost_estimate=pl.CostEstimate(flops=flops, transcendentals=transcendentals,
                                      bytes_accessed=bytes_accessed),
    )(*inputs)

    h1    = slab[:B, offs[0]:offs[0] + H]
    c1    = slab[:B, offs[1]:offs[1] + H]
    r1    = slab[:B, offs[2]:offs[2] + RW]
    alpha = slab[:B, offs[3]:offs[3] + S]
    logit = slab[:B, offs[4]:offs[4] + A]
    return h1, c1, mem1[:B], r1, alpha, logit


def init_params(key, *, input_action_size, output_action_size, E, F, H, W, R):
    ks = jax.random.split(key, 14)

    def u(k, shape, scale=0.1, dtype=jnp.float32):
        return (jax.random.uniform(k, shape, jnp.float32, -1.0, 1.0) * scale).astype(dtype)

    bf16 = jnp.bfloat16
    # interface layout: [read_key | write_key | erase | write_vec | read_beta, write_beta, write_gate]
    IF = 4 * W + 3
    return dict(
        embedding=u(ks[0], (input_action_size, E), 0.5),
        # LSTM gate weights split by input block: x = [emb ; feature ; read vectors], h = hidden.
        w_lstm_x=u(ks[1], (E + F + R * W, 4 * H), dtype=bf16),
        w_lstm_h=u(ks[2], (H, 4 * H), dtype=bf16),
        b_lstm=u(ks[3], (1, 4 * H)),              # b_ih + b_hh combined
        w_if=u(ks[4], (H, IF), dtype=bf16),
        b_if=u(ks[5], (1, IF)),
        # DNC output projection split: controller-out part and read-vector part.
        w_out_h=u(ks[6], (H, H), dtype=bf16),
        w_out_r=u(ks[7], (R * W, H), dtype=bf16),
        b_o=u(ks[8], (1, H)),
        w_attn_in=u(ks[9], (H, H), dtype=bf16),   # SoftDotAttention.linear_in (no bias)
        # SoftDotAttention.linear_out split: weighted-context half and hidden half.
        w_attn_out_c=u(ks[10], (H, H), dtype=bf16),
        w_attn_out_h=u(ks[11], (H, H), dtype=bf16),
        w_dec=u(ks[12], (H, output_action_size), dtype=bf16),
        b_dec=u(ks[13], (1, output_action_size)),
    )


if __name__ == "__main__":
    # Small synthetic shapes consistent with the module's forward.
    B, S = 2, 8
    E, F, H = 8, 32, 32          # embedding_size, feature_size, hidden_size
    N, W, R = 8, 16, 1           # mem_size (nr_cells), cell_size (mem_embed_size), read_heads
    IN_ACT, OUT_ACT = 10, 6      # input_action_size, output_action_size

    key = jax.random.PRNGKey(0)
    kp, ka, kf, kh, kc, km, kr, kx = jax.random.split(key, 8)
    params = init_params(kp, input_action_size=IN_ACT, output_action_size=OUT_ACT,
                         E=E, F=F, H=H, W=W, R=R)

    action = jax.random.randint(ka, (B, 1), 0, IN_ACT, dtype=jnp.int32)   # batch x 1
    feature = jax.random.normal(kf, (B, F), jnp.float32)                  # batch x feature_size
    h0 = jax.random.normal(kh, (B, H), jnp.float32) * 0.1
    c0 = jax.random.normal(kc, (B, H), jnp.float32) * 0.1
    memory = jax.random.normal(km, (B, N, W), jnp.float32) * 0.1
    read0 = jax.random.normal(kr, (B, R * W), jnp.float32) * 0.1
    ctx = jax.random.normal(kx, (B, S, H), jnp.float32)                   # batch x seq x dim
    ctx_mask = jnp.zeros((B, S), jnp.float32).at[0, S - 1].set(1.0)       # mask last pos of row 0

    step = jax.jit(decoder_single_dnc_step)
    outs = step(params, action, feature, h0, c0, memory, read0, ctx, ctx_mask)
    outs = jax.block_until_ready(outs)
    h1, c1, mem1, r1, alpha, logit = outs

    assert h1.shape == (B, H) and c1.shape == (B, H)
    assert mem1.shape == (B, N, W) and mem1.dtype == jnp.bfloat16
    assert r1.shape == (B, R * W)
    assert alpha.shape == (B, S) and logit.shape == (B, OUT_ACT)
    for o in (h1, c1, mem1, r1, alpha, logit):
        assert bool(jnp.all(jnp.isfinite(o.astype(jnp.float32))))
    assert bool(jnp.allclose(jnp.sum(alpha, axis=1), 1.0, atol=5e-3))
    assert float(alpha[0, S - 1]) <= 1e-6   # masked position got ~zero attention
    print("KERNEL_OK")
</pallas_src>

<mosaic_0001>
module attributes {stable_mosaic.version = 11 : i64} {
  func.func @decoder_step_kernel(%arg0: i32, %arg1: memref<8x56xf32, #tpu.memory_space<vmem>>, %arg2: memref<8x32xf32, #tpu.memory_space<vmem>>, %arg3: memref<8x32xf32, #tpu.memory_space<vmem>>, %arg4: memref<8x8x16xbf16, #tpu.memory_space<vmem>>, %arg5: memref<8x8x32xbf16, #tpu.memory_space<vmem>>, %arg6: memref<8x8xf32, #tpu.memory_space<vmem>>, %arg7: memref<56x128xbf16, #tpu.memory_space<vmem>>, %arg8: memref<32x128xbf16, #tpu.memory_space<vmem>>, %arg9: memref<1x128xf32, #tpu.memory_space<vmem>>, %arg10: memref<32x67xbf16, #tpu.memory_space<vmem>>, %arg11: memref<1x67xf32, #tpu.memory_space<vmem>>, %arg12: memref<32x32xbf16, #tpu.memory_space<vmem>>, %arg13: memref<16x32xbf16, #tpu.memory_space<vmem>>, %arg14: memref<1x32xf32, #tpu.memory_space<vmem>>, %arg15: memref<32x32xbf16, #tpu.memory_space<vmem>>, %arg16: memref<32x32xbf16, #tpu.memory_space<vmem>>, %arg17: memref<32x32xbf16, #tpu.memory_space<vmem>>, %arg18: memref<32x6xbf16, #tpu.memory_space<vmem>>, %arg19: memref<1x6xf32, #tpu.memory_space<vmem>>, %arg20: memref<8x640xf32, #tpu.memory_space<vmem>>, %arg21: memref<8x8x16xbf16, #tpu.memory_space<vmem>>) attributes {dimension_semantics = [#tpu.dimension_semantics<parallel>], iteration_bounds = array<i64: 1>, scalar_prefetch = 0 : i64, scratch_operands = 0 : i64, tpu.core_type = #tpu.core_type<tc>, window_params = [{transform_indices = @transform_0, window_bounds = array<i64: 8, 56>}, {transform_indices = @transform_1, window_bounds = array<i64: 8, 32>}, {transform_indices = @transform_2, window_bounds = array<i64: 8, 32>}, {transform_indices = @transform_3, window_bounds = array<i64: 8, 8, 16>}, {transform_indices = @transform_4, window_bounds = array<i64: 8, 8, 32>}, {transform_indices = @transform_5, window_bounds = array<i64: 8, 8>}, {pipeline_mode = #tpu.pipeline_mode<synchronous>, transform_indices = @transform_6, window_bounds = array<i64: 56, 128>}, {pipeline_mode = #tpu.pipeline_mode<synchronous>, transform_indices = @transform_7, window_bounds = array<i64: 32, 128>}, {pipeline_mode = #tpu.pipeline_mode<synchronous>, transform_indices = @transform_8, window_bounds = array<i64: 1, 128>}, {pipeline_mode = #tpu.pipeline_mode<synchronous>, transform_indices = @transform_9, window_bounds = array<i64: 32, 67>}, {pipeline_mode = #tpu.pipeline_mode<synchronous>, transform_indices = @transform_10, window_bounds = array<i64: 1, 67>}, {pipeline_mode = #tpu.pipeline_mode<synchronous>, transform_indices = @transform_11, window_bounds = array<i64: 32, 32>}, {pipeline_mode = #tpu.pipeline_mode<synchronous>, transform_indices = @transform_12, window_bounds = array<i64: 16, 32>}, {pipeline_mode = #tpu.pipeline_mode<synchronous>, transform_indices = @transform_13, window_bounds = array<i64: 1, 32>}, {pipeline_mode = #tpu.pipeline_mode<synchronous>, transform_indices = @transform_14, window_bounds = array<i64: 32, 32>}, {pipeline_mode = #tpu.pipeline_mode<synchronous>, transform_indices = @transform_15, window_bounds = array<i64: 32, 32>}, {pipeline_mode = #tpu.pipeline_mode<synchronous>, transform_indices = @transform_16, window_bounds = array<i64: 32, 32>}, {pipeline_mode = #tpu.pipeline_mode<synchronous>, transform_indices = @transform_17, window_bounds = array<i64: 32, 6>}, {pipeline_mode = #tpu.pipeline_mode<synchronous>, transform_indices = @transform_18, window_bounds = array<i64: 1, 6>}, {transform_indices = @transform_19, window_bounds = array<i64: 8, 640>}, {transform_indices = @transform_20, window_bounds = array<i64: 8, 8, 16>}]} {
    %c0 = arith.constant 0 : index
    %c0_0 = arith.constant 0 : index
    %0 = vector.load %arg2[%c0, %c0_0] : memref<8x32xf32, #tpu.memory_space<vmem>>, vector<8x32xf32>
    %c0_1 = arith.constant 0 : index
    %c0_2 = arith.constant 0 : index
    %1 = vector.load %arg3[%c0_1, %c0_2] : memref<8x32xf32, #tpu.memory_space<vmem>>, vector<8x32xf32>
    %c0_3 = arith.constant 0 : index
    %c0_4 = arith.constant 0 : index
    %c0_5 = arith.constant 0 : index
    %2 = vector.load %arg4[%c0_3, %c0_4, %c0_5] : memref<8x8x16xbf16, #tpu.memory_space<vmem>>, vector<8x8x16xbf16>
    %3 = arith.extf %2 : vector<8x8x16xbf16> to vector<8x8x16xf32>
    %c0_6 = arith.constant 0 : index
    %c0_7 = arith.constant 0 : index
    %c0_8 = arith.constant 0 : index
    %4 = vector.load %arg5[%c0_6, %c0_7, %c0_8] : memref<8x8x32xbf16, #tpu.memory_space<vmem>>, vector<8x8x32xbf16>
    %5 = arith.extf %4 : vector<8x8x32xbf16> to vector<8x8x32xf32>
    %c0_9 = arith.constant 0 : index
    %c0_10 = arith.constant 0 : index
    %6 = vector.load %arg6[%c0_9, %c0_10] : memref<8x8xf32, #tpu.memory_space<vmem>>, vector<8x8xf32>
    %c0_11 = arith.constant 0 : index
    %c0_12 = arith.constant 0 : index
    %7 = vector.load %arg1[%c0_11, %c0_12] : memref<8x56xf32, #tpu.memory_space<vmem>>, vector<8x56xf32>
    %8 = arith.truncf %7 : vector<8x56xf32> to vector<8x56xbf16>
    %c0_13 = arith.constant 0 : index
    %c0_14 = arith.constant 0 : index
    %9 = vector.load %arg7[%c0_13, %c0_14] : memref<56x128xbf16, #tpu.memory_space<vmem>>, vector<56x128xbf16>
    %cst = arith.constant dense<0.000000e+00> : vector<8x128xf32>
    %10 = tpu.matmul %8, %9, %cst {dimension_numbers = #tpu.dot_dimension_numbers<[1], [0], [0], [1], [0, 0, 1, 1], [], []>} : vector<8x56xbf16>, vector<56x128xbf16>, vector<8x128xf32> -> vector<8x128xf32>
    %11 = arith.truncf %0 : vector<8x32xf32> to vector<8x32xbf16>
    %c0_15 = arith.constant 0 : index
    %c0_16 = arith.constant 0 : index
    %12 = vector.load %arg8[%c0_15, %c0_16] : memref<32x128xbf16, #tpu.memory_space<vmem>>, vector<32x128xbf16>
    %cst_17 = arith.constant dense<0.000000e+00> : vector<8x128xf32>
    %13 = tpu.matmul %11, %12, %cst_17 {dimension_numbers = #tpu.dot_dimension_numbers<[1], [0], [0], [1], [0, 0, 1, 1], [], []>} : vector<8x32xbf16>, vector<32x128xbf16>, vector<8x128xf32> -> vector<8x128xf32>
    %14 = arith.addf %10, %13 : vector<8x128xf32>
    %c0_18 = arith.constant 0 : index
    %c0_19 = arith.constant 0 : index
    %15 = vector.load %arg9[%c0_18, %c0_19] : memref<1x128xf32, #tpu.memory_space<vmem>>, vector<1x128xf32>
    %16 = vector.broadcast %15 : vector<1x128xf32> to vector<8x128xf32>
    %17 = arith.addf %14, %16 : vector<8x128xf32>
    %18 = vector.extract_strided_slice %17 {offsets = [0, 0], sizes = [8, 32], strides = [1, 1]} : vector<8x128xf32> to vector<8x32xf32>
    %19 = arith.negf %18 : vector<8x32xf32>
    %20 = math.exp %19 : vector<8x32xf32>
    %cst_20 = arith.constant 1.000000e+00 : f32
    %21 = vector.broadcast %cst_20 : f32 to vector<8x32xf32>
    %22 = arith.addf %21, %20 : vector<8x32xf32>
    %23 = arith.divf %21, %22 : vector<8x32xf32>
    %24 = vector.extract_strided_slice %17 {offsets = [0, 32], sizes = [8, 32], strides = [1, 1]} : vector<8x128xf32> to vector<8x32xf32>
    %25 = arith.negf %24 : vector<8x32xf32>
    %26 = math.exp %25 : vector<8x32xf32>
    %cst_21 = arith.constant 1.000000e+00 : f32
    %27 = vector.broadcast %cst_21 : f32 to vector<8x32xf32>
    %28 = arith.addf %27, %26 : vector<8x32xf32>
    %29 = arith.divf %27, %28 : vector<8x32xf32>
    %30 = vector.extract_strided_slice %17 {offsets = [0, 64], sizes = [8, 32], strides = [1, 1]} : vector<8x128xf32> to vector<8x32xf32>
    %31 = math.tanh %30 : vector<8x32xf32>
    %32 = vector.extract_strided_slice %17 {offsets = [0, 96], sizes = [8, 32], strides = [1, 1]} : vector<8x128xf32> to vector<8x32xf32>
    %33 = arith.negf %32 : vector<8x32xf32>
    %34 = math.exp %33 : vector<8x32xf32>
    %cst_22 = arith.constant 1.000000e+00 : f32
    %35 = vector.broadcast %cst_22 : f32 to vector<8x32xf32>
    %36 = arith.addf %35, %34 : vector<8x32xf32>
    %37 = arith.divf %35, %36 : vector<8x32xf32>
    %38 = arith.mulf %29, %1 : vector<8x32xf32>
    %39 = arith.mulf %23, %31 : vector<8x32xf32>
    %40 = arith.addf %38, %39 : vector<8x32xf32>
    %41 = math.tanh %40 : vector<8x32xf32>
    %42 = arith.mulf %37, %41 : vector<8x32xf32>
    %43 = arith.truncf %42 : vector<8x32xf32> to vector<8x32xbf16>
    %c0_23 = arith.constant 0 : index
    %c0_24 = arith.constant 0 : index
    %44 = vector.load %arg10[%c0_23, %c0_24] : memref<32x67xbf16, #tpu.memory_space<vmem>>, vector<32x67xbf16>
    %cst_25 = arith.constant dense<0.000000e+00> : vector<8x67xf32>
    %45 = tpu.matmul %43, %44, %cst_25 {dimension_numbers = #tpu.dot_dimension_numbers<[1], [0], [0], [1], [0, 0, 1, 1], [], []>} : vector<8x32xbf16>, vector<32x67xbf16>, vector<8x67xf32> -> vector<8x67xf32>
    %c0_26 = arith.constant 0 : index
    %c0_27 = arith.constant 0 : index
    %46 = vector.load %arg11[%c0_26, %c0_27] : memref<1x67xf32, #tpu.memory_space<vmem>>, vector<1x67xf32>
    %47 = vector.broadcast %46 : vector<1x67xf32> to vector<8x67xf32>
    %48 = arith.addf %45, %47 : vector<8x67xf32>
    %49 = vector.extract_strided_slice %48 {offsets = [0, 0], sizes = [8, 16], strides = [1, 1]} : vector<8x67xf32> to vector<8x16xf32>
    %50 = vector.extract_strided_slice %48 {offsets = [0, 16], sizes = [8, 16], strides = [1, 1]} : vector<8x67xf32> to vector<8x16xf32>
    %51 = vector.extract_strided_slice %48 {offsets = [0, 32], sizes = [8, 16], strides = [1, 1]} : vector<8x67xf32> to vector<8x16xf32>
    %52 = arith.negf %51 : vector<8x16xf32>
    %53 = math.exp %52 : vector<8x16xf32>
    %cst_28 = arith.constant 1.000000e+00 : f32
    %54 = vector.broadcast %cst_28 : f32 to vector<8x16xf32>
    %55 = arith.addf %54, %53 : vector<8x16xf32>
    %56 = arith.divf %54, %55 : vector<8x16xf32>
    %57 = vector.extract_strided_slice %48 {offsets = [0, 48], sizes = [8, 16], strides = [1, 1]} : vector<8x67xf32> to vector<8x16xf32>
    %58 = vector.extract_strided_slice %48 {offsets = [0, 64], sizes = [8, 1], strides = [1, 1]} : vector<8x67xf32> to vector<8x1xf32>
    %cst_29 = arith.constant 0.000000e+00 : f32
    %59 = vector.broadcast %cst_29 : f32 to vector<8x1xf32>
    %60 = arith.maximumf %58, %59 : vector<8x1xf32>
    %61 = math.absf %58 : vector<8x1xf32>
    %cst_30 = arith.constant 0.000000e+00 : f32
    %62 = vector.broadcast %cst_30 : f32 to vector<8x1xf32>
    %63 = arith.subf %62, %61 : vector<8x1xf32>
    %64 = math.exp %63 : vector<8x1xf32>
    %cst_31 = arith.constant 1.000000e+00 : f32
    %65 = vector.broadcast %cst_31 : f32 to vector<8x1xf32>
    %66 = arith.addf %65, %64 : vector<8x1xf32>
    %67 = math.log %66 : vector<8x1xf32>
    %68 = arith.addf %60, %67 : vector<8x1xf32>
    %cst_32 = arith.constant 1.000000e+00 : f32
    %69 = vector.broadcast %cst_32 : f32 to vector<8x1xf32>
    %70 = arith.addf %69, %68 : vector<8x1xf32>
    %71 = vector.extract_strided_slice %48 {offsets = [0, 65], sizes = [8, 1], strides = [1, 1]} : vector<8x67xf32> to vector<8x1xf32>
    %cst_33 = arith.constant 0.000000e+00 : f32
    %72 = vector.broadcast %cst_33 : f32 to vector<8x1xf32>
    %73 = arith.maximumf %71, %72 : vector<8x1xf32>
    %74 = math.absf %71 : vector<8x1xf32>
    %cst_34 = arith.constant 0.000000e+00 : f32
    %75 = vector.broadcast %cst_34 : f32 to vector<8x1xf32>
    %76 = arith.subf %75, %74 : vector<8x1xf32>
    %77 = math.exp %76 : vector<8x1xf32>
    %cst_35 = arith.constant 1.000000e+00 : f32
    %78 = vector.broadcast %cst_35 : f32 to vector<8x1xf32>
    %79 = arith.addf %78, %77 : vector<8x1xf32>
    %80 = math.log %79 : vector<8x1xf32>
    %81 = arith.addf %73, %80 : vector<8x1xf32>
    %cst_36 = arith.constant 1.000000e+00 : f32
    %82 = vector.broadcast %cst_36 : f32 to vector<8x1xf32>
    %83 = arith.addf %82, %81 : vector<8x1xf32>
    %84 = vector.extract_strided_slice %48 {offsets = [0, 66], sizes = [8, 1], strides = [1, 1]} : vector<8x67xf32> to vector<8x1xf32>
    %85 = arith.negf %84 : vector<8x1xf32>
    %86 = math.exp %85 : vector<8x1xf32>
    %cst_37 = arith.constant 1.000000e+00 : f32
    %87 = vector.broadcast %cst_37 : f32 to vector<8x1xf32>
    %88 = arith.addf %87, %86 : vector<8x1xf32>
    %89 = arith.divf %87, %88 : vector<8x1xf32>
    %90 = arith.mulf %3, %3 : vector<8x8x16xf32>
    %cst_38 = arith.constant dense<0.000000e+00> : vector<8x8xf32>
    %91 = vector.multi_reduction <add>, %90, %cst_38 [2] : vector<8x8x16xf32> to vector<8x8xf32>
    %cst_39 = arith.constant 9.99999997E-7 : f32
    %92 = vector.broadcast %cst_39 : f32 to vector<8x8xf32>
    %93 = arith.addf %91, %92 : vector<8x8xf32>
    %94 = math.rsqrt %93 : vector<8x8xf32>
    %95 = arith.mulf %50, %50 : vector<8x16xf32>
    %cst_40 = arith.constant dense<0.000000e+00> : vector<8xf32>
    %96 = vector.multi_reduction <add>, %95, %cst_40 [1] : vector<8x16xf32> to vector<8xf32>
    %97 = vector.shape_cast %96 : vector<8xf32> to vector<8x1xf32>
    %cst_41 = arith.constant 9.99999997E-7 : f32
    %98 = vector.broadcast %cst_41 : f32 to vector<8x1xf32>
    %99 = arith.addf %97, %98 : vector<8x1xf32>
    %100 = math.rsqrt %99 : vector<8x1xf32>
    %101 = vector.shape_cast %50 : vector<8x16xf32> to vector<8x1x16xf32>
    %102 = vector.broadcast %101 : vector<8x1x16xf32> to vector<8x8x16xf32>
    %103 = arith.mulf %102, %3 : vector<8x8x16xf32>
    %cst_42 = arith.constant dense<0.000000e+00> : vector<8x8xf32>
    %104 = vector.multi_reduction <add>, %103, %cst_42 [2] : vector<8x8x16xf32> to vector<8x8xf32>
    %105 = vector.broadcast %100 : vector<8x1xf32> to vector<8x8xf32>
    %106 = arith.mulf %105, %94 : vector<8x8xf32>
    %107 = arith.mulf %104, %106 : vector<8x8xf32>
    %108 = vector.broadcast %83 : vector<8x1xf32> to vector<8x8xf32>
    %109 = arith.mulf %107, %108 : vector<8x8xf32>
    %cst_43 = arith.constant dense<0xFF800000> : vector<8xf32>
    %110 = vector.multi_reduction <maximumf>, %109, %cst_43 [1] : vector<8x8xf32> to vector<8xf32>
    %111 = vector.shape_cast %110 : vector<8xf32> to vector<8x1xf32>
    %112 = vector.broadcast %111 : vector<8x1xf32> to vector<8x8xf32>
    %113 = arith.subf %109, %112 : vector<8x8xf32>
    %114 = math.exp %113 : vector<8x8xf32>
    %cst_44 = arith.constant dense<0.000000e+00> : vector<8xf32>
    %115 = vector.multi_reduction <add>, %114, %cst_44 [1] : vector<8x8xf32> to vector<8xf32>
    %116 = vector.shape_cast %115 : vector<8xf32> to vector<8x1xf32>
    %117 = tpu.reciprocal %116 {approx = true} : vector<8x1xf32> -> vector<8x1xf32>
    %118 = vector.broadcast %117 : vector<8x1xf32> to vector<8x8xf32>
    %119 = arith.mulf %114, %118 : vector<8x8xf32>
    %120 = vector.broadcast %89 : vector<8x1xf32> to vector<8x8xf32>
    %121 = arith.mulf %120, %119 : vector<8x8xf32>
    %122 = vector.shape_cast %121 : vector<8x8xf32> to vector<8x8x1xf32>
    %123 = vector.shape_cast %56 : vector<8x16xf32> to vector<8x1x16xf32>
    %124 = vector.broadcast %122 : vector<8x8x1xf32> to vector<8x8x16xf32>
    %125 = vector.broadcast %123 : vector<8x1x16xf32> to vector<8x8x16xf32>
    %126 = arith.mulf %124, %125 : vector<8x8x16xf32>
    %cst_45 = arith.constant 1.000000e+00 : f32
    %127 = vector.broadcast %cst_45 : f32 to vector<8x8x16xf32>
    %128 = arith.subf %127, %126 : vector<8x8x16xf32>
    %129 = arith.mulf %3, %128 : vector<8x8x16xf32>
    %130 = vector.shape_cast %57 : vector<8x16xf32> to vector<8x1x16xf32>
    %131 = vector.broadcast %122 : vector<8x8x1xf32> to vector<8x8x16xf32>
    %132 = vector.broadcast %130 : vector<8x1x16xf32> to vector<8x8x16xf32>
    %133 = arith.mulf %131, %132 : vector<8x8x16xf32>
    %134 = arith.addf %129, %133 : vector<8x8x16xf32>
    %135 = arith.mulf %134, %134 : vector<8x8x16xf32>
    %cst_46 = arith.constant dense<0.000000e+00> : vector<8x8xf32>
    %136 = vector.multi_reduction <add>, %135, %cst_46 [2] : vector<8x8x16xf32> to vector<8x8xf32>
    %cst_47 = arith.constant 9.99999997E-7 : f32
    %137 = vector.broadcast %cst_47 : f32 to vector<8x8xf32>
    %138 = arith.addf %136, %137 : vector<8x8xf32>
    %139 = math.rsqrt %138 : vector<8x8xf32>
    %140 = arith.mulf %49, %49 : vector<8x16xf32>
    %cst_48 = arith.constant dense<0.000000e+00> : vector<8xf32>
    %141 = vector.multi_reduction <add>, %140, %cst_48 [1] : vector<8x16xf32> to vector<8xf32>
    %142 = vector.shape_cast %141 : vector<8xf32> to vector<8x1xf32>
    %cst_49 = arith.constant 9.99999997E-7 : f32
    %143 = vector.broadcast %cst_49 : f32 to vector<8x1xf32>
    %144 = arith.addf %142, %143 : vector<8x1xf32>
    %145 = math.rsqrt %144 : vector<8x1xf32>
    %146 = vector.shape_cast %49 : vector<8x16xf32> to vector<8x1x16xf32>
    %147 = vector.broadcast %146 : vector<8x1x16xf32> to vector<8x8x16xf32>
    %148 = arith.mulf %147, %134 : vector<8x8x16xf32>
    %cst_50 = arith.constant dense<0.000000e+00> : vector<8x8xf32>
    %149 = vector.multi_reduction <add>, %148, %cst_50 [2] : vector<8x8x16xf32> to vector<8x8xf32>
    %150 = vector.broadcast %145 : vector<8x1xf32> to vector<8x8xf32>
    %151 = arith.mulf %150, %139 : vector<8x8xf32>
    %152 = arith.mulf %149, %151 : vector<8x8xf32>
    %153 = vector.broadcast %70 : vector<8x1xf32> to vector<8x8xf32>
    %154 = arith.mulf %152, %153 : vector<8x8xf32>
    %cst_51 = arith.constant dense<0xFF800000> : vector<8xf32>
    %155 = vector.multi_reduction <maximumf>, %154, %cst_51 [1] : vector<8x8xf32> to vector<8xf32>
    %156 = vector.shape_cast %155 : vector<8xf32> to vector<8x1xf32>
    %157 = vector.broadcast %156 : vector<8x1xf32> to vector<8x8xf32>
    %158 = arith.subf %154, %157 : vector<8x8xf32>
    %159 = math.exp %158 : vector<8x8xf32>
    %cst_52 = arith.constant dense<0.000000e+00> : vector<8xf32>
    %160 = vector.multi_reduction <add>, %159, %cst_52 [1] : vector<8x8xf32> to vector<8xf32>
    %161 = vector.shape_cast %160 : vector<8xf32> to vector<8x1xf32>
    %162 = tpu.reciprocal %161 {approx = true} : vector<8x1xf32> -> vector<8x1xf32>
    %163 = vector.broadcast %162 : vector<8x1xf32> to vector<8x8xf32>
    %164 = arith.mulf %159, %163 : vector<8x8xf32>
    %165 = vector.shape_cast %164 : vector<8x8xf32> to vector<8x8x1xf32>
    %166 = vector.broadcast %165 : vector<8x8x1xf32> to vector<8x8x16xf32>
    %167 = arith.mulf %166, %134 : vector<8x8x16xf32>
    %cst_53 = arith.constant dense<0.000000e+00> : vector<8x16xf32>
    %168 = vector.multi_reduction <add>, %167, %cst_53 [1] : vector<8x8x16xf32> to vector<8x16xf32>
    %169 = arith.truncf %42 : vector<8x32xf32> to vector<8x32xbf16>
    %c0_54 = arith.constant 0 : index
    %c0_55 = arith.constant 0 : index
    %170 = vector.load %arg12[%c0_54, %c0_55] : memref<32x32xbf16, #tpu.memory_space<vmem>>, vector<32x32xbf16>
    %cst_56 = arith.constant dense<0.000000e+00> : vector<8x32xf32>
    %171 = tpu.matmul %169, %170, %cst_56 {dimension_numbers = #tpu.dot_dimension_numbers<[1], [0], [0], [1], [0, 0, 1, 1], [], []>} : vector<8x32xbf16>, vector<32x32xbf16>, vector<8x32xf32> -> vector<8x32xf32>
    %172 = arith.truncf %168 : vector<8x16xf32> to vector<8x16xbf16>
    %c0_57 = arith.constant 0 : index
    %c0_58 = arith.constant 0 : index
    %173 = vector.load %arg13[%c0_57, %c0_58] : memref<16x32xbf16, #tpu.memory_space<vmem>>, vector<16x32xbf16>
    %cst_59 = arith.constant dense<0.000000e+00> : vector<8x32xf32>
    %174 = tpu.matmul %172, %173, %cst_59 {dimension_numbers = #tpu.dot_dimension_numbers<[1], [0], [0], [1], [0, 0, 1, 1], [], []>} : vector<8x16xbf16>, vector<16x32xbf16>, vector<8x32xf32> -> vector<8x32xf32>
    %175 = arith.addf %171, %174 : vector<8x32xf32>
    %c0_60 = arith.constant 0 : index
    %c0_61 = arith.constant 0 : index
    %176 = vector.load %arg14[%c0_60, %c0_61] : memref<1x32xf32, #tpu.memory_space<vmem>>, vector<1x32xf32>
    %177 = vector.broadcast %176 : vector<1x32xf32> to vector<8x32xf32>
    %178 = arith.addf %175, %177 : vector<8x32xf32>
    %179 = arith.truncf %178 : vector<8x32xf32> to vector<8x32xbf16>
    %c0_62 = arith.constant 0 : index
    %c0_63 = arith.constant 0 : index
    %180 = vector.load %arg15[%c0_62, %c0_63] : memref<32x32xbf16, #tpu.memory_space<vmem>>, vector<32x32xbf16>
    %cst_64 = arith.constant dense<0.000000e+00> : vector<8x32xf32>
    %181 = tpu.matmul %179, %180, %cst_64 {dimension_numbers = #tpu.dot_dimension_numbers<[1], [0], [0], [1], [0, 0, 1, 1], [], []>} : vector<8x32xbf16>, vector<32x32xbf16>, vector<8x32xf32> -> vector<8x32xf32>
    %182 = vector.shape_cast %181 : vector<8x32xf32> to vector<8x1x32xf32>
    %183 = vector.broadcast %182 : vector<8x1x32xf32> to vector<8x8x32xf32>
    %184 = arith.mulf %183, %5 : vector<8x8x32xf32>
    %cst_65 = arith.constant dense<0.000000e+00> : vector<8x8xf32>
    %185 = vector.multi_reduction <add>, %184, %cst_65 [2] : vector<8x8x32xf32> to vector<8x8xf32>
    %cst_66 = arith.constant 5.000000e-01 : f32
    %186 = vector.broadcast %cst_66 : f32 to vector<8x8xf32>
    %187 = arith.cmpf ogt, %6, %186 : vector<8x8xf32>
    %cst_67 = arith.constant -1.000000e+30 : f32
    %188 = vector.broadcast %cst_67 : f32 to vector<8x8xf32>
    %189 = arith.select %187, %188, %185 : vector<8x8xi1>, vector<8x8xf32>
    %cst_68 = arith.constant dense<0xFF800000> : vector<8xf32>
    %190 = vector.multi_reduction <maximumf>, %189, %cst_68 [1] : vector<8x8xf32> to vector<8xf32>
    %191 = vector.shape_cast %190 : vector<8xf32> to vector<8x1xf32>
    %192 = vector.broadcast %191 : vector<8x1xf32> to vector<8x8xf32>
    %193 = arith.subf %189, %192 : vector<8x8xf32>
    %194 = math.exp %193 : vector<8x8xf32>
    %cst_69 = arith.constant dense<0.000000e+00> : vector<8xf32>
    %195 = vector.multi_reduction <add>, %194, %cst_69 [1] : vector<8x8xf32> to vector<8xf32>
    %196 = vector.shape_cast %195 : vector<8xf32> to vector<8x1xf32>
    %197 = tpu.reciprocal %196 {approx = true} : vector<8x1xf32> -> vector<8x1xf32>
    %198 = vector.broadcast %197 : vector<8x1xf32> to vector<8x8xf32>
    %199 = arith.mulf %194, %198 : vector<8x8xf32>
    %200 = vector.shape_cast %199 : vector<8x8xf32> to vector<8x8x1xf32>
    %201 = vector.broadcast %200 : vector<8x8x1xf32> to vector<8x8x32xf32>
    %202 = arith.mulf %201, %5 : vector<8x8x32xf32>
    %cst_70 = arith.constant dense<0.000000e+00> : vector<8x32xf32>
    %203 = vector.multi_reduction <add>, %202, %cst_70 [1] : vector<8x8x32xf32> to vector<8x32xf32>
    %204 = arith.truncf %203 : vector<8x32xf32> to vector<8x32xbf16>
    %c0_71 = arith.constant 0 : index
    %c0_72 = arith.constant 0 : index
    %205 = vector.load %arg16[%c0_71, %c0_72] : memref<32x32xbf16, #tpu.memory_space<vmem>>, vector<32x32xbf16>
    %cst_73 = arith.constant dense<0.000000e+00> : vector<8x32xf32>
    %206 = tpu.matmul %204, %205, %cst_73 {dimension_numbers = #tpu.dot_dimension_numbers<[1], [0], [0], [1], [0, 0, 1, 1], [], []>} : vector<8x32xbf16>, vector<32x32xbf16>, vector<8x32xf32> -> vector<8x32xf32>
    %207 = arith.truncf %178 : vector<8x32xf32> to vector<8x32xbf16>
    %c0_74 = arith.constant 0 : index
    %c0_75 = arith.constant 0 : index
    %208 = vector.load %arg17[%c0_74, %c0_75] : memref<32x32xbf16, #tpu.memory_space<vmem>>, vector<32x32xbf16>
    %cst_76 = arith.constant dense<0.000000e+00> : vector<8x32xf32>
    %209 = tpu.matmul %207, %208, %cst_76 {dimension_numbers = #tpu.dot_dimension_numbers<[1], [0], [0], [1], [0, 0, 1, 1], [], []>} : vector<8x32xbf16>, vector<32x32xbf16>, vector<8x32xf32> -> vector<8x32xf32>
    %210 = arith.addf %206, %209 : vector<8x32xf32>
    %211 = math.tanh %210 : vector<8x32xf32>
    %212 = arith.truncf %211 : vector<8x32xf32> to vector<8x32xbf16>
    %c0_77 = arith.constant 0 : index
    %c0_78 = arith.constant 0 : index
    %213 = vector.load %arg18[%c0_77, %c0_78] : memref<32x6xbf16, #tpu.memory_space<vmem>>, vector<32x6xbf16>
    %cst_79 = arith.constant dense<0.000000e+00> : vector<8x6xf32>
    %214 = tpu.matmul %212, %213, %cst_79 {dimension_numbers = #tpu.dot_dimension_numbers<[1], [0], [0], [1], [0, 0, 1, 1], [], []>} : vector<8x32xbf16>, vector<32x6xbf16>, vector<8x6xf32> -> vector<8x6xf32>
    %c0_80 = arith.constant 0 : index
    %c0_81 = arith.constant 0 : index
    %215 = vector.load %arg19[%c0_80, %c0_81] : memref<1x6xf32, #tpu.memory_space<vmem>>, vector<1x6xf32>
    %216 = vector.broadcast %215 : vector<1x6xf32> to vector<8x6xf32>
    %217 = arith.addf %214, %216 : vector<8x6xf32>
    %cst_82 = arith.constant 0.000000e+00 : f32
    %218 = vector.broadcast %cst_82 : f32 to vector<8x640xf32>
    %c0_83 = arith.constant 0 : index
    %c0_84 = arith.constant 0 : index
    %219 = vector.load %arg20[%c0_83, %c0_84] : memref<8x640xf32, #tpu.memory_space<vmem>>, vector<8x640xf32>
    tpu.vector_store %arg20[%c0_83, %c0_84], %218 {strides = array<i32>} : memref<8x640xf32, #tpu.memory_space<vmem>>, vector<8x640xf32>,
    %c0_85 = arith.constant 0 : index
    %c0_86 = arith.constant 0 : index
    %220 = vector.load %arg20[%c0_85, %c0_86] : memref<8x640xf32, #tpu.memory_space<vmem>>, vector<8x32xf32>
    tpu.vector_store %arg20[%c0_85, %c0_86], %42 {strides = array<i32>} : memref<8x640xf32, #tpu.memory_space<vmem>>, vector<8x32xf32>,
    %c0_87 = arith.constant 0 : index
    %c128 = arith.constant 128 : index
    %221 = vector.load %arg20[%c0_87, %c128] : memref<8x640xf32, #tpu.memory_space<vmem>>, vector<8x32xf32>
    tpu.vector_store %arg20[%c0_87, %c128], %40 {strides = array<i32>} : memref<8x640xf32, #tpu.memory_space<vmem>>, vector<8x32xf32>,
    %c0_88 = arith.constant 0 : index
    %c256 = arith.constant 256 : index
    %222 = vector.load %arg20[%c0_88, %c256] : memref<8x640xf32, #tpu.memory_space<vmem>>, vector<8x16xf32>
    tpu.vector_store %arg20[%c0_88, %c256], %168 {strides = array<i32>} : memref<8x640xf32, #tpu.memory_space<vmem>>, vector<8x16xf32>,
    %c0_89 = arith.constant 0 : index
    %c384 = arith.constant 384 : index
    %223 = vector.load %arg20[%c0_89, %c384] : memref<8x640xf32, #tpu.memory_space<vmem>>, vector<8x8xf32>
    tpu.vector_store %arg20[%c0_89, %c384], %199 {strides = array<i32>} : memref<8x640xf32, #tpu.memory_space<vmem>>, vector<8x8xf32>,
    %c0_90 = arith.constant 0 : index
    %c512 = arith.constant 512 : index
    %224 = vector.load %arg20[%c0_90, %c512] : memref<8x640xf32, #tpu.memory_space<vmem>>, vector<8x6xf32>
    tpu.vector_store %arg20[%c0_90, %c512], %217 {strides = array<i32>} : memref<8x640xf32, #tpu.memory_space<vmem>>, vector<8x6xf32>,
    %225 = arith.truncf %134 : vector<8x8x16xf32> to vector<8x8x16xbf16>
    %c0_91 = arith.constant 0 : index
    %c0_92 = arith.constant 0 : index
    %c0_93 = arith.constant 0 : index
    %226 = vector.load %arg21[%c0_91, %c0_92, %c0_93] : memref<8x8x16xbf16, #tpu.memory_space<vmem>>, vector<8x8x16xbf16>
    tpu.vector_store %arg21[%c0_91, %c0_92, %c0_93], %225 {strides = array<i32>} : memref<8x8x16xbf16, #tpu.memory_space<vmem>>, vector<8x8x16xbf16>,
    return
  }
  func.func @transform_0(%arg0: i32) -> (i32, i32) {
    %c0_i32 = arith.constant 0 : i32
    %c0_i32_0 = arith.constant 0 : i32
    return %arg0, %c0_i32 : i32, i32
  }
  func.func @transform_1(%arg0: i32) -> (i32, i32) {
    %c0_i32 = arith.constant 0 : i32
    %c0_i32_0 = arith.constant 0 : i32
    return %arg0, %c0_i32 : i32, i32
  }
  func.func @transform_2(%arg0: i32) -> (i32, i32) {
    %c0_i32 = arith.constant 0 : i32
    %c0_i32_0 = arith.constant 0 : i32
    return %arg0, %c0_i32 : i32, i32
  }
  func.func @transform_3(%arg0: i32) -> (i32, i32, i32) {
    %c0_i32 = arith.constant 0 : i32
    %c0_i32_0 = arith.constant 0 : i32
    %c0_i32_1 = arith.constant 0 : i32
    return %arg0, %c0_i32, %c0_i32_0 : i32, i32, i32
  }
  func.func @transform_4(%arg0: i32) -> (i32, i32, i32) {
    %c0_i32 = arith.constant 0 : i32
    %c0_i32_0 = arith.constant 0 : i32
    %c0_i32_1 = arith.constant 0 : i32
    return %arg0, %c0_i32, %c0_i32_0 : i32, i32, i32
  }
  func.func @transform_5(%arg0: i32) -> (i32, i32) {
    %c0_i32 = arith.constant 0 : i32
    %c0_i32_0 = arith.constant 0 : i32
    return %arg0, %c0_i32 : i32, i32
  }
  func.func @transform_6(%arg0: i32) -> (i32, i32) {
    %c0_i32 = arith.constant 0 : i32
    %c0_i32_0 = arith.constant 0 : i32
    %c0_i32_1 = arith.constant 0 : i32
    return %c0_i32, %c0_i32_0 : i32, i32
  }
  func.func @transform_7(%arg0: i32) -> (i32, i32) {
    %c0_i32 = arith.constant 0 : i32
    %c0_i32_0 = arith.constant 0 : i32
    %c0_i32_1 = arith.constant 0 : i32
    return %c0_i32, %c0_i32_0 : i32, i32
  }
  func.func @transform_8(%arg0: i32) -> (i32, i32) {
    %c0_i32 = arith.constant 0 : i32
    %c0_i32_0 = arith.constant 0 : i32
    %c0_i32_1 = arith.constant 0 : i32
    return %c0_i32, %c0_i32_0 : i32, i32
  }
  func.func @transform_9(%arg0: i32) -> (i32, i32) {
    %c0_i32 = arith.constant 0 : i32
    %c0_i32_0 = arith.constant 0 : i32
    %c0_i32_1 = arith.constant 0 : i32
    return %c0_i32, %c0_i32_0 : i32, i32
  }
  func.func @transform_10(%arg0: i32) -> (i32, i32) {
    %c0_i32 = arith.constant 0 : i32
    %c0_i32_0 = arith.constant 0 : i32
    %c0_i32_1 = arith.constant 0 : i32
    return %c0_i32, %c0_i32_0 : i32, i32
  }
  func.func @transform_11(%arg0: i32) -> (i32, i32) {
    %c0_i32 = arith.constant 0 : i32
    %c0_i32_0 = arith.constant 0 : i32
    %c0_i32_1 = arith.constant 0 : i32
    return %c0_i32, %c0_i32_0 : i32, i32
  }
  func.func @transform_12(%arg0: i32) -> (i32, i32) {
    %c0_i32 = arith.constant 0 : i32
    %c0_i32_0 = arith.constant 0 : i32
    %c0_i32_1 = arith.constant 0 : i32
    return %c0_i32, %c0_i32_0 : i32, i32
  }
  func.func @transform_13(%arg0: i32) -> (i32, i32) {
    %c0_i32 = arith.constant 0 : i32
    %c0_i32_0 = arith.constant 0 : i32
    %c0_i32_1 = arith.constant 0 : i32
    return %c0_i32, %c0_i32_0 : i32, i32
  }
  func.func @transform_14(%arg0: i32) -> (i32, i32) {
    %c0_i32 = arith.constant 0 : i32
    %c0_i32_0 = arith.constant 0 : i32
    %c0_i32_1 = arith.constant 0 : i32
    return %c0_i32, %c0_i32_0 : i32, i32
  }
  func.func @transform_15(%arg0: i32) -> (i32, i32) {
    %c0_i32 = arith.constant 0 : i32
    %c0_i32_0 = arith.constant 0 : i32
    %c0_i32_1 = arith.constant 0 : i32
    return %c0_i32, %c0_i32_0 : i32, i32
  }
  func.func @transform_16(%arg0: i32) -> (i32, i32) {
    %c0_i32 = arith.constant 0 : i32
    %c0_i32_0 = arith.constant 0 : i32
    %c0_i32_1 = arith.constant 0 : i32
    return %c0_i32, %c0_i32_0 : i32, i32
  }
  func.func @transform_17(%arg0: i32) -> (i32, i32) {
    %c0_i32 = arith.constant 0 : i32
    %c0_i32_0 = arith.constant 0 : i32
    %c0_i32_1 = arith.constant 0 : i32
    return %c0_i32, %c0_i32_0 : i32, i32
  }
  func.func @transform_18(%arg0: i32) -> (i32, i32) {
    %c0_i32 = arith.constant 0 : i32
    %c0_i32_0 = arith.constant 0 : i32
    %c0_i32_1 = arith.constant 0 : i32
    return %c0_i32, %c0_i32_0 : i32, i32
  }
  func.func @transform_19(%arg0: i32) -> (i32, i32) {
    %c0_i32 = arith.constant 0 : i32
    %c0_i32_0 = arith.constant 0 : i32
    return %arg0, %c0_i32 : i32, i32
  }
  func.func @transform_20(%arg0: i32) -> (i32, i32, i32) {
    %c0_i32 = arith.constant 0 : i32
    %c0_i32_0 = arith.constant 0 : i32
    %c0_i32_1 = arith.constant 0 : i32
    return %arg0, %c0_i32, %c0_i32_0 : i32, i32, i32
  }
}

</mosaic_0001>

<bundles_post_ra>
// kernel: decoder_single_dnc_step.1
= control target key start
LH: loop header
LB: loop body
LE: loop exit
PB: predicated region body
PF: predicated region fallthrough
CT: control target
= control target key end

     0   :  { %s5089_s0 = inlined_call_operand.hbm [shape: f32[8,56], index: 0, kind: input, shape index: {}]   ;;  %s5090_s1 = inlined_call_operand.hbm [shape: f32[8,32], index: 1, kind: input, shape index: {}]   ;;  %s5091_s2 = inlined_call_operand.hbm [shape: f32[8,32], index: 2, kind: input, shape index: {}]   ;;  %s5092_s3 = inlined_call_operand.hbm [shape: bf16[8,8,16], index: 3, kind: input, shape index: {}, may-alias: {3,20}]   ;;  %s5093_s4 = inlined_call_operand.hbm [shape: bf16[8,8,32], index: 4, kind: input, shape index: {}]   ;;  %s5094_s5 = inlined_call_operand.hbm [shape: f32[8,8], index: 5, kind: input, shape index: {}]   ;;  %s5095_s6 = inlined_call_operand.hbm [shape: bf16[56,128], index: 6, kind: input, shape index: {}]   ;;  %s5096_s7 = inlined_call_operand.hbm [shape: bf16[32,128], index: 7, kind: input, shape index: {}]   ;;  %s5097_s8 = inlined_call_operand.hbm [shape: f32[1,128], index: 8, kind: input, shape index: {}]   ;;  %s5098_s9 = inlined_call_operand.hbm [shape: bf16[32,67], index: 9, kind: input, shape index: {}]   ;;  %s5099_s10 = inlined_call_operand.hbm [shape: f32[1,67], index: 10, kind: input, shape index: {}]   ;;  %s5100_s11 = inlined_call_operand.hbm [shape: bf16[32,32], index: 11, kind: input, shape index: {}]   ;;  %s5101_s12 = inlined_call_operand.hbm [shape: bf16[16,32], index: 12, kind: input, shape index: {}]   ;;  %s5102_s13 = inlined_call_operand.hbm [shape: f32[1,32], index: 13, kind: input, shape index: {}]   ;;  %s5103_s14 = inlined_call_operand.hbm [shape: bf16[32,32], index: 14, kind: input, shape index: {}]   ;;  %s5104_s15 = inlined_call_operand.hbm [shape: bf16[32,32], index: 15, kind: input, shape index: {}]   ;;  %s5105_s16 = inlined_call_operand.hbm [shape: bf16[32,32], index: 16, kind: input, shape index: {}]   ;;  %s5106_s17 = inlined_call_operand.hbm [shape: bf16[32,6], index: 17, kind: input, shape index: {}]   ;;  %s5107_s18 = inlined_call_operand.hbm [shape: f32[1,6], index: 18, kind: input, shape index: {}]   ;;  %s5108_s19 = inlined_call_operand.hbm [shape: f32[8,640], index: 19, kind: output, shape index: {0}]   ;;  %s5109_s20 = inlined_call_operand.hbm [shape: bf16[8,8,16], index: 20, kind: output, shape index: {1}, may-alias: {3,20}]  }
   0x1   :  { %5117 = sst [smem:[#allocation47_spill]] %s5089_s0 }
   0x2   :  { %5118 = sst [smem:[#allocation48_spill]] %s5090_s1 }
   0x3   :  { %5119 = sst [smem:[#allocation49_spill]] %s5091_s2 }
   0x4   :  { %5120 = sst [smem:[#allocation50_spill]] %s5092_s3 }
   0x5   :  { %5121 = sst [smem:[#allocation51_spill]] %s5093_s4 }
   0x6   :  { %5122 = sst [smem:[#allocation52_spill]] %s5108_s19 }
   0x7   :  { %5123 = sst [smem:[#allocation53_spill]] %s5109_s20 }
   0x8   :  { %26 = vsyncpa [#allocation3], 0 }
   0x9   :  { %27 = vsyncpa [#allocation6], 0 }
   0xa   :  { %28 = vsyncpa [#allocation9], 0 }
   0xb   :  { %29 = vsyncpa [#allocation12], 0 }
   0xc   :  { %30 = vsyncpa [#allocation15], 0 }
   0xd   :  { %31 = vsyncpa [#allocation18], 0 }
   0xe   :  { %32 = vsyncpa [#allocation21], 0 }
   0xf   :  { %33 = vsyncpa [#allocation24], 0 }
  0x10   :  { %34 = vsyncpa [#allocation27], 0 }
  0x11   :  { %35 = vsyncpa [#allocation30], 0 }
  0x12   :  { %36 = vsyncpa [#allocation4], 0 }
  0x13   :  { %37 = vsyncpa [#allocation34], 0  ;;  %s3909_s1 = smov [#allocation5]   ;;  %s3910_s23 = smov [#allocation8]  }
  0x14   :  { %s54_s22 = sshll.u32 %s3909_s1, 4  ;;  %s73_s24 = sshll.u32 %s3910_s23, 4  ;;  %s55_s22 = int_to_ptr.vmem [resolvable:$true] %s54_s22  ;;  %s4049_s24 = int_to_ptr.vmem [resolvable:$true] %s73_s24 }
  0x15   :  { %s5124_s3 = sld [smem:[#allocation48_spill]] }
  0x1b   :  { %s3423_s26 = scalar_lea.hbm %s5124_s3, 128 }
  0x1c   :  { %p3424_p0 = scmp.ne.s32.totalorder %s5124_s3, %s3423_s26  ;;  %p3427_p1 = scmp.lt.u32.totalorder %s3423_s26, %s5124_s3 }
  0x1e   :  { %p3429_p2 = pnand %p3427_p1, %p3424_p0 }
  0x20   :  { %3432 = shalt.err (!%p3429_p2)
}
  0x21   :  { %s3433_s30 = scalar_lea.vmem %s55_s22, 128  ;;  %p3438_p4 = scmp.lt.s32.totalorder %s55_s22, %s55_s22 }
  0x22   :  { %p3434_p3 = scmp.ne.s32.totalorder %s55_s22, %s3433_s30  ;;  %p3439_p5 = scmp.lt.s32.totalorder %s3433_s30, %s3433_s30 }
  0x24   :  { %p3440_p6 = por %p3439_p5, %p3438_p4 }
  0x26   :  { %p3441_p7 = pnand %p3440_p6, %p3434_p3 }
  0x28   :  { %3444 = shalt.err (!%p3441_p7)
}
  0x29   :  { %57 = dma.hbm_to_vmem [thread:$0]  %s5124_s3, 128, %s55_s22, [#allocation6]  }
  0x2a   :  { %s5125_s2 = sld [smem:[#allocation50_spill]] }
  0x30   :  { %s3445_s25 = scalar_lea.hbm %s5125_s2, 512 }
  0x31   :  { %p3446_p8 = scmp.ne.s32.totalorder %s5125_s2, %s3445_s25  ;;  %p3449_p9 = scmp.lt.u32.totalorder %s3445_s25, %s5125_s2 }
  0x33   :  { %p3451_p10 = pnand %p3449_p9, %p3446_p8 }
  0x35   :  { %3454 = shalt.err (!%p3451_p10)
}
  0x36   :  { %s3455_s29 = scalar_lea.vmem %s4049_s24, 512  ;;  %p3460_p12 = scmp.lt.s32.totalorder %s4049_s24, %s4049_s24 }
  0x37   :  { %p3456_p11 = scmp.ne.s32.totalorder %s4049_s24, %s3455_s29  ;;  %p3461_p13 = scmp.lt.s32.totalorder %s3455_s29, %s3455_s29 }
  0x39   :  { %p3462_p0 = por %p3461_p13, %p3460_p12 }
  0x3b   :  { %p3463_p1 = pnand %p3462_p0, %p3456_p11 }
  0x3d   :  { %3466 = shalt.err (!%p3463_p1)
}
  0x3e   :  { %s3911_s22 = smov 64   ;;  %s3912_s3 = smov 4  }
  0x3f   :  { %79 = dma.hbm_to_vmem [thread:$0]  %s5125_s2, 512, %s4049_s24, [#allocation9], %s3911_s22, %s3911_s22, %s3912_s3  }
  0x40   :  { %s3913_s21 = smov [#allocation11]   ;;  %s3914_s23 = smov [#allocation14]  }
  0x41   :  { %s98_s1 = sshll.u32 %s3913_s21, 4  ;;  %s119_s25 = sshll.u32 %s3914_s23, 4  ;;  %s99_s1 = int_to_ptr.vmem [resolvable:$true] %s98_s1  ;;  %s4083_s25 = int_to_ptr.vmem [resolvable:$true] %s119_s25 }
  0x42   :  { %s3467_s26 = scalar_lea.hbm %s5094_s5, 128 }
  0x43   :  { %p3468_p2 = scmp.ne.s32.totalorder %s5094_s5, %s3467_s26  ;;  %p3471_p3 = scmp.lt.u32.totalorder %s3467_s26, %s5094_s5 }
  0x45   :  { %p3473_p4 = pnand %p3471_p3, %p3468_p2 }
  0x47   :  { %3476 = shalt.err (!%p3473_p4)
}
  0x48   :  { %s3477_s24 = scalar_lea.vmem %s99_s1, 128  ;;  %p3482_p6 = scmp.lt.s32.totalorder %s99_s1, %s99_s1 }
  0x49   :  { %p3478_p5 = scmp.ne.s32.totalorder %s99_s1, %s3477_s24  ;;  %p3483_p7 = scmp.lt.s32.totalorder %s3477_s24, %s3477_s24 }
  0x4b   :  { %p3484_p8 = por %p3483_p7, %p3482_p6 }
  0x4d   :  { %p3485_p9 = pnand %p3484_p8, %p3478_p5 }
  0x4f   :  { %3488 = shalt.err (!%p3485_p9)
}
  0x50   :  { %101 = dma.hbm_to_vmem [thread:$0]  %s5094_s5, 128, %s99_s1, [#allocation12]  }
  0x51   :  { %s3489_s23 = scalar_lea.hbm %s5096_s7, 256 }
  0x52   :  { %p3490_p10 = scmp.ne.s32.totalorder %s5096_s7, %s3489_s23  ;;  %p3493_p11 = scmp.lt.u32.totalorder %s3489_s23, %s5096_s7 }
  0x54   :  { %p3495_p12 = pnand %p3493_p11, %p3490_p10 }
  0x56   :  { %3498 = shalt.err (!%p3495_p12)
}
  0x57   :  { %s3499_s26 = scalar_lea.vmem %s4083_s25, 256  ;;  %p3504_p0 = scmp.lt.s32.totalorder %s4083_s25, %s4083_s25 }
  0x58   :  { %p3500_p13 = scmp.ne.s32.totalorder %s4083_s25, %s3499_s26  ;;  %p3505_p1 = scmp.lt.s32.totalorder %s3499_s26, %s3499_s26 }
  0x5a   :  { %p3506_p2 = por %p3505_p1, %p3504_p0 }
  0x5c   :  { %p3507_p3 = pnand %p3506_p2, %p3500_p13 }
  0x5e   :  { %3510 = shalt.err (!%p3507_p3)
}
  0x5f   :  { %125 = dma.hbm_to_vmem [thread:$0]  %s5096_s7, 256, %s4083_s25, [#allocation15], %s3911_s22, %s3911_s22, %s3912_s3  }
  0x60   :  { %s3915_s4 = smov [#allocation17]   ;;  %s3916_s24 = smov [#allocation20]  }
  0x61   :  { %s141_s29 = sshll.u32 %s3915_s4, 4  ;;  %s163_s2 = sshll.u32 %s3916_s24, 4  ;;  %s142_s29 = int_to_ptr.vmem [resolvable:$true] %s141_s29  ;;  %s4117_s2 = int_to_ptr.vmem [resolvable:$true] %s163_s2 }
  0x62   :  { %s3511_s21 = scalar_lea.hbm %s5098_s9, 256 }
  0x63   :  { %p3512_p4 = scmp.ne.s32.totalorder %s5098_s9, %s3511_s21  ;;  %p3515_p5 = scmp.lt.u32.totalorder %s3511_s21, %s5098_s9 }
  0x65   :  { %p3517_p6 = pnand %p3515_p5, %p3512_p4 }
  0x67   :  { %3520 = shalt.err (!%p3517_p6)
}
  0x68   :  { %s3521_s7 = scalar_lea.vmem %s142_s29, 256  ;;  %p3526_p8 = scmp.lt.s32.totalorder %s142_s29, %s142_s29 }
  0x69   :  { %p3522_p7 = scmp.ne.s32.totalorder %s142_s29, %s3521_s7  ;;  %p3527_p9 = scmp.lt.s32.totalorder %s3521_s7, %s3521_s7 }
  0x6b   :  { %p3528_p10 = por %p3527_p9, %p3526_p8 }
  0x6d   :  { %p3529_p11 = pnand %p3528_p10, %p3522_p7 }
  0x6f   :  { %3532 = shalt.err (!%p3529_p11)
}
  0x70   :  { %147 = dma.hbm_to_vmem [thread:$0]  %s5098_s9, 256, %s142_s29, [#allocation18], %s3911_s22, %s3911_s22, %s3912_s3  }
  0x71   :  { %s3533_s1 = scalar_lea.hbm %s5100_s11, 256 }
  0x72   :  { %p3534_p12 = scmp.ne.s32.totalorder %s5100_s11, %s3533_s1  ;;  %p3537_p13 = scmp.lt.u32.totalorder %s3533_s1, %s5100_s11 }
  0x74   :  { %p3539_p0 = pnand %p3537_p13, %p3534_p12 }
  0x76   :  { %3542 = shalt.err (!%p3539_p0)
}
  0x77   :  { %s3543_s21 = scalar_lea.vmem %s4117_s2, 256  ;;  %p3548_p2 = scmp.lt.s32.totalorder %s4117_s2, %s4117_s2 }
  0x78   :  { %p3544_p1 = scmp.ne.s32.totalorder %s4117_s2, %s3543_s21  ;;  %p3549_p3 = scmp.lt.s32.totalorder %s3543_s21, %s3543_s21 }
  0x7a   :  { %p3550_p4 = por %p3549_p3, %p3548_p2 }
  0x7c   :  { %p3551_p5 = pnand %p3550_p4, %p3544_p1 }
  0x7e   :  { %3554 = shalt.err (!%p3551_p5)
}
  0x7f   :  { %169 = dma.hbm_to_vmem [thread:$0]  %s5100_s11, 256, %s4117_s2, [#allocation21], %s3911_s22, %s3911_s22, %s3912_s3  }
  0x80   :  { %s3917_s23 = smov [#allocation23]   ;;  %s3918_s19 = smov [#allocation26]  }
  0x81   :  { %s188_s27 = sshll.u32 %s3917_s23, 4  ;;  %s209_s20 = sshll.u32 %s3918_s19, 4  ;;  %s189_s27 = int_to_ptr.vmem [resolvable:$true] %s188_s27  ;;  %s4154_s20 = int_to_ptr.vmem [resolvable:$true] %s209_s20 }
  0x82   :  { %s3555_s28 = scalar_lea.hbm %s5102_s13, 16 }
  0x83   :  { %p3556_p6 = scmp.ne.s32.totalorder %s5102_s13, %s3555_s28  ;;  %p3559_p7 = scmp.lt.u32.totalorder %s3555_s28, %s5102_s13 }
  0x85   :  { %p3561_p8 = pnand %p3559_p7, %p3556_p6 }
  0x87   :  { %3564 = shalt.err (!%p3561_p8)
}
  0x88   :  { %s3565_s11 = scalar_lea.vmem %s189_s27, 16  ;;  %s3569_s2 = scalar_lea.vmem %s189_s27, 32 }
  0x89   :  { %p3566_p9 = scmp.ne.s32.totalorder %s189_s27, %s3565_s11  ;;  %p3570_p10 = scmp.lt.s32.totalorder %s189_s27, %s189_s27 }
  0x8a   :  { %p3571_p11 = scmp.lt.s32.totalorder %s3569_s2, %s3565_s11 }
  0x8c   :  { %p3572_p12 = por %p3571_p11, %p3570_p10 }
  0x8e   :  { %p3573_p13 = pnand %p3572_p12, %p3566_p9 }
  0x90   :  { %3576 = shalt.err (!%p3573_p13)
}
  0x91   :  { %191 = dma.hbm_to_vmem [thread:$0]  %s5102_s13, 16, %s189_s27, [#allocation24]  }
  0x92   :  { %s3577_s9 = scalar_lea.hbm %s5104_s15, 256 }
  0x93   :  { %p3578_p0 = scmp.ne.s32.totalorder %s5104_s15, %s3577_s9  ;;  %p3581_p1 = scmp.lt.u32.totalorder %s3577_s9, %s5104_s15 }
  0x95   :  { %p3583_p2 = pnand %p3581_p1, %p3578_p0 }
  0x97   :  { %3586 = shalt.err (!%p3583_p2)
}
  0x98   :  { %s3587_s25 = scalar_lea.vmem %s4154_s20, 256  ;;  %p3592_p4 = scmp.lt.s32.totalorder %s4154_s20, %s4154_s20 }
  0x99   :  { %p3588_p3 = scmp.ne.s32.totalorder %s4154_s20, %s3587_s25  ;;  %p3593_p5 = scmp.lt.s32.totalorder %s3587_s25, %s3587_s25 }
  0x9b   :  { %p3594_p6 = por %p3593_p5, %p3592_p4 }
  0x9d   :  { %p3595_p7 = pnand %p3594_p6, %p3588_p3 }
  0x9f   :  { %3598 = shalt.err (!%p3595_p7)
}
  0xa0   :  { %215 = dma.hbm_to_vmem [thread:$0]  %s5104_s15, 256, %s4154_s20, [#allocation27], %s3911_s22, %s3911_s22, %s3912_s3  }
  0xa1   :  { %s3919_s28 = smov [#allocation29]   ;;  %s3920_s5 = smov [#allocation2]  }
  0xa2   :  { %s233_s26 = sshll.u32 %s3919_s28, 4  ;;  %s44_s1 = sshll.u32 %s3920_s5, 4  ;;  %s234_s26 = int_to_ptr.vmem [resolvable:$true] %s233_s26  ;;  %s45_s1 = int_to_ptr.vmem [resolvable:$true] %s44_s1 }
  0xa3   :  { %s3599_s2 = scalar_lea.hbm %s5106_s17, 256 }
  0xa4   :  { %p3600_p8 = scmp.ne.s32.totalorder %s5106_s17, %s3599_s2  ;;  %p3603_p9 = scmp.lt.u32.totalorder %s3599_s2, %s5106_s17 }
  0xa6   :  { %p3605_p10 = pnand %p3603_p9, %p3600_p8 }
  0xa8   :  { %3608 = shalt.err (!%p3605_p10)
}
  0xa9   :  { %s3609_s15 = scalar_lea.vmem %s234_s26, 256  ;;  %p3614_p12 = scmp.lt.s32.totalorder %s234_s26, %s234_s26 }
  0xaa   :  { %p3610_p11 = scmp.ne.s32.totalorder %s234_s26, %s3609_s15  ;;  %p3615_p13 = scmp.lt.s32.totalorder %s3609_s15, %s3609_s15 }
  0xac   :  { %p3616_p0 = por %p3615_p13, %p3614_p12 }
  0xae   :  { %p3617_p1 = pnand %p3616_p0, %p3610_p11 }
  0xb0   :  { %3620 = shalt.err (!%p3617_p1)
}
  0xb1   :  { %239 = dma.hbm_to_vmem [thread:$0]  %s5106_s17, 256, %s234_s26, [#allocation30], %s3911_s22, %s3911_s22, %s3912_s3  }
  0xb2   :  { %s5126_s19 = sld [smem:[#allocation47_spill]] }
  0xb8   :  { %s3621_s7 = scalar_lea.hbm %s5126_s19, 128 }
  0xb9   :  { %p3622_p2 = scmp.ne.s32.totalorder %s5126_s19, %s3621_s7  ;;  %p3625_p3 = scmp.lt.u32.totalorder %s3621_s7, %s5126_s19 }
  0xbb   :  { %p3627_p4 = pnand %p3625_p3, %p3622_p2 }
  0xbd   :  { %3630 = shalt.err (!%p3627_p4)
}
  0xbe   :  { %s3631_s5 = scalar_lea.vmem %s45_s1, 128  ;;  %p3636_p6 = scmp.lt.s32.totalorder %s45_s1, %s45_s1 }
  0xbf   :  { %p3632_p5 = scmp.ne.s32.totalorder %s45_s1, %s3631_s5  ;;  %p3637_p7 = scmp.lt.s32.totalorder %s3631_s5, %s3631_s5 }
  0xc1   :  { %p3638_p8 = por %p3637_p7, %p3636_p6 }
  0xc3   :  { %p3639_p9 = pnand %p3638_p8, %p3632_p5 }
  0xc5   :  { %3642 = shalt.err (!%p3639_p9)
}
  0xc6   :  { %47 = dma.hbm_to_vmem [thread:$0]  %s5126_s19, 128, %s45_s1, [#allocation3]  }
  0xc7   :  { %s3921_s4 = smov [#allocation7]   ;;  %s3922_s2 = smov [#allocation10]  }
  0xc8   :  { %s64_s11 = sshll.u32 %s3921_s4, 4  ;;  %s85_s24 = sshll.u32 %s3922_s2, 4  ;;  %s65_s11 = int_to_ptr.vmem [resolvable:$true] %s64_s11  ;;  %s4215_s24 = int_to_ptr.vmem [resolvable:$true] %s85_s24 }
  0xc9   :  { %s5127_s21 = sld [smem:[#allocation49_spill]] }
  0xcf   :  { %s3643_s15 = scalar_lea.hbm %s5127_s21, 128 }
  0xd0   :  { %p3644_p10 = scmp.ne.s32.totalorder %s5127_s21, %s3643_s15  ;;  %p3647_p11 = scmp.lt.u32.totalorder %s3643_s15, %s5127_s21 }
  0xd2   :  { %p3649_p12 = pnand %p3647_p11, %p3644_p10 }
  0xd4   :  { %3652 = shalt.err (!%p3649_p12)
}
  0xd5   :  { %s3653_s1 = scalar_lea.vmem %s65_s11, 128  ;;  %p3658_p0 = scmp.lt.s32.totalorder %s65_s11, %s65_s11 }
  0xd6   :  { %p3654_p13 = scmp.ne.s32.totalorder %s65_s11, %s3653_s1  ;;  %p3659_p1 = scmp.lt.s32.totalorder %s3653_s1, %s3653_s1 }
  0xd8   :  { %p3660_p2 = por %p3659_p1, %p3658_p0 }
  0xda   :  { %p3661_p3 = pnand %p3660_p2, %p3654_p13 }
  0xdc   :  { %3664 = shalt.err (!%p3661_p3)
}
  0xdd   :  { %67 = dma.hbm_to_vmem [thread:$0]  %s5127_s21, 128, %s65_s11, [#allocation6]  }
  0xde   :  { %s5128_s27 = sld [smem:[#allocation51_spill]] }
  0xe4   :  { %s3665_s28 = scalar_lea.hbm %s5128_s27, 512 }
  0xe5   :  { %p3666_p4 = scmp.ne.s32.totalorder %s5128_s27, %s3665_s28  ;;  %p3669_p5 = scmp.lt.u32.totalorder %s3665_s28, %s5128_s27 }
  0xe7   :  { %p3671_p6 = pnand %p3669_p5, %p3666_p4 }
  0xe9   :  { %3674 = shalt.err (!%p3671_p6)
}
  0xea   :  { %s3675_s2 = scalar_lea.vmem %s4215_s24, 512  ;;  %p3680_p8 = scmp.lt.s32.totalorder %s4215_s24, %s4215_s24 }
  0xeb   :  { %p3676_p7 = scmp.ne.s32.totalorder %s4215_s24, %s3675_s2  ;;  %p3681_p9 = scmp.lt.s32.totalorder %s3675_s2, %s3675_s2 }
  0xed   :  { %p3682_p10 = por %p3681_p9, %p3680_p8 }
  0xef   :  { %p3683_p11 = pnand %p3682_p10, %p3676_p7 }
  0xf1   :  { %3686 = shalt.err (!%p3683_p11)
}
  0xf2   :  { %91 = dma.hbm_to_vmem [thread:$0]  %s5128_s27, 512, %s4215_s24, [#allocation9], %s3911_s22, %s3911_s22, %s3912_s3  }
  0xf3   :  { %s3923_s0 = smov [#allocation13]   ;;  %s3924_s15 = smov [#allocation16]  }
  0xf4   :  { %s107_s21 = sshll.u32 %s3923_s0, 4  ;;  %s132_s20 = sshll.u32 %s3924_s15, 4  ;;  %s108_s21 = int_to_ptr.vmem [resolvable:$true] %s107_s21  ;;  %s133_s20 = int_to_ptr.vmem [resolvable:$true] %s132_s20 }
  0xf5   :  { %s3687_s23 = scalar_lea.hbm %s5095_s6, 448 }
  0xf6   :  { %p3688_p12 = scmp.ne.s32.totalorder %s5095_s6, %s3687_s23  ;;  %p3691_p13 = scmp.lt.u32.totalorder %s3687_s23, %s5095_s6 }
  0xf8   :  { %p3693_p0 = pnand %p3691_p13, %p3688_p12 }
  0xfa   :  { %3696 = shalt.err (!%p3693_p0)
}
  0xfb   :  { %s3697_s24 = scalar_lea.vmem %s108_s21, 448  ;;  %p3702_p2 = scmp.lt.s32.totalorder %s108_s21, %s108_s21 }
  0xfc   :  { %p3698_p1 = scmp.ne.s32.totalorder %s108_s21, %s3697_s24  ;;  %p3703_p3 = scmp.lt.s32.totalorder %s3697_s24, %s3697_s24 }
  0xfe   :  { %p3704_p4 = por %p3703_p3, %p3702_p2 }
 0x100   :  { %p3705_p5 = pnand %p3704_p4, %p3698_p1 }
 0x102   :  { %3708 = shalt.err (!%p3705_p5)
}
 0x103   :  { %113 = dma.hbm_to_vmem [thread:$0]  %s5095_s6, 448, %s108_s21, [#allocation12], %s3911_s22, %s3911_s22, %s3912_s3  }
 0x104   :  { %s3709_s17 = scalar_lea.hbm %s5097_s8, 16 }
 0x105   :  { %p3710_p6 = scmp.ne.s32.totalorder %s5097_s8, %s3709_s17  ;;  %p3713_p7 = scmp.lt.u32.totalorder %s3709_s17, %s5097_s8 }
 0x107   :  { %p3715_p8 = pnand %p3713_p7, %p3710_p6 }
 0x109   :  { %3718 = shalt.err (!%p3715_p8)
}
 0x10a   :  { %s3719_s30 = scalar_lea.vmem %s133_s20, 16  ;;  %s3723_s0 = scalar_lea.vmem %s133_s20, 32 }
 0x10b   :  { %p3720_p9 = scmp.ne.s32.totalorder %s133_s20, %s3719_s30  ;;  %p3724_p10 = scmp.lt.s32.totalorder %s133_s20, %s133_s20 }
 0x10c   :  { %p3725_p11 = scmp.lt.s32.totalorder %s3723_s0, %s3719_s30 }
 0x10e   :  { %p3726_p12 = por %p3725_p11, %p3724_p10 }
 0x110   :  { %p3727_p13 = pnand %p3726_p12, %p3720_p9 }
 0x112   :  { %3730 = shalt.err (!%p3727_p13)
}
 0x113   :  { %135 = dma.hbm_to_vmem [thread:$0]  %s5097_s8, 16, %s133_s20, [#allocation15]  }
 0x114   :  { %s3925_s15 = smov [#allocation19]   ;;  %s3926_s29 = smov [#allocation22]  }
 0x115   :  { %s154_s9 = sshll.u32 %s3925_s15, 4  ;;  %s175_s23 = sshll.u32 %s3926_s29, 4  ;;  %s155_s9 = int_to_ptr.vmem [resolvable:$true] %s154_s9  ;;  %s4276_s23 = int_to_ptr.vmem [resolvable:$true] %s175_s23 }
 0x116   :  { %s3731_s7 = scalar_lea.hbm %s5099_s10, 16 }
 0x117   :  { %p3732_p0 = scmp.ne.s32.totalorder %s5099_s10, %s3731_s7  ;;  %p3735_p1 = scmp.lt.u32.totalorder %s3731_s7, %s5099_s10 }
 0x119   :  { %p3737_p2 = pnand %p3735_p1, %p3732_p0 }
 0x11b   :  { %3740 = shalt.err (!%p3737_p2)
}
 0x11c   :  { %s3741_s8 = scalar_lea.vmem %s155_s9, 16  ;;  %s3745_s20 = scalar_lea.vmem %s155_s9, 32 }
 0x11d   :  { %p3742_p3 = scmp.ne.s32.totalorder %s155_s9, %s3741_s8  ;;  %p3746_p4 = scmp.lt.s32.totalorder %s155_s9, %s155_s9 }
 0x11e   :  { %p3747_p5 = scmp.lt.s32.totalorder %s3745_s20, %s3741_s8 }
 0x120   :  { %p3748_p6 = por %p3747_p5, %p3746_p4 }
 0x122   :  { %p3749_p7 = pnand %p3748_p6, %p3742_p3 }
 0x124   :  { %3752 = shalt.err (!%p3749_p7)
}
 0x125   :  { %157 = dma.hbm_to_vmem [thread:$0]  %s5099_s10, 16, %s155_s9, [#allocation18]  }
 0x126   :  { %s3753_s4 = scalar_lea.hbm %s5101_s12, 128 }
 0x127   :  { %p3754_p8 = scmp.ne.s32.totalorder %s5101_s12, %s3753_s4  ;;  %p3757_p9 = scmp.lt.u32.totalorder %s3753_s4, %s5101_s12 }
 0x129   :  { %p3759_p10 = pnand %p3757_p9, %p3754_p8 }
 0x12b   :  { %3762 = shalt.err (!%p3759_p10)
}
 0x12c   :  { %s3763_s6 = scalar_lea.vmem %s4276_s23, 128  ;;  %p3768_p12 = scmp.lt.s32.totalorder %s4276_s23, %s4276_s23 }
 0x12d   :  { %p3764_p11 = scmp.ne.s32.totalorder %s4276_s23, %s3763_s6  ;;  %p3769_p13 = scmp.lt.s32.totalorder %s3763_s6, %s3763_s6 }
 0x12f   :  { %p3770_p0 = por %p3769_p13, %p3768_p12 }
 0x131   :  { %p3771_p1 = pnand %p3770_p0, %p3764_p11 }
 0x133   :  { %3774 = shalt.err (!%p3771_p1)
}
 0x134   :  { %181 = dma.hbm_to_vmem [thread:$0]  %s5101_s12, 128, %s4276_s23, [#allocation21], %s3911_s22, %s3911_s22, %s3912_s3  }
 0x135   :  { %s3927_s15 = smov [#allocation25]   ;;  %s3928_s29 = smov [#allocation28]  }
 0x136   :  { %s197_s9 = sshll.u32 %s3927_s15, 4  ;;  %s221_s1 = sshll.u32 %s3928_s29, 4  ;;  %s198_s9 = int_to_ptr.vmem [resolvable:$true] %s197_s9  ;;  %s4310_s1 = int_to_ptr.vmem [resolvable:$true] %s221_s1 }
 0x137   :  { %s3775_s25 = scalar_lea.hbm %s5103_s14, 256 }
 0x138   :  { %p3776_p2 = scmp.ne.s32.totalorder %s5103_s14, %s3775_s25  ;;  %p3779_p3 = scmp.lt.u32.totalorder %s3775_s25, %s5103_s14 }
 0x13a   :  { %p3781_p4 = pnand %p3779_p3, %p3776_p2 }
 0x13c   :  { %3784 = shalt.err (!%p3781_p4)
}
 0x13d   :  { %s3785_s12 = scalar_lea.vmem %s198_s9, 256  ;;  %p3790_p6 = scmp.lt.s32.totalorder %s198_s9, %s198_s9 }
 0x13e   :  { %p3786_p5 = scmp.ne.s32.totalorder %s198_s9, %s3785_s12  ;;  %p3791_p7 = scmp.lt.s32.totalorder %s3785_s12, %s3785_s12 }
 0x140   :  { %p3792_p8 = por %p3791_p7, %p3790_p6 }
 0x142   :  { %p3793_p9 = pnand %p3792_p8, %p3786_p5 }
 0x144   :  { %3796 = shalt.err (!%p3793_p9)
}
 0x145   :  { %203 = dma.hbm_to_vmem [thread:$0]  %s5103_s14, 256, %s198_s9, [#allocation24], %s3911_s22, %s3911_s22, %s3912_s3  }
 0x146   :  { %s3797_s17 = scalar_lea.hbm %s5105_s16, 256 }
 0x147   :  { %p3798_p10 = scmp.ne.s32.totalorder %s5105_s16, %s3797_s17  ;;  %p3801_p11 = scmp.lt.u32.totalorder %s3797_s17, %s5105_s16 }
 0x149   :  { %p3803_p12 = pnand %p3801_p11, %p3798_p10 }
 0x14b   :  { %3806 = shalt.err (!%p3803_p12)
}
 0x14c   :  { %s3807_s30 = scalar_lea.vmem %s4310_s1, 256  ;;  %p3812_p0 = scmp.lt.s32.totalorder %s4310_s1, %s4310_s1 }
 0x14d   :  { %p3808_p13 = scmp.ne.s32.totalorder %s4310_s1, %s3807_s30  ;;  %p3813_p1 = scmp.lt.s32.totalorder %s3807_s30, %s3807_s30 }
 0x14f   :  { %p3814_p2 = por %p3813_p1, %p3812_p0 }
 0x151   :  { %p3815_p3 = pnand %p3814_p2, %p3808_p13 }
 0x153   :  { %3818 = shalt.err (!%p3815_p3)
}
 0x154   :  { %227 = dma.hbm_to_vmem [thread:$0]  %s5105_s16, 256, %s4310_s1, [#allocation27], %s3911_s22, %s3911_s22, %s3912_s3  }
 0x155   :  { %s3929_s6 = smov [#allocation31]   ;;  %s3819_s9 = scalar_lea.hbm %s5107_s18, 16 }
 0x156   :  { %s246_s10 = sshll.u32 %s3929_s6, 4  ;;  %p3820_p4 = scmp.ne.s32.totalorder %s5107_s18, %s3819_s9  ;;  %s247_s10 = int_to_ptr.vmem [resolvable:$true] %s246_s10 }
 0x157   :  { %p3823_p5 = scmp.lt.u32.totalorder %s3819_s9, %s5107_s18 }
 0x159   :  { %p3825_p6 = pnand %p3823_p5, %p3820_p4 }
 0x15b   :  { %3828 = shalt.err (!%p3825_p6)
}
 0x15c   :  { %s3829_s24 = scalar_lea.vmem %s247_s10, 16  ;;  %s3833_s16 = scalar_lea.vmem %s247_s10, 32 }
 0x15d   :  { %p3830_p7 = scmp.ne.s32.totalorder %s247_s10, %s3829_s24  ;;  %p3834_p8 = scmp.lt.s32.totalorder %s247_s10, %s247_s10 }
 0x15e   :  { %p3835_p9 = scmp.lt.s32.totalorder %s3833_s16, %s3829_s24 }
 0x160   :  { %p3836_p10 = por %p3835_p9, %p3834_p8 }
 0x162   :  { %p3837_p11 = pnand %p3836_p10, %p3830_p7 }
 0x164   :  { %3840 = shalt.err (!%p3837_p11)
}
 0x165   :  { %249 = dma.hbm_to_vmem [thread:$0]  %s5107_s18, 16, %s247_s10, [#allocation30]  }
 0x166   :  { %3885 = dma.done.wait [#allocation3], 128  }
 0x167   :  { %3886 = vsyncadd [#allocation3], 4294967168 }
 0x168   :  { %3887 = dma.done.wait [#allocation6], 256  }
 0x169   :  { %3888 = vsyncadd [#allocation6], 4294967040 }
 0x16a   :  { %3889 = dma.done.wait [#allocation9], 1024  }
 0x16b   :  { %3890 = vsyncadd [#allocation9], 4294966272 }
 0x16c   :  { %3891 = dma.done.wait [#allocation12], 576  }
 0x16d   :  { %3892 = vsyncadd [#allocation12], 4294966720 }
 0x16e   :  { %3893 = dma.done.wait [#allocation15], 272  }
 0x16f   :  { %3894 = vsyncadd [#allocation15], 4294967024 }
 0x170   :  { %3895 = dma.done.wait [#allocation18], 272  }
 0x171   :  { %3896 = vsyncadd [#allocation18], 4294967024 }
 0x172   :  { %3897 = dma.done.wait [#allocation21], 384  }
 0x173   :  { %3898 = vsyncadd [#allocation21], 4294966912 }
 0x174   :  { %3899 = dma.done.wait [#allocation24], 272  }
 0x175   :  { %3900 = vsyncadd [#allocation24], 4294967024 }
 0x176   :  { %3901 = dma.done.wait [#allocation27], 512  }
 0x177   :  { %3902 = vsyncadd [#allocation27], 4294966784 }
 0x178   :  { %3903 = dma.done.wait [#allocation30], 272  }
 0x179   :  { %3904 = vsyncadd [#allocation30], 4294967024  ;;  %v3930_v0 = vmov 0.0   ;;  %vm3931_vm0 = vmmov 0   ;;  %v3309_v1 = vld [vmem:[#allocation13] sm:$0xff]   ;;  %v3310_v2 = vld [vmem:[#allocation13 + $0x8] sm:$0xff]  }
 0x17a   :  { %3177 = vmatprep.subr.bf16.mxu1 %v3930_v0  ;;  %2977 = vst [vmem:[#allocation32] sm:$0xff] %v3930_v0  ;;  %2978 = vst [vmem:[#allocation32 + $0x8] sm:$0xff] %v3930_v0  ;;  %3169 = vmatprep.subr.bf16.mxu0 %v3930_v0  ;;  %v3311_v3 = vld [vmem:[#allocation14] sm:$0xff]   ;;  %v3313_v4 = vld [vmem:[#allocation14 + $0x8] sm:$0xff]   ;;  %vm438_vm1 = vcmask 1043456   ;;  %vm369_vm2 = vcmask 261120  }
 0x17b   :  { %2979 = vst [vmem:[#allocation32 + $0x10] sm:$0xff] %v3930_v0  ;;  %2980 = vst [vmem:[#allocation32 + $0x18] sm:$0xff] %v3930_v0  ;;  %3173 = vmatprep.mubr.msk.bf16.mxu0 %vm3931_vm0, %v3930_v0  ;;  %3185 = vmatprep.mubr.msk.bf16.mxu1 %vm3931_vm0, %v3930_v0  ;;  %v308_v5 = vld [vmem:[#allocation5] sm:$0xff]  ;;  %v3314_v6 = vld [vmem:[#allocation13 + $0x18] ss:$0 sps:$4 sm:$0xff]   ;;  %vm434_vm3 = vcmask 457728  }
 0x17c   :  { %2981 = vst [vmem:[#allocation32 + $0x20] sm:$0xff] %v3930_v0  ;;  %3178 = vmatpush3.bf16.msra.mxu1 %v3309_v1  ;;  %3170 = vmatpush3.bf16.msra.mxu0 %v3311_v3  ;;  %v3312_v7 = vld [vmem:[#allocation13 + $0x10] sm:$0xff]   ;;  %v352_v8 = vpack.c.bf16 %v308_v5, %v308_v5  ;;  %v440_v9 = vsel %vm438_vm1, %v3314_v6, 0  ;;  %v343_v10 = vld [vmem:[#allocation2] sm:$0xff]  ;;  %v3077_v17 = vld [vmem:[#allocation16] ss:$0 sm:$0xff] }
 0x17d   :  { %3179 = vmatprep.subr.bf16.mxu1 %v3930_v0  ;;  %3171 = vmatprep.subr.bf16.mxu0 %v3930_v0  ;;  %v344_v11 = vpack.c.bf16 %v343_v10, %v343_v10  ;;  %v309_v24 = vld [vmem:[#allocation7] sm:$0xff]  ;;  %s3932_s18 = smov 32   ;;  %v3316_v36 = vld [vmem:[#allocation20] sm:$0xff]   ;;  %v3318_v38 = vld [vmem:[#allocation20 + $0x8] sm:$0xff]   ;;  %s3933_s27 = smov 16   ;;  %vm612_vm4 = vcmask 130048  }
 0x17e   :  { %v3315_v35 = vld [vmem:[#allocation17] sm:$0xff]   ;;  %v3317_v37 = vld [vmem:[#allocation17 + $0x8] sm:$0xff]   ;;  %v3135_v40 = vld [vmem:[#allocation8 + $0x8] sm:$0xff]   ;;  %s3935_s8 = smov 112   ;;  %vm891_vm5 = vcmask 1041409   ;;  %vm893_vm6 = vcmask 1042434  }
 0x17f   :  { %v4392_v41 = vunpack.c.l.bf16 %v3135_v40  ;;  %v4394_v42 = vunpack.c.h.bf16 %v3135_v40  ;;  %v3137_v43 = vld [vmem:[#allocation8 + $0x18] sm:$0xff]   ;;  %v3104_v48 = vld [vmem:[#allocation8] sm:$0xff]   ;;  %v3136_v53 = vld [vmem:[#allocation8 + $0x10] sm:$0xff]   ;;  %vm895_vm7 = vcmask 1043459   ;;  %vm897_vm8 = vcmask 1044484   ;;  %s3939_s12 = smov 80  }
 0x180   :  { %3180 = vmatpush3.bf16.msra.mxu1 %v3310_v2  ;;  %3172 = vmatpush3.bf16.msra.mxu0 %v3313_v4  ;;  %v4396_v44 = vunpack.c.l.bf16 %v3137_v43  ;;  %v4398_v45 = vunpack.c.h.bf16 %v3137_v43  ;;  %v4406_v51 = vunpack.c.l.bf16 %v3104_v48  ;;  %v4408_v52 = vunpack.c.h.bf16 %v3104_v48  ;;  %s3940_s23 = smov 96   ;;  %s3942_s20 = smov [#allocation33]  }
 0x181   :  { %3181 = vmatprep.subr.bf16.mxu1 %v3930_v0  ;;  %3189 = vmatprep.subr.bf16.mxu0 %v3930_v0  ;;  %v3287_v46 = vpack.i.bf16 %v4394_v42, %v4392_v41  ;;  %v4415_v56 = vunpack.c.l.bf16 %v3136_v53  ;;  %v4417_v57 = vunpack.c.h.bf16 %v3136_v53  ;;  %v606_v3 = vmul.f32 %v4392_v41, %v4392_v41  ;;  %s3044_s28 = sshll.u32 %s3942_s20, 4  ;;  %s3045_s28 = int_to_ptr.vmem [resolvable:$true] %s3044_s28 }
 0x182   :  { %v3297_v47 = vpack.i.bf16 %v4398_v45, %v4396_v44  ;;  %v3282_v55 = vpack.i.bf16 %v4408_v52, %v4406_v51  ;;  %v605_v59 = vmul.f32 %v4408_v52, %v4408_v52  ;;  %v604_v62 = vmul.f32 %v4406_v51, %v4406_v51  ;;  %s3841_s5 = scalar_lea.vmem %s3045_s28, 512  ;;  %p3846_p13 = scmp.lt.s32.totalorder %s3045_s28, %s3045_s28 }
 0x183   :  { %3174 = vmatmul.mubr.msk.bf16.vlgmr.msra.gmra.mrb[0].mxu0 %vm369_vm2, %v352_v8  ;;  %v3292_v58 = vpack.i.bf16 %v4417_v57, %v4415_v56  ;;  %v608_v61 = vmul.f32 %v4415_v56, %v4415_v56  ;;  %v610_v1 = vmul.f32 %v4396_v44, %v4396_v44  ;;  %v619_v5 = vsel %vm612_vm4, %v606_v3, 0.0  ;;  %p3842_p12 = scmp.ne.s32.totalorder %s3045_s28, %s3841_s5  ;;  %p3847_p0 = scmp.lt.s32.totalorder %s3841_s5, %s3841_s5 }
 0x184   :  { %3182 = vmatpush3.bf16.msra.mxu1 %v3312_v7  ;;  %3193 = vmatprep.mubr.msk.bf16.mxu0 %vm3931_vm0, %v3930_v0  ;;  %v616_v60 = vsel %vm612_vm4, %v605_v59, 0.0  ;;  %v613_v2 = vsel %vm612_vm4, %v604_v62, 0.0  ;;  %v607_v6 = vmul.f32 %v4394_v42, %v4394_v42  ;;  %v609_v8 = vmul.f32 %v4417_v57, %v4417_v57 }
 0x185   :  { %3183 = vmatprep.subr.bf16.mxu1 %v3930_v0  ;;  %3190 = vmatpush3.bf16.msra.mxu0 %v3315_v35  ;;  %v625_v63 = vsel %vm612_vm4, %v608_v61, 0.0  ;;  %v631_v4 = vsel %vm612_vm4, %v610_v1, 0.0  ;;  %v611_v10 = vmul.f32 %v4398_v45, %v4398_v45  ;;  %vm899_vm9 = vcmask 1045509   ;;  %p3848_p1 = por %p3847_p0, %p3846_p13 }
 0x186   :  { %3191 = vmatprep.subr.bf16.mxu0 %v3930_v0  ;;  %v622_v7 = vsel %vm612_vm4, %v607_v6, 0.0  ;;  %vm901_vm10 = vcmask 1046534   ;;  %vm903_vm11 = vcmask 1047559   ;;  %vm1104_vm12 = vcmask 64512  }
 0x187   :  { %vm3020_vm13 = vcmask 125952   ;;  %p3849_p2 = pnand %p3848_p1, %p3842_p12 }
 0x188   :  { %3184 = vmatpush3.bf16.msra.mxu1 %v440_v9  ;;  %v628_v9 = vsel %vm612_vm4, %v609_v8, 0.0 }
 0x189   :  { %3203 = vmatprep.subr.bf16.mxu1 %v3930_v0  ;;  %3192 = vmatpush3.bf16.msra.mxu0 %v3317_v37 }
 0x18a   :  { %3197 = vmatprep.subr.bf16.mxu0 %v3930_v0 }
 0x18b   :  { %3186 = vmatmul.mubr.msk.bf16.vlgmr.msra.gmra.mrb[0].mxu1 %vm434_vm3, %v344_v11  ;;  %v634_v11 = vsel %vm612_vm4, %v611_v10, 0.0 }
 0x18c   :  { %3207 = vmatprep.mubr.msk.bf16.mxu1 %vm3931_vm0, %v3930_v0  ;;  %3204 = vmatpush3.bf16.msra.mxu1 %v3316_v36 }
 0x18d   :  { %3205 = vmatprep.subr.bf16.mxu1 %v3930_v0 }
 0x190   :  { %3206 = vmatpush3.bf16.msra.mxu1 %v3318_v38 }
 0x191   :  { %3219 = vmatprep.subr.bf16.mxu1 %v3930_v0 }
 0x256   :  { %v407_v12 = vpop.f32.mrb[0].mxu0 }
 0x257   :  { %v3175_v13 = vpop.f32.mrb[1].mxu0 }
 0x258   :  { %v410_v14 = vpop.f32.mrb[2].mxu0  ;;  %v3934_v13 = vmov 1966171168  }
 0x259   :  { %v3176_v15 = vpop.f32.mrb[3].mxu0  ;;  %v666_v14 = vunpack.c.l.s4 %v3934_v13 }
 0x25a   :  { %v668_v15 = vlaneseq }
 0x25e   :  { %v476_v16 = vpop.f32.mrb[0].mxu1 }
 0x25f   :  { %v477_v18 = vadd.f32 %v476_v16, %v407_v12  ;;  %v3187_v19 = vpop.f32.mrb[1].mxu1  ;;  %v667_v16 = vunpack.c.0.s8 %v666_v14 }
 0x260   :  { %v479_v20 = vpop.f32.mrb[2].mxu1 }
 0x261   :  { %v489_v21 = vadd.f32 %v3077_v17, %v477_v18  ;;  %v3188_v22 = vpop.f32.mrb[3].mxu1  ;;  %v4452_v17 = vshrl.u32 %v668_v15, 7  ;;  %v3079_v18 = vld [vmem:[#allocation19] ss:$0 sm:$0xff] }
 0x263   :  { %3328 = vtanh.f32 %v489_v21  ;;  %v3078_v25 = vmul.f32 -1.442695, %v489_v21  ;;  %v4455_v19 = vsub.s32 %v667_v16, %v4452_v17 }
 0x265   :  { %3330 = vpow2.f32 %v3078_v25 }
 0x26d   :  { %v3329_v23 = vpop.eup %3328 }
 0x26e   :  { %503 = vrot.lane.b32.xlu0 %v3329_v23, %s3911_s22 }
 0x26f   :  { %v3331_v26 = vpop.eup %3330 }
 0x270   :  { %v493_v27 = vadd.f32 1.0, %v3331_v26 }
 0x272   :  { %498 = vrot.lane.b32.xlu0 %v309_v24, %s3932_s18  ;;  %3332 = vrcp.f32 %v493_v27 }
 0x27c   :  { %v3333_v28 = vpop.eup %3332 }
 0x2e0   :  { %v504_v29 = vpop.permute.xlu0 %503 }
 0x2e1   :  { %v506_v30 = vmul.f32 %v3333_v28, %v504_v29 }
 0x2e3   :  { %508 = vrot.lane.b32.xlu1 %v506_v30, %s3932_s18  ;;  %v4468_v30 = vsub.s32 0, %v4452_v17 }
 0x2e4   :  { %v499_v31 = vpop.permute.xlu0 %498 }
 0x2e5   :  { %v501_v32 = vmul.f32 %v3333_v28, %v499_v31 }
 0x355   :  { %v509_v33 = vpop.permute.xlu1 %508 }
 0x356   :  { %v4384_v34 = vadd.f32 %v509_v33, %v501_v32 }
 0x358   :  { %3334 = vtanh.f32 %v4384_v34 }
 0x362   :  { %v3335_v39 = vpop.eup %3334 }
 0x363   :  { %514 = vrot.lane.b32.xlu1 %v3335_v39, %s3911_s22 }
 0x367   :  { %3288 = vrot.lane.b32.xlu1 %v3287_v46, %s3933_s27 }
 0x36b   :  { %3298 = vrot.lane.b32.xlu1 %v3297_v47, %s3933_s27 }
 0x38f   :  { %617 = vadd.xlane.f32.xlu1 %v616_v60 }
 0x393   :  { %626 = vadd.xlane.f32.xlu1 %v625_v63 }
 0x397   :  { %632 = vadd.xlane.f32.xlu1 %v631_v4 }
 0x3d5   :  { %v515_v49 = vpop.permute.xlu1 %514 }
 0x3d6   :  { %v4404_v50 = vmul.f32 %v3333_v28, %v515_v49 }
 0x3d8   :  { %v518_v54 = vpack.c.bf16 %v4404_v50, %v4404_v50 }
 0x3d9   :  { %v3289_v47 = vpop.permute.xlu1 %3288 }
 0x3da   :  { %531 = vrot.lane.b32.xlu0 %v518_v54, %s3932_s18  ;;  %v3291_v48 = vunpack.i.h.bf16 %v3289_v47 }
 0x3dd   :  { %v3299_v8 = vpop.permute.xlu1 %3298 }
 0x3de   :  { %3283 = vrot.lane.b32.xlu0 %v3282_v55, %s3933_s27  ;;  %v3290_v55 = vunpack.i.l.bf16 %v3289_v47 }
 0x3e2   :  { %3293 = vrot.lane.b32.xlu0 %v3292_v58, %s3933_s27 }
 0x401   :  { %614 = vadd.xlane.f32.xlu0 %v613_v2 }
 0x405   :  { %620 = vadd.xlane.f32.xlu0 %v619_v5 }
 0x409   :  { %623 = vadd.xlane.f32.xlu0 %v622_v7 }
 0x40d   :  { %629 = vadd.xlane.f32.xlu0 %v628_v9  ;;  %v3301_v9 = vunpack.i.h.bf16 %v3299_v8 }
 0x411   :  { %635 = vadd.xlane.f32.xlu0 %v634_v11 }
 0x41c   :  { %v618_v14 = vpop.xlane.xlu1 %617 }
 0x420   :  { %v627_v16 = vpop.xlane.xlu1 %626 }
 0x44c   :  { %v532_v12 = vpop.permute.xlu0 %531 }
 0x44d   :  { %3194 = vmatmul.mubr.msk.bf16.vlgmr.msra.gmra.mrb[4].mxu0 %vm369_vm2, %v532_v12  ;;  %3208 = vmatmul.mubr.msk.bf16.vlgmr.msra.gmra.mrb[4].mxu1 %vm369_vm2, %v532_v12 }
 0x44e   :  { %3199 = vmatprep.mubr.msk.bf16.mxu0 %vm3931_vm0, %v3930_v0  ;;  %3223 = vmatprep.mubr.msk.bf16.mxu1 %vm3931_vm0, %v3930_v0 }
 0x450   :  { %v3284_v32 = vpop.permute.xlu0 %3283 }
 0x451   :  { %v3285_v33 = vunpack.i.l.bf16 %v3284_v32  ;;  %v3286_v38 = vunpack.i.h.bf16 %v3284_v32 }
 0x454   :  { %v3294_v63 = vpop.permute.xlu0 %3293 }
 0x455   :  { %v3296_v1 = vunpack.i.h.bf16 %v3294_v63  ;;  %v3295_v5 = vunpack.i.l.bf16 %v3294_v63 }
 0x520   :  { %v582_v20 = vpop.f32.mrb[4].mxu0  ;;  %v4457_v21 = vpop.f32.mrb[4].mxu1 }
 0x521   :  { %v4459_v22 = vadd.f32 %v3079_v18, %v582_v20  ;;  %v3195_v23 = vpop.f32.mrb[5].mxu0  ;;  %v3209_v24 = vpop.f32.mrb[5].mxu1 }
 0x522   :  { %v585_v25 = vpop.f32.mrb[6].mxu0  ;;  %v2388_v0 = vpop.f32.mrb[6].mxu1 }
 0x523   :  { %v3196_v26 = vpop.f32.mrb[7].mxu0  ;;  %v3210_v27 = vpop.f32.mrb[7].mxu1  ;;  %v4463_v28 = vmul.f32 %v4459_v22, %v4459_v22  ;;  %v671_v29 = vrot.slane %v4459_v22, %v4455_v19  ;;  %v664_v31 = vcombine.high %v4459_v22, %v4459_v22 }
 0x524   :  { %v633_v18 = vpop.xlane.xlu1 %632  ;;  %v3300_v27 = vunpack.i.l.bf16 %v3299_v8  ;;  %v858_v8 = vand.u32 127, %v668_v15 }
 0x525   :  { %655 = vrot.lane.b32.xlu1 %v4463_v28, %s3935_s8  ;;  %v687_v35 = vrot.slane %v671_v29, %v4455_v19  ;;  %v679_v36 = vcombine.high %v671_v29, %v671_v29  ;;  %v678_v37 = vrot.slane %v664_v31, %v4455_v19 }
 0x527   :  { %v4477_v39 = vrot.slane %v687_v35, %v4468_v30  ;;  %v701_v40 = vrot.slane %v679_v36, %v4455_v19  ;;  %v709_v43 = vcombine.high %v687_v35, %v687_v35  ;;  %v680_v46 = vcombine.high %v678_v37, %v678_v37 }
 0x528   :  { %v694_v62 = vrot.slane %v678_v37, %v4455_v19 }
 0x529   :  { %v785_v49 = vmul.f32 %v3285_v33, %v4477_v39  ;;  %v4482_v53 = vrot.slane %v701_v40, %v4468_v30  ;;  %v711_v54 = vcombine.high %v701_v40, %v701_v40  ;;  %v708_v58 = vrot.slane %v680_v46, %v4455_v19  ;;  %v615_v33 = vpop.xlane.xlu0 %614 }
 0x52a   :  { %v4491_v61 = vrot.slane %v709_v43, %v4468_v30  ;;  %v4502_v7 = vrot.slane %v694_v62, %v4468_v30  ;;  %v710_v0 = vcombine.high %v694_v62, %v694_v62  ;;  %v3936_v46 = vmov 65  }
 0x52b   :  { %801 = vrot.lane.b32.xlu0 %v785_v49, %s3935_s8  ;;  %v786_v59 = vmul.f32 %v3286_v38, %v4482_v53  ;;  %v4488_v60 = vrot.slane %v711_v54, %v4468_v30  ;;  %v4497_v3 = vrot.slane %v708_v58, %v4468_v30  ;;  %v712_v4 = vcombine.high %v708_v58, %v708_v58 }
 0x52c   :  { %v787_v6 = vmul.f32 %v3290_v55, %v4491_v61  ;;  %v789_v12 = vmul.f32 %v3295_v5, %v4502_v7  ;;  %v4518_v31 = vrot.slane %v710_v0, %v4468_v30  ;;  %3302 = vset.pattern.permute.xlu0 %v3936_v46  ;;  %v637_v63 = vadd.f32 1e-06, %v615_v33 }
 0x52d   :  { %803 = vrot.lane.b32.xlu1 %v786_v59, %s3935_s8  ;;  %v788_v2 = vmul.f32 %v3291_v48, %v4488_v60  ;;  %v790_v10 = vmul.f32 %v3296_v1, %v4497_v3  ;;  %v4507_v11 = vrot.slane %v712_v4, %v4468_v30  ;;  %v621_v37 = vpop.xlane.xlu0 %620  ;;  %v638_v1 = vadd.f32 1e-06, %v618_v14 }
 0x52e   :  { %v791_v36 = vmul.f32 %v3300_v27, %v4518_v31  ;;  %3336 = vrsqrt.f32 %v637_v63  ;;  %v639_v4 = vadd.f32 1e-06, %v621_v37 }
 0x52f   :  { %807 = vrot.lane.b32.xlu0 %v788_v2, %s3935_s8  ;;  %v792_v13 = vmul.f32 %v3301_v9, %v4507_v11  ;;  %v595_v2 = vand.u32 2147483647, %v4459_v22  ;;  %3338 = vrsqrt.f32 %v638_v1  ;;  %v641_v9 = vadd.f32 1e-06, %v627_v16 }
 0x530   :  { %3340 = vrsqrt.f32 %v639_v4 }
 0x531   :  { %805 = vrot.lane.b32.xlu1 %v787_v6, %s3935_s8  ;;  %v624_v38 = vpop.xlane.xlu0 %623  ;;  %v596_v6 = vsub.f32 0.0, %v595_v2 }
 0x532   :  { %v640_v5 = vadd.f32 1e-06, %v624_v38 }
 0x533   :  { %811 = vrot.lane.b32.xlu0 %v790_v10, %s3935_s8  ;;  %v597_v10 = vmul.f32 1.442695, %v596_v6 }
 0x534   :  { %3342 = vrsqrt.f32 %v640_v5 }
 0x535   :  { %809 = vrot.lane.b32.xlu1 %v789_v12, %s3935_s8  ;;  %v630_v40 = vpop.xlane.xlu0 %629  ;;  %3344 = vrsqrt.f32 %v641_v9 }
 0x536   :  { %v642_v12 = vadd.f32 1e-06, %v630_v40  ;;  %3346 = vpow2.f32 %v597_v10 }
 0x537   :  { %815 = vrot.lane.b32.xlu0 %v792_v13, %s3935_s8 }
 0x538   :  { %v3337_v13 = vpop.eup %3336  ;;  %3348 = vrsqrt.f32 %v642_v12  ;;  %v4554_v12 = vsub.s32 2, %v4452_v17 }
 0x539   :  { %v636_v43 = vpop.xlane.xlu0 %635  ;;  %v3339_v14 = vpop.eup %3338 }
 0x53a   :  { %v644_v15 = vadd.f32 1e-06, %v636_v43 }
 0x597   :  { %v656_v20 = vpop.permute.xlu1 %655 }
 0x598   :  { %v658_v23 = vsel %vm612_vm4, %v656_v20, 0.0  ;;  %v4530_v20 = vsub.s32 %v858_v8, %v4452_v17  ;;  %v4550_v8 = vsub.s32 1, %v4452_v17 }
 0x599   :  { %659 = vadd.xlane.f32.xlu1 %v658_v23  ;;  %v643_v23 = vadd.f32 1e-06, %v633_v18 }
 0x59a   :  { %v866_v0 = vrot.slane %v3339_v14, %v4530_v20 }
 0x59b   :  { %3350 = vrsqrt.f32 %v643_v23 }
 0x59c   :  { %3352 = vrsqrt.f32 %v644_v15  ;;  %v4566_v15 = vsub.s32 4, %v4452_v17 }
 0x59d   :  { %v802_v47 = vpop.permute.xlu0 %801 }
 0x59e   :  { %v825_v49 = vsel %vm612_vm4, %v802_v47, 0.0 }
 0x59f   :  { %v804_v24 = vpop.permute.xlu1 %803 }
 0x5a0   :  { %v828_v25 = vsel %vm612_vm4, %v804_v24, 0.0  ;;  %v3341_v24 = vpop.eup %3340 }
 0x5a1   :  { %829 = vadd.xlane.f32.xlu0 %v828_v25  ;;  %v808_v48 = vpop.permute.xlu0 %807  ;;  %v862_v25 = vrot.slane %v3337_v13, %v4530_v20  ;;  %v3343_v16 = vpop.eup %3342  ;;  %v594_v13 = vmax.f32 %v4459_v22, 0.0 }
 0x5a2   :  { %v834_v55 = vsel %vm612_vm4, %v808_v48, 0.0 }
 0x5a3   :  { %v806_v26 = vpop.permute.xlu1 %805  ;;  %v892_v27 = vsel %vm891_vm5, %v866_v0, %v862_v25 }
 0x5a4   :  { %v831_v29 = vsel %vm612_vm4, %v806_v26, 0.0  ;;  %v870_v26 = vrot.slane %v3341_v24, %v4530_v20  ;;  %v4559_v24 = vsub.s32 3, %v4452_v17 }
 0x5a5   :  { %832 = vadd.xlane.f32.xlu0 %v831_v29  ;;  %v812_v54 = vpop.permute.xlu0 %811  ;;  %v3345_v29 = vpop.eup %3344 }
 0x5a6   :  { %v840_v58 = vsel %vm612_vm4, %v812_v54, 0.0  ;;  %v3347_v18 = vpop.eup %3346  ;;  %v894_v33 = vsel %vm893_vm6, %v870_v26, %v892_v27  ;;  %v4570_v26 = vsub.s32 5, %v4452_v17  ;;  %v3937_v27 = vmov 0  }
 0x5a7   :  { %v810_v32 = vpop.permute.xlu1 %809  ;;  %v599_v43 = vadd.f32 1.0, %v3347_v18  ;;  %3304 = vset.pattern.permute.xlu1 %v3937_v27 }
 0x5a8   :  { %v837_v35 = vsel %vm612_vm4, %v810_v32, 0.0  ;;  %v874_v32 = vrot.slane %v3343_v16, %v4530_v20 }
 0x5a9   :  { %838 = vadd.xlane.f32.xlu0 %v837_v35  ;;  %v816_v59 = vpop.permute.xlu0 %815  ;;  %v3349_v35 = vpop.eup %3348 }
 0x5aa   :  { %813 = vrot.lane.b32.xlu1 %v791_v36, %s3935_s8  ;;  %v846_v62 = vsel %vm612_vm4, %v816_v59, 0.0  ;;  %v878_v36 = vrot.slane %v3345_v29, %v4530_v20  ;;  %v896_v38 = vsel %vm895_vm7, %v874_v32, %v894_v33  ;;  %v3351_v46 = vpop.eup %3350  ;;  %v882_v47 = vrot.slane %v3349_v35, %v4530_v20 }
 0x5ab   :  { %v4576_v32 = vsub.s32 6, %v4452_v17  ;;  %v4580_v33 = vsub.s32 7, %v4452_v17 }
 0x5ac   :  { %v898_v48 = vsel %vm897_vm8, %v878_v36, %v896_v38 }
 0x5ad   :  { %v900_v59 = vsel %vm899_vm9, %v882_v47, %v898_v48 }
 0x5ce   :  { %826 = vadd.xlane.f32.xlu1 %v825_v49 }
 0x5d2   :  { %835 = vadd.xlane.f32.xlu1 %v834_v55  ;;  %v3353_v55 = vpop.eup %3352 }
 0x5d6   :  { %841 = vadd.xlane.f32.xlu1 %v840_v58  ;;  %v886_v58 = vrot.slane %v3351_v46, %v4530_v20 }
 0x5d8   :  { %v902_v63 = vsel %vm901_vm10, %v886_v58, %v900_v59 }
 0x5da   :  { %847 = vadd.xlane.f32.xlu1 %v846_v62  ;;  %v890_v62 = vrot.slane %v3353_v55, %v4530_v20 }
 0x5dc   :  { %v904_v2 = vsel %vm903_vm11, %v890_v62, %v902_v63 }
 0x626   :  { %v660_v37 = vpop.xlane.xlu1 %659 }
 0x627   :  { %v661_v40 = vadd.f32 1e-06, %v660_v37 }
 0x629   :  { %3354 = vrsqrt.f32 %v661_v40 }
 0x62a   :  { %v814_v49 = vpop.permute.xlu1 %813  ;;  %3356 = vlog2.f32 %v599_v43 }
 0x62b   :  { %v843_v54 = vsel %vm612_vm4, %v814_v49, 0.0 }
 0x62c   :  { %844 = vadd.xlane.f32.xlu0 %v843_v54 }
 0x62e   :  { %v830_v46 = vpop.xlane.xlu0 %829 }
 0x632   :  { %v833_v49 = vpop.xlane.xlu0 %832 }
 0x633   :  { %v3355_v1 = vpop.eup %3354 }
 0x634   :  { %v906_v4 = vmul.f32 %v3355_v1, %v904_v2  ;;  %v3357_v5 = vpop.eup %3356 }
 0x635   :  { %v601_v9 = vmul.f32 0.6931472, %v3357_v5 }
 0x636   :  { %v911_v6 = vrot.slane %v906_v4, %v4468_v30  ;;  %v918_v10 = vrot.slane %v906_v4, %v4550_v8  ;;  %v925_v23 = vrot.slane %v906_v4, %v4554_v12  ;;  %v932_v0 = vrot.slane %v906_v4, %v4559_v24  ;;  %v839_v55 = vpop.xlane.xlu0 %838 }
 0x637   :  { %v602_v14 = vadd.f32 %v601_v9, %v594_v13  ;;  %v939_v16 = vrot.slane %v906_v4, %v4566_v15  ;;  %v946_v29 = vrot.slane %v906_v4, %v4570_v26  ;;  %v953_v18 = vrot.slane %v906_v4, %v4576_v32 }
 0x638   :  { %913 = vbcast.lane.b32.xlu1 %v911_v6, 256  ;;  %v960_v35 = vrot.slane %v906_v4, %v4580_v33 }
 0x639   :  { %v4561_v25 = vadd.f32 1.0, %v602_v14 }
 0x63c   :  { %920 = vbcast.lane.b32.xlu1 %v918_v10, 256 }
 0x640   :  { %927 = vbcast.lane.b32.xlu1 %v925_v23, 256 }
 0x642   :  { %982 = vperm.xlu0 %3302, %v4561_v25  }
 0x644   :  { %934 = vbcast.lane.b32.xlu1 %v932_v0, 256 }
 0x646   :  { %3303 = vset.pattern.permute.xlu0 %v3937_v27 }
 0x648   :  { %941 = vbcast.lane.b32.xlu1 %v939_v16, 256 }
 0x64c   :  { %948 = vbcast.lane.b32.xlu1 %v946_v29, 256 }
 0x650   :  { %955 = vbcast.lane.b32.xlu1 %v953_v18, 256 }
 0x654   :  { %962 = vbcast.lane.b32.xlu1 %v960_v35, 256 }
 0x65b   :  { %v827_v36 = vpop.xlane.xlu1 %826 }
 0x65f   :  { %v836_v37 = vpop.xlane.xlu1 %835 }
 0x663   :  { %v842_v38 = vpop.xlane.xlu1 %841 }
 0x667   :  { %v848_v40 = vpop.xlane.xlu1 %847 }
 0x6aa   :  { %v914_v43 = vpop.permute.xlu1 %913 }
 0x6ab   :  { %v972_v63 = vmul.f32 %v914_v43, %v827_v36 }
 0x6ae   :  { %v921_v47 = vpop.permute.xlu1 %920 }
 0x6af   :  { %v973_v1 = vmul.f32 %v921_v47, %v830_v46 }
 0x6b2   :  { %v928_v48 = vpop.permute.xlu1 %927 }
 0x6b3   :  { %v974_v14 = vmul.f32 %v928_v48, %v833_v49 }
 0x6b6   :  { %v935_v54 = vpop.permute.xlu1 %934 }
 0x6b7   :  { %v975_v23 = vmul.f32 %v935_v54, %v836_v37 }
 0x6b9   :  { %v845_v59 = vpop.xlane.xlu0 %844 }
 0x6ba   :  { %v942_v58 = vpop.permute.xlu1 %941 }
 0x6bb   :  { %v976_v36 = vmul.f32 %v942_v58, %v839_v55 }
 0x6be   :  { %v949_v62 = vpop.permute.xlu1 %948 }
 0x6bf   :  { %v977_v43 = vmul.f32 %v949_v62, %v842_v38 }
 0x6c1   :  { %v983_v17 = vpop.permute.xlu0 %982 }
 0x6c2   :  { %v991_v2 = vrot.slane %v983_v17, %v4550_v8  ;;  %v987_v4 = vrot.slane %v983_v17, %v4468_v30  ;;  %v956_v5 = vpop.permute.xlu1 %955  ;;  %v995_v10 = vrot.slane %v983_v17, %v4554_v12  ;;  %v999_v13 = vrot.slane %v983_v17, %v4559_v24 }
 0x6c3   :  { %v1003_v29 = vrot.slane %v983_v17, %v4566_v15  ;;  %v1007_v18 = vrot.slane %v983_v17, %v4570_v26  ;;  %v1011_v46 = vrot.slane %v983_v17, %v4576_v32  ;;  %v978_v47 = vmul.f32 %v956_v5, %v845_v59 }
 0x6c4   :  { %v1025_v6 = vmul.f32 %v991_v2, %v973_v1  ;;  %v1024_v9 = vmul.f32 %v987_v4, %v972_v63  ;;  %v1026_v0 = vmul.f32 %v995_v10, %v974_v14  ;;  %v1027_v16 = vmul.f32 %v999_v13, %v975_v23 }
 0x6c5   :  { %v1028_v1 = vmul.f32 %v1003_v29, %v976_v36  ;;  %v1029_v48 = vmul.f32 %v1007_v18, %v977_v43  ;;  %v1015_v37 = vrot.slane %v983_v17, %v4580_v33  ;;  %v1030_v49 = vmul.f32 %v1011_v46, %v978_v47 }
 0x6c6   :  { %1044 = vperm.xlu1 %3304, %v1025_v6   ;;  %1041 = vperm.xlu0 %3303, %v1024_v9   ;;  %v963_v35 = vpop.permute.xlu1 %962 }
 0x6c7   :  { %v979_v63 = vmul.f32 %v963_v35, %v848_v40 }
 0x6c9   :  { %v4591_v54 = vmul.f32 %v1015_v37, %v979_v63 }
 0x6ca   :  { %1047 = vperm.xlu1 %3304, %v1026_v0   ;;  %1050 = vperm.xlu0 %3303, %v1027_v16  }
 0x6ce   :  { %1053 = vperm.xlu1 %3304, %v1028_v1   ;;  %1056 = vperm.xlu0 %3303, %v1029_v48  }
 0x6d2   :  { %1059 = vperm.xlu1 %3304, %v1030_v49   ;;  %1062 = vperm.xlu0 %3303, %v4591_v54  }
 0x745   :  { %v1045_v55 = vpop.permute.xlu1 %1044  ;;  %v1042_v38 = vpop.permute.xlu0 %1041 }
 0x746   :  { %v1071_v58 = vrot.slane %v1045_v55, %v4530_v20  ;;  %v1067_v62 = vrot.slane %v1042_v38, %v4530_v20 }
 0x748   :  { %v1096_v17 = vsel %vm891_vm5, %v1071_v58, %v1067_v62 }
 0x749   :  { %v1048_v59 = vpop.permute.xlu1 %1047  ;;  %v1051_v40 = vpop.permute.xlu0 %1050 }
 0x74a   :  { %v1075_v2 = vrot.slane %v1048_v59, %v4530_v20  ;;  %v1079_v4 = vrot.slane %v1051_v40, %v4530_v20 }
 0x74c   :  { %v1097_v5 = vsel %vm893_vm6, %v1075_v2, %v1096_v17 }
 0x74d   :  { %v1054_v10 = vpop.permute.xlu1 %1053  ;;  %v1057_v13 = vpop.permute.xlu0 %1056  ;;  %v1098_v23 = vsel %vm895_vm7, %v1079_v4, %v1097_v5 }
 0x74e   :  { %v1083_v14 = vrot.slane %v1054_v10, %v4530_v20  ;;  %v1087_v29 = vrot.slane %v1057_v13, %v4530_v20 }
 0x750   :  { %v1099_v18 = vsel %vm897_vm8, %v1083_v14, %v1098_v23 }
 0x751   :  { %v1060_v35 = vpop.permute.xlu1 %1059  ;;  %v1063_v36 = vpop.permute.xlu0 %1062  ;;  %v1100_v47 = vsel %vm899_vm9, %v1087_v29, %v1099_v18 }
 0x752   :  { %v1091_v43 = vrot.slane %v1060_v35, %v4530_v20  ;;  %v1095_v46 = vrot.slane %v1063_v36, %v4530_v20 }
 0x754   :  { %v1101_v63 = vsel %vm901_vm10, %v1091_v43, %v1100_v47 }
 0x755   :  { %v1102_v37 = vsel %vm903_vm11, %v1095_v46, %v1101_v63 }
 0x756   :  { %v1105_v55 = vsel %vm1104_vm12, %v1102_v37, -inf }
 0x757   :  { %1106 = vmax.xlane.f32.xlu1 %v1105_v55 }
 0x7e4   :  { %v1107_v38 = vpop.xlane.xlu1 %1106 }
 0x7e5   :  { %v1112_v58 = vrot.slane %v1107_v38, %v4468_v30  ;;  %v1116_v62 = vrot.slane %v1107_v38, %v4550_v8  ;;  %v1120_v59 = vrot.slane %v1107_v38, %v4554_v12  ;;  %v1124_v4 = vrot.slane %v1107_v38, %v4559_v24 }
 0x7e6   :  { %v1128_v13 = vrot.slane %v1107_v38, %v4566_v15  ;;  %v1132_v29 = vrot.slane %v1107_v38, %v4570_v26 }
 0x7e7   :  { %v1149_v40 = vsub.f32 %v1024_v9, %v1112_v58  ;;  %v1150_v2 = vsub.f32 %v1025_v6, %v1116_v62  ;;  %v1151_v10 = vsub.f32 %v1026_v0, %v1120_v59  ;;  %v1152_v23 = vsub.f32 %v1027_v16, %v1124_v4 }
 0x7e8   :  { %v1153_v35 = vsub.f32 %v1028_v1, %v1128_v13  ;;  %v1136_v6 = vrot.slane %v1107_v38, %v4576_v32  ;;  %v1154_v43 = vsub.f32 %v1029_v48, %v1132_v29  ;;  %v1140_v0 = vrot.slane %v1107_v38, %v4580_v33 }
 0x7e9   :  { %v1157_v17 = vmul.f32 1.442695, %v1149_v40  ;;  %v1159_v5 = vmul.f32 1.442695, %v1150_v2  ;;  %v1161_v14 = vmul.f32 1.442695, %v1151_v10 }
 0x7ea   :  { %v1163_v18 = vmul.f32 1.442695, %v1152_v23  ;;  %v1165_v9 = vmul.f32 1.442695, %v1153_v35  ;;  %v1167_v47 = vmul.f32 1.442695, %v1154_v43  ;;  %v1155_v63 = vsub.f32 %v1030_v49, %v1136_v6 }
 0x7eb   :  { %3358 = vpow2.f32 %v1157_v17  ;;  %v1156_v1 = vsub.f32 %v4591_v54, %v1140_v0 }
 0x7ec   :  { %3360 = vpow2.f32 %v1159_v5  ;;  %v1169_v37 = vmul.f32 1.442695, %v1155_v63 }
 0x7ed   :  { %3362 = vpow2.f32 %v1161_v14  ;;  %v1171_v58 = vmul.f32 1.442695, %v1156_v1 }
 0x7ee   :  { %3364 = vpow2.f32 %v1163_v18 }
 0x7ef   :  { %3366 = vpow2.f32 %v1165_v9 }
 0x7f0   :  { %3368 = vpow2.f32 %v1167_v47 }
 0x7f1   :  { %3370 = vpow2.f32 %v1169_v37 }
 0x7f2   :  { %3372 = vpow2.f32 %v1171_v58 }
 0x7f5   :  { %v3359_v36 = vpop.eup %3358 }
 0x7f6   :  { %1182 = vperm.xlu0 %3303, %v3359_v36   ;;  %v3361_v46 = vpop.eup %3360 }
 0x7f7   :  { %v3363_v16 = vpop.eup %3362 }
 0x7f8   :  { %v3365_v55 = vpop.eup %3364 }
 0x7f9   :  { %v3367_v62 = vpop.eup %3366 }
 0x7fa   :  { %1185 = vperm.xlu0 %3303, %v3361_v46   ;;  %v3369_v48 = vpop.eup %3368 }
 0x7fb   :  { %v3371_v59 = vpop.eup %3370 }
 0x7fc   :  { %v3373_v38 = vpop.eup %3372 }
 0x7fe   :  { %1188 = vperm.xlu0 %3303, %v3363_v16  }
 0x802   :  { %1191 = vperm.xlu0 %3303, %v3365_v55  }
 0x806   :  { %1194 = vperm.xlu0 %3303, %v3367_v62  }
 0x80a   :  { %1197 = vperm.xlu0 %3303, %v3369_v48  }
 0x80e   :  { %1200 = vperm.xlu0 %3303, %v3371_v59  }
 0x812   :  { %1203 = vperm.xlu0 %3303, %v3373_v38  }
 0x875   :  { %v1183_v49 = vpop.permute.xlu0 %1182 }
 0x876   :  { %v1208_v13 = vrot.slane %v1183_v49, %v4530_v20 }
 0x879   :  { %v1186_v40 = vpop.permute.xlu0 %1185 }
 0x87a   :  { %v1212_v54 = vrot.slane %v1186_v40, %v4530_v20 }
 0x87c   :  { %v1237_v18 = vsel %vm891_vm5, %v1212_v54, %v1208_v13 }
 0x87d   :  { %v1189_v2 = vpop.permute.xlu0 %1188 }
 0x87e   :  { %v1216_v10 = vrot.slane %v1189_v2, %v4530_v20 }
 0x880   :  { %v1238_v6 = vsel %vm893_vm6, %v1216_v10, %v1237_v18 }
 0x881   :  { %v1192_v17 = vpop.permute.xlu0 %1191 }
 0x882   :  { %v1220_v14 = vrot.slane %v1192_v17, %v4530_v20 }
 0x884   :  { %v1239_v43 = vsel %vm895_vm7, %v1220_v14, %v1238_v6 }
 0x885   :  { %v1195_v4 = vpop.permute.xlu0 %1194 }
 0x886   :  { %v1224_v23 = vrot.slane %v1195_v4, %v4530_v20 }
 0x888   :  { %v1240_v0 = vsel %vm897_vm8, %v1224_v23, %v1239_v43 }
 0x889   :  { %v1198_v5 = vpop.permute.xlu0 %1197 }
 0x88a   :  { %v1228_v35 = vrot.slane %v1198_v5, %v4530_v20  ;;  %v3083_v5 = vmul.f32 -1.442695, %v4459_v22 }
 0x88c   :  { %v1241_v63 = vsel %vm899_vm9, %v1228_v35, %v1240_v0 }
 0x88d   :  { %v1201_v29 = vpop.permute.xlu0 %1200 }
 0x88e   :  { %v1232_v9 = vrot.slane %v1201_v29, %v4530_v20 }
 0x890   :  { %v1242_v1 = vsel %vm901_vm10, %v1232_v9, %v1241_v63 }
 0x891   :  { %v1204_v47 = vpop.permute.xlu0 %1203 }
 0x892   :  { %v1236_v37 = vrot.slane %v1204_v47, %v4530_v20  ;;  %v3938_v47 = vmov 66  }
 0x894   :  { %v1243_v58 = vsel %vm903_vm11, %v1236_v37, %v1242_v1 }
 0x895   :  { %v1245_v49 = vsel %vm1104_vm12, %v1243_v58, 0.0 }
 0x896   :  { %1246 = vadd.xlane.f32.xlu0 %v1245_v49 }
 0x923   :  { %v1247_v40 = vpop.xlane.xlu0 %1246 }
 0x924   :  { %3374 = vrcp.f32 %v1247_v40 }
 0x925   :  { %3376 = vpow2.f32 %v3083_v5 }
 0x92e   :  { %v3375_v2 = vpop.eup %3374 }
 0x92f   :  { %v1269_v17 = vrot.slane %v3375_v2, %v4566_v15  ;;  %v1253_v4 = vrot.slane %v3375_v2, %v4468_v30  ;;  %v1257_v13 = vrot.slane %v3375_v2, %v4550_v8  ;;  %v1261_v23 = vrot.slane %v3375_v2, %v4554_v12  ;;  %v3377_v9 = vpop.eup %3376 }
 0x930   :  { %v1265_v18 = vrot.slane %v3375_v2, %v4559_v24  ;;  %v1273_v6 = vrot.slane %v3375_v2, %v4570_v26  ;;  %v591_v22 = vadd.f32 1.0, %v3377_v9 }
 0x931   :  { %v1294_v54 = vmul.f32 %v3367_v62, %v1269_v17  ;;  %v1290_v10 = vmul.f32 %v3359_v36, %v1253_v4  ;;  %v1291_v14 = vmul.f32 %v3361_v46, %v1257_v13  ;;  %v1292_v29 = vmul.f32 %v3363_v16, %v1261_v23 }
 0x932   :  { %v1293_v35 = vmul.f32 %v3365_v55, %v1265_v18  ;;  %v1295_v36 = vmul.f32 %v3369_v48, %v1273_v6  ;;  %v1277_v62 = vrot.slane %v3375_v2, %v4576_v32  ;;  %3378 = vrcp.f32 %v591_v22 }
 0x933   :  { %1324 = vperm.xlu0 %3303, %v1294_v54   ;;  %1312 = vperm.xlu1 %3304, %v1290_v10   ;;  %v1281_v46 = vrot.slane %v3375_v2, %v4580_v33 }
 0x934   :  { %v1296_v43 = vmul.f32 %v3371_v59, %v1277_v62 }
 0x935   :  { %v1297_v0 = vmul.f32 %v3373_v38, %v1281_v46 }
 0x937   :  { %1315 = vperm.xlu1 %3304, %v1291_v14  }
 0x93b   :  { %1318 = vperm.xlu1 %3304, %v1292_v29  }
 0x93c   :  { %v3379_v16 = vpop.eup %3378 }
 0x93f   :  { %1321 = vperm.xlu1 %3304, %v1293_v35  }
 0x943   :  { %1327 = vperm.xlu1 %3304, %v1295_v36  }
 0x947   :  { %1330 = vperm.xlu1 %3304, %v1296_v43  }
 0x94b   :  { %1333 = vperm.xlu1 %3304, %v1297_v0  }
 0x94f   :  { %3305 = vset.pattern.permute.xlu1 %v3938_v47 }
 0x950   :  { %1300 = vperm.xlu1 %3305, %v3379_v16  }
 0x954   :  { %3307 = vset.pattern.permute.xlu1 %v3937_v27 }
 0x9b2   :  { %v1313_v55 = vpop.permute.xlu1 %1312  ;;  %v1325_v2 = vpop.permute.xlu0 %1324 }
 0x9b3   :  { %v1338_v49 = vrot.slane %v1313_v55, %v4530_v20  ;;  %v1354_v10 = vrot.slane %v1325_v2, %v4530_v20 }
 0x9b6   :  { %v1316_v63 = vpop.permute.xlu1 %1315 }
 0x9b7   :  { %v1342_v58 = vrot.slane %v1316_v63, %v4530_v20 }
 0x9b9   :  { %v1367_v17 = vsel %vm891_vm5, %v1342_v58, %v1338_v49 }
 0x9ba   :  { %v1319_v37 = vpop.permute.xlu1 %1318 }
 0x9bb   :  { %v1346_v59 = vrot.slane %v1319_v37, %v4530_v20  ;;  %v1439_v37 = vrot.slane %v3379_v16, %v4455_v19 }
 0x9bd   :  { %v1368_v4 = vsel %vm893_vm6, %v1346_v59, %v1367_v17 }
 0x9be   :  { %v1322_v48 = vpop.permute.xlu1 %1321 }
 0x9bf   :  { %v1350_v38 = vrot.slane %v1322_v48, %v4530_v20  ;;  %v1455_v48 = vrot.slane %v1439_v37, %v4455_v19 }
 0x9c1   :  { %v1369_v5 = vsel %vm895_vm7, %v1350_v38, %v1368_v4  ;;  %v1477_v58 = vcombine.high %v1455_v48, %v1455_v48  ;;  %v1484_v59 = vrot.slane %v1455_v48, %v4468_v30 }
 0x9c2   :  { %v1328_v1 = vpop.permute.xlu1 %1327  ;;  %v1370_v29 = vsel %vm897_vm8, %v1354_v10, %v1369_v5 }
 0x9c3   :  { %v1358_v54 = vrot.slane %v1328_v1, %v4530_v20  ;;  %v1432_v1 = vcombine.high %v3379_v16, %v3379_v16  ;;  %v1492_v4 = vrot.slane %v1477_v58, %v4468_v30 }
 0x9c5   :  { %v1371_v18 = vsel %vm899_vm9, %v1358_v54, %v1370_v29  ;;  %v1446_v49 = vrot.slane %v1432_v1, %v4455_v19  ;;  %v1447_v29 = vcombine.high %v1439_v37, %v1439_v37 }
 0x9c6   :  { %v1331_v40 = vpop.permute.xlu1 %1330 }
 0x9c7   :  { %v1362_v13 = vrot.slane %v1331_v40, %v4530_v20  ;;  %v1462_v5 = vrot.slane %v1446_v49, %v4455_v19  ;;  %v1448_v54 = vcombine.high %v1446_v49, %v1446_v49 }
 0x9c9   :  { %v1372_v35 = vsel %vm901_vm10, %v1362_v13, %v1371_v18  ;;  %v1500_v18 = vrot.slane %v1462_v5, %v4468_v30 }
 0x9ca   :  { %v1334_v14 = vpop.permute.xlu1 %1333 }
 0x9cb   :  { %v1366_v23 = vrot.slane %v1334_v14, %v4530_v20 }
 0x9cd   :  { %v1373_v6 = vsel %vm903_vm11, %v1366_v23, %v1372_v35  ;;  %v1476_v35 = vrot.slane %v1448_v54, %v4455_v19 }
 0x9cf   :  { %v1301_v9 = vpop.permute.xlu1 %1300 }
 0x9d0   :  { %v1375_v22 = vmul.f32 %v1373_v6, %v1301_v9 }
 0x9d2   :  { %v1393_v36 = vrot.slane %v1375_v22, %v4554_v12  ;;  %v1379_v62 = vrot.slane %v1375_v22, %v4468_v30  ;;  %v1407_v43 = vrot.slane %v1375_v22, %v4566_v15  ;;  %v1386_v46 = vrot.slane %v1375_v22, %v4550_v8 }
 0x9d3   :  { %v1421_v0 = vrot.slane %v1375_v22, %v4576_v32  ;;  %v1400_v47 = vrot.slane %v1375_v22, %v4559_v24  ;;  %v1414_v55 = vrot.slane %v1375_v22, %v4570_v26  ;;  %v1428_v63 = vrot.slane %v1375_v22, %v4580_v33 }
 0x9d4   :  { %1395 = vbcast.lane.b32.xlu0 %v1393_v36, 256  ;;  %1381 = vbcast.lane.b32.xlu1 %v1379_v62, 256  ;;  %v1469_v62 = vrot.slane %v1447_v29, %v4455_v19 }
 0x9d6   :  { %v1488_v37 = vrot.slane %v1469_v62, %v4468_v30  ;;  %v1479_v58 = vcombine.high %v1469_v62, %v1469_v62 }
 0x9d8   :  { %1409 = vbcast.lane.b32.xlu0 %v1407_v43, 256  ;;  %1388 = vbcast.lane.b32.xlu1 %v1386_v46, 256  ;;  %v1478_v43 = vcombine.high %v1462_v5, %v1462_v5  ;;  %v1504_v46 = vrot.slane %v1476_v35, %v4468_v30 }
 0x9da   :  { %v1508_v1 = vrot.slane %v1478_v43, %v4468_v30 }
 0x9dc   :  { %1423 = vbcast.lane.b32.xlu0 %v1421_v0, 256  ;;  %1402 = vbcast.lane.b32.xlu1 %v1400_v47, 256 }
 0x9e0   :  { %1416 = vbcast.lane.b32.xlu1 %v1414_v55, 256 }
 0x9e4   :  { %1430 = vbcast.lane.b32.xlu1 %v1428_v63, 256 }
 0xa46   :  { %v1396_v38 = vpop.permute.xlu0 %1395  ;;  %v1382_v40 = vpop.permute.xlu1 %1381 }
 0xa47   :  { %v1521_v2 = vmul.f32 %v1484_v59, %v1382_v40  ;;  %v1577_v17 = vmul.f32 %v1382_v40, %v4477_v39  ;;  %v1523_v16 = vmul.f32 %v1492_v4, %v1396_v38  ;;  %v1579_v22 = vmul.f32 %v1396_v38, %v4491_v61 }
 0xa48   :  { %v1480_v59 = vcombine.high %v1476_v35, %v1476_v35  ;;  %v1496_v4 = vrot.slane %v1479_v58, %v4468_v30 }
 0xa49   :  { %1593 = vrot.lane.b32.xlu0 %v1577_v17, %s3939_s12  ;;  %v1529_v14 = vsub.f32 1.0, %v1521_v2  ;;  %v1531_v9 = vsub.f32 1.0, %v1523_v16 }
 0xa4a   :  { %v1389_v10 = vpop.permute.xlu1 %1388  ;;  %v1410_v23 = vpop.permute.xlu0 %1409  ;;  %v1512_v5 = vrot.slane %v1480_v59, %v4468_v30 }
 0xa4b   :  { %v1578_v13 = vmul.f32 %v1389_v10, %v4482_v53  ;;  %v1525_v36 = vmul.f32 %v1500_v18, %v1410_v23  ;;  %v1581_v49 = vmul.f32 %v1410_v23, %v4502_v7  ;;  %v1522_v38 = vmul.f32 %v1488_v37, %v1389_v10 }
 0xa4d   :  { %1595 = vrot.lane.b32.xlu1 %v1578_v13, %s3939_s12  ;;  %1545 = vrot.lane.b32.xlu0 %v1529_v14, %s3940_s23  ;;  %v1533_v47 = vsub.f32 1.0, %v1525_v36  ;;  %v1530_v14 = vsub.f32 1.0, %v1522_v38 }
 0xa4e   :  { %v1403_v6 = vpop.permute.xlu1 %1402  ;;  %v1424_v48 = vpop.permute.xlu0 %1423 }
 0xa4f   :  { %v1580_v55 = vmul.f32 %v1403_v6, %v4488_v60  ;;  %v1527_v40 = vmul.f32 %v1508_v1, %v1424_v48  ;;  %v1524_v16 = vmul.f32 %v1496_v4, %v1403_v6  ;;  %v1583_v29 = vmul.f32 %v1424_v48, %v4518_v31 }
 0xa50   :  { %v3941_v6 = vmov 64  }
 0xa51   :  { %1597 = vrot.lane.b32.xlu1 %v1579_v22, %s3939_s12  ;;  %1549 = vrot.lane.b32.xlu0 %v1531_v9, %s3940_s23  ;;  %v1535_v54 = vsub.f32 1.0, %v1527_v40  ;;  %v1532_v10 = vsub.f32 1.0, %v1524_v16 }
 0xa52   :  { %v1417_v0 = vpop.permute.xlu1 %1416  ;;  %3306 = vset.pattern.permute.xlu0 %v3941_v6 }
 0xa53   :  { %v1526_v63 = vmul.f32 %v1504_v46, %v1417_v0  ;;  %v1582_v18 = vmul.f32 %v1417_v0, %v4497_v3 }
 0xa55   :  { %1599 = vrot.lane.b32.xlu1 %v1580_v55, %s3939_s12  ;;  %1553 = vrot.lane.b32.xlu0 %v1533_v47, %s3940_s23  ;;  %v1534_v2 = vsub.f32 1.0, %v1526_v63 }
 0xa56   :  { %v1431_v17 = vpop.permute.xlu1 %1430 }
 0xa57   :  { %v1528_v13 = vmul.f32 %v1512_v5, %v1431_v17  ;;  %v1584_v35 = vmul.f32 %v1431_v17, %v4507_v11 }
 0xa59   :  { %1601 = vrot.lane.b32.xlu1 %v1581_v49, %s3939_s12  ;;  %1555 = vrot.lane.b32.xlu0 %v1534_v2, %s3940_s23  ;;  %v1536_v23 = vsub.f32 1.0, %v1528_v13 }
 0xa5d   :  { %1547 = vrot.lane.b32.xlu1 %v1530_v14, %s3940_s23  ;;  %1557 = vrot.lane.b32.xlu0 %v1535_v54, %s3940_s23 }
 0xa61   :  { %1551 = vrot.lane.b32.xlu1 %v1532_v10, %s3940_s23  ;;  %1559 = vrot.lane.b32.xlu0 %v1536_v23, %s3940_s23 }
 0xa65   :  { %1603 = vrot.lane.b32.xlu1 %v1582_v18, %s3939_s12  ;;  %1605 = vrot.lane.b32.xlu0 %v1583_v29, %s3939_s12 }
 0xa69   :  { %1607 = vrot.lane.b32.xlu1 %v1584_v35, %s3939_s12 }
 0xabb   :  { %v1594_v9 = vpop.permute.xlu0 %1593 }
 0xabf   :  { %v1596_v22 = vpop.permute.xlu1 %1595  ;;  %v1546_v36 = vpop.permute.xlu0 %1545 }
 0xac0   :  { %v1569_v62 = vmul.f32 %v4406_v51, %v1546_v36 }
 0xac2   :  { %v4707_v43 = vadd.f32 %v1594_v9, %v1569_v62 }
 0xac3   :  { %v1598_v46 = vpop.permute.xlu1 %1597  ;;  %v1550_v0 = vpop.permute.xlu0 %1549 }
 0xac4   :  { %v3012_v47 = vpack.c.bf16 %v4707_v43, %v4707_v43  ;;  %v1571_v55 = vmul.f32 %v4392_v41, %v1550_v0  ;;  %v1625_v63 = vmul.f32 %v4707_v43, %v4707_v43 }
 0xac6   :  { %3021 = vst.msk [vmem:[#allocation33] sm:$0xf] %vm3020_vm13, %v3012_v47  ;;  %v4715_v37 = vadd.f32 %v1598_v46, %v1571_v55  ;;  %v1633_v48 = vsel %vm612_vm4, %v1625_v63, 0.0 }
 0xac7   :  { %v1600_v51 = vpop.permute.xlu1 %1599  ;;  %v1554_v1 = vpop.permute.xlu0 %1553  ;;  %1634 = vadd.xlane.f32.xlu0 %v1633_v48 }
 0xac8   :  { %v3014_v58 = vpack.c.bf16 %v4715_v37, %v4715_v37  ;;  %v1627_v59 = vmul.f32 %v4715_v37, %v4715_v37  ;;  %v1573_v41 = vmul.f32 %v4415_v56, %v1554_v1 }
 0xaca   :  { %3023 = vst.msk [vmem:[#allocation33 + $0x8] sm:$0xf] %vm3020_vm13, %v3014_v58  ;;  %v1639_v49 = vsel %vm612_vm4, %v1627_v59, 0.0 }
 0xacb   :  { %v1602_v38 = vpop.permute.xlu1 %1601  ;;  %v1556_v40 = vpop.permute.xlu0 %1555  ;;  %1640 = vadd.xlane.f32.xlu0 %v1639_v49 }
 0xacc   :  { %v4725_v2 = vadd.f32 %v1602_v38, %v1573_v41  ;;  %v1574_v18 = vmul.f32 %v4417_v57, %v1556_v40  ;;  %v1673_v38 = vsel %vm612_vm4, %v4463_v28, 0.0 }
 0xace   :  { %v3016_v17 = vpack.c.bf16 %v4725_v2, %v4725_v2  ;;  %v1629_v29 = vmul.f32 %v4725_v2, %v4725_v2 }
 0xacf   :  { %v1548_v4 = vpop.permute.xlu1 %1547  ;;  %v1558_v5 = vpop.permute.xlu0 %1557 }
 0xad0   :  { %3025 = vst.msk [vmem:[#allocation33 + $0x10] sm:$0xf] %vm3020_vm13, %v3016_v17  ;;  %v1570_v54 = vmul.f32 %v4408_v52, %v1548_v4  ;;  %v1575_v52 = vmul.f32 %v4396_v44, %v1558_v5  ;;  %v1645_v44 = vsel %vm612_vm4, %v1629_v29, 0.0 }
 0xad2   :  { %v4731_v16 = vadd.f32 %v1596_v22, %v1570_v54 }
 0xad3   :  { %v1552_v13 = vpop.permute.xlu1 %1551  ;;  %v1560_v56 = vpop.permute.xlu0 %1559 }
 0xad4   :  { %v3013_v14 = vpack.c.bf16 %v4731_v16, %v4731_v16  ;;  %v1572_v10 = vmul.f32 %v4394_v42, %v1552_v13  ;;  %v1626_v23 = vmul.f32 %v4731_v16, %v4731_v16  ;;  %v1576_v46 = vmul.f32 %v4398_v45, %v1560_v56 }
 0xad5   :  { %v1679_v40 = vmul.f32 %v4731_v16, %v4482_v53 }
 0xad6   :  { %3022 = vst.msk [vmem:[#allocation33 + $0x4] sm:$0xf] %vm3020_vm13, %v3013_v14  ;;  %v4743_v35 = vadd.f32 %v1600_v51, %v1572_v10  ;;  %v1636_v6 = vsel %vm612_vm4, %v1626_v23, 0.0 }
 0xad7   :  { %1637 = vadd.xlane.f32.xlu1 %v1636_v6  ;;  %v1604_v9 = vpop.permute.xlu1 %1603  ;;  %v1606_v22 = vpop.permute.xlu0 %1605  ;;  %v1689_v17 = vsel %vm612_vm4, %v1679_v40, 0.0 }
 0xad8   :  { %v3015_v42 = vpack.c.bf16 %v4743_v35, %v4743_v35  ;;  %v4748_v36 = vadd.f32 %v1604_v9, %v1574_v18  ;;  %v4750_v62 = vadd.f32 %v1606_v22, %v1575_v52  ;;  %v1628_v57 = vmul.f32 %v4743_v35, %v4743_v35 }
 0xad9   :  { %v1681_v4 = vmul.f32 %v4743_v35, %v4488_v60  ;;  %v1678_v60 = vmul.f32 %v4707_v43, %v4477_v39 }
 0xada   :  { %3024 = vst.msk [vmem:[#allocation33 + $0xc] sm:$0xf] %vm3020_vm13, %v3015_v42  ;;  %v3017_v0 = vpack.c.bf16 %v4748_v36, %v4748_v36  ;;  %v3018_v47 = vpack.c.bf16 %v4750_v62, %v4750_v62  ;;  %v1642_v55 = vsel %vm612_vm4, %v1628_v57, 0.0  ;;  %v1630_v63 = vmul.f32 %v4748_v36, %v4748_v36 }
 0xadb   :  { %v1608_v48 = vpop.permute.xlu1 %1607  ;;  %1646 = vadd.xlane.f32.xlu1 %v1645_v44  ;;  %1643 = vadd.xlane.f32.xlu0 %v1642_v55  ;;  %v1631_v45 = vmul.f32 %v4750_v62, %v4750_v62  ;;  %v1695_v5 = vsel %vm612_vm4, %v1681_v4, 0.0  ;;  %v1683_v54 = vmul.f32 %v4748_v36, %v4497_v3  ;;  %v1686_v56 = vsel %vm612_vm4, %v1678_v60, 0.0 }
 0xadc   :  { %3026 = vst.msk [vmem:[#allocation33 + $0x14] sm:$0xf] %vm3020_vm13, %v3017_v0  ;;  %3027 = vst.msk [vmem:[#allocation33 + $0x18] sm:$0xf] %vm3020_vm13, %v3018_v47  ;;  %v4768_v51 = vadd.f32 %v1608_v48, %v1576_v46  ;;  %v1648_v58 = vsel %vm612_vm4, %v1630_v63, 0.0  ;;  %v1680_v3 = vmul.f32 %v4715_v37, %v4491_v61 }
 0xadd   :  { %v1651_v59 = vsel %vm612_vm4, %v1631_v45, 0.0  ;;  %v1701_v13 = vsel %vm612_vm4, %v1683_v54, 0.0 }
 0xade   :  { %v3019_v1 = vpack.c.bf16 %v4768_v51, %v4768_v51  ;;  %v1632_v41 = vmul.f32 %v4768_v51, %v4768_v51  ;;  %v1685_v28 = vmul.f32 %v4768_v51, %v4507_v11  ;;  %v1692_v14 = vsel %vm612_vm4, %v1680_v3, 0.0 }
 0xadf   :  { %1649 = vadd.xlane.f32.xlu0 %v1648_v58  ;;  %1652 = vadd.xlane.f32.xlu1 %v1651_v59  ;;  %v1682_v11 = vmul.f32 %v4725_v2, %v4502_v7 }
 0xae0   :  { %3028 = vst.msk [vmem:[#allocation33 + $0x1c] sm:$0xf] %vm3020_vm13, %v3019_v1  ;;  %v1654_v49 = vsel %vm612_vm4, %v1632_v41, 0.0  ;;  %v1707_v53 = vsel %vm612_vm4, %v1685_v28, 0.0 }
 0xae1   :  { %v1698_v10 = vsel %vm612_vm4, %v1682_v11, 0.0 }
 0xae3   :  { %1655 = vadd.xlane.f32.xlu0 %v1654_v49  ;;  %1674 = vadd.xlane.f32.xlu1 %v1673_v38 }
 0xae7   :  { %1690 = vadd.xlane.f32.xlu1 %v1689_v17 }
 0xaeb   :  { %1696 = vadd.xlane.f32.xlu1 %v1695_v5 }
 0xaef   :  { %1702 = vadd.xlane.f32.xlu1 %v1701_v13 }
 0xaf3   :  { %1708 = vadd.xlane.f32.xlu1 %v1707_v53 }
 0xaf9   :  { %1833 = vperm.xlu0 %3306, %v4561_v25   ;;  %v1684_v25 = vmul.f32 %v4750_v62, %v4518_v31 }
 0xafb   :  { %v1704_v39 = vsel %vm612_vm4, %v1684_v25, 0.0 }
 0xafd   :  { %3308 = vset.pattern.permute.xlu0 %v3937_v27 }
 0xb18   :  { %1687 = vadd.xlane.f32.xlu0 %v1686_v56 }
 0xb1c   :  { %1693 = vadd.xlane.f32.xlu0 %v1692_v14 }
 0xb20   :  { %1699 = vadd.xlane.f32.xlu0 %v1698_v10 }
 0xb24   :  { %1705 = vadd.xlane.f32.xlu0 %v1704_v39 }
 0xb54   :  { %v1635_v27 = vpop.xlane.xlu0 %1634 }
 0xb55   :  { %v1657_v23 = vadd.f32 1e-06, %v1635_v27 }
 0xb57   :  { %3380 = vrsqrt.f32 %v1657_v23 }
 0xb58   :  { %v1641_v29 = vpop.xlane.xlu0 %1640 }
 0xb59   :  { %v1659_v18 = vadd.f32 1e-06, %v1641_v29 }
 0xb61   :  { %v3381_v44 = vpop.eup %3380 }
 0xb62   :  { %v1721_v1 = vrot.slane %v3381_v44, %v4530_v20 }
 0xb64   :  { %v1638_v61 = vpop.xlane.xlu1 %1637 }
 0xb65   :  { %v1658_v52 = vadd.f32 1e-06, %v1638_v61 }
 0xb67   :  { %3382 = vrsqrt.f32 %v1658_v52 }
 0xb68   :  { %v1647_v6 = vpop.xlane.xlu1 %1646  ;;  %v1644_v7 = vpop.xlane.xlu0 %1643  ;;  %3384 = vrsqrt.f32 %v1659_v18 }
 0xb69   :  { %v1661_v9 = vadd.f32 1e-06, %v1647_v6  ;;  %v1660_v22 = vadd.f32 1e-06, %v1644_v7 }
 0xb6b   :  { %3386 = vrsqrt.f32 %v1661_v9 }
 0xb6c   :  { %3388 = vrsqrt.f32 %v1660_v22  ;;  %v1653_v31 = vpop.xlane.xlu1 %1652  ;;  %v1650_v42 = vpop.xlane.xlu0 %1649 }
 0xb6d   :  { %v1663_v57 = vadd.f32 1e-06, %v1653_v31  ;;  %v1662_v46 = vadd.f32 1e-06, %v1650_v42 }
 0xb6f   :  { %3390 = vrsqrt.f32 %v1663_v57 }
 0xb70   :  { %3392 = vrsqrt.f32 %v1662_v46  ;;  %v1675_v0 = vpop.xlane.xlu1 %1674  ;;  %v1656_v47 = vpop.xlane.xlu0 %1655 }
 0xb71   :  { %v3383_v55 = vpop.eup %3382  ;;  %v1664_v63 = vadd.f32 1e-06, %v1656_v47  ;;  %v1676_v58 = vadd.f32 1e-06, %v1675_v0 }
 0xb72   :  { %v1725_v48 = vrot.slane %v3383_v55, %v4530_v20  ;;  %v3385_v45 = vpop.eup %3384 }
 0xb73   :  { %3394 = vrsqrt.f32 %v1664_v63  ;;  %v1729_v38 = vrot.slane %v3385_v45, %v4530_v20 }
 0xb74   :  { %v1750_v41 = vsel %vm891_vm5, %v1725_v48, %v1721_v1  ;;  %3396 = vrsqrt.f32 %v1676_v58  ;;  %v1691_v9 = vpop.xlane.xlu1 %1690 }
 0xb75   :  { %v3387_v59 = vpop.eup %3386  ;;  %v1751_v4 = vsel %vm893_vm6, %v1729_v38, %v1750_v41 }
 0xb76   :  { %v3389_v49 = vpop.eup %3388  ;;  %v1737_v17 = vrot.slane %v3387_v59, %v4530_v20 }
 0xb77   :  { %v1733_v40 = vrot.slane %v3389_v49, %v4530_v20 }
 0xb78   :  { %v1697_v22 = vpop.xlane.xlu1 %1696  ;;  %v1834_v42 = vpop.permute.xlu0 %1833 }
 0xb79   :  { %v3391_v5 = vpop.eup %3390  ;;  %v1752_v54 = vsel %vm895_vm7, %v1733_v40, %v1751_v4  ;;  %v1838_v47 = vrot.slane %v1834_v42, %v4468_v30  ;;  %v1842_v1 = vrot.slane %v1834_v42, %v4550_v8  ;;  %v1846_v49 = vrot.slane %v1834_v42, %v4554_v12 }
 0xb7a   :  { %v3393_v13 = vpop.eup %3392  ;;  %v1745_v53 = vrot.slane %v3391_v5, %v4530_v20  ;;  %v1753_v60 = vsel %vm897_vm8, %v1737_v17, %v1752_v54  ;;  %v1850_v5 = vrot.slane %v1834_v42, %v4559_v24 }
 0xb7b   :  { %v1741_v28 = vrot.slane %v3393_v13, %v4530_v20 }
 0xb7c   :  { %v1703_v31 = vpop.xlane.xlu1 %1702 }
 0xb7d   :  { %v1754_v56 = vsel %vm899_vm9, %v1741_v28, %v1753_v60  ;;  %v3395_v3 = vpop.eup %3394  ;;  %v1854_v60 = vrot.slane %v1834_v42, %v4566_v15 }
 0xb7e   :  { %v1749_v14 = vrot.slane %v3395_v3, %v4530_v20  ;;  %v1755_v11 = vsel %vm901_vm10, %v1745_v53, %v1754_v56  ;;  %v3397_v10 = vpop.eup %3396 }
 0xb80   :  { %v1756_v25 = vsel %vm903_vm11, %v1749_v14, %v1755_v11  ;;  %v1709_v57 = vpop.xlane.xlu1 %1708 }
 0xb81   :  { %v1758_v39 = vmul.f32 %v3397_v10, %v1756_v25  ;;  %v1858_v10 = vrot.slane %v1834_v42, %v4570_v26 }
 0xb83   :  { %v1812_v27 = vrot.slane %v1758_v39, %v4580_v33  ;;  %v1763_v23 = vrot.slane %v1758_v39, %v4468_v30  ;;  %v1770_v29 = vrot.slane %v1758_v39, %v4550_v8  ;;  %v1777_v61 = vrot.slane %v1758_v39, %v4554_v12 }
 0xb84   :  { %v1784_v18 = vrot.slane %v1758_v39, %v4559_v24  ;;  %v1791_v52 = vrot.slane %v1758_v39, %v4566_v15  ;;  %v1798_v6 = vrot.slane %v1758_v39, %v4570_v26  ;;  %v1805_v7 = vrot.slane %v1758_v39, %v4576_v32 }
 0xb85   :  { %1814 = vbcast.lane.b32.xlu0 %v1812_v27, 256  ;;  %1765 = vbcast.lane.b32.xlu1 %v1763_v23, 256  ;;  %v1866_v23 = vrot.slane %v1834_v42, %v4580_v33 }
 0xb89   :  { %1772 = vbcast.lane.b32.xlu1 %v1770_v29, 256 }
 0xb8d   :  { %1779 = vbcast.lane.b32.xlu1 %v1777_v61, 256  ;;  %v1862_v61 = vrot.slane %v1834_v42, %v4576_v32 }
 0xb91   :  { %1786 = vbcast.lane.b32.xlu1 %v1784_v18, 256 }
 0xb95   :  { %1793 = vbcast.lane.b32.xlu1 %v1791_v52, 256 }
 0xb99   :  { %1800 = vbcast.lane.b32.xlu1 %v1798_v6, 256 }
 0xb9d   :  { %1807 = vbcast.lane.b32.xlu1 %v1805_v7, 256 }
 0xba5   :  { %v1688_v46 = vpop.xlane.xlu0 %1687 }
 0xba9   :  { %v1694_v63 = vpop.xlane.xlu0 %1693 }
 0xbad   :  { %v1700_v38 = vpop.xlane.xlu0 %1699 }
 0xbb1   :  { %v1706_v13 = vpop.xlane.xlu0 %1705 }
 0xbf7   :  { %v1766_v44 = vpop.permute.xlu1 %1765  ;;  %v1815_v3 = vpop.permute.xlu0 %1814 }
 0xbf8   :  { %v1824_v0 = vmul.f32 %v1766_v44, %v1688_v46  ;;  %v1831_v25 = vmul.f32 %v1815_v3, %v1709_v57 }
 0xbfa   :  { %v4830_v55 = vmul.f32 %v1838_v47, %v1824_v0  ;;  %v1882_v18 = vmul.f32 %v1866_v23, %v1831_v25 }
 0xbfb   :  { %v1773_v48 = vpop.permute.xlu1 %1772 }
 0xbfc   :  { %v1825_v45 = vmul.f32 %v1773_v48, %v1691_v9  ;;  %1892 = vperm.xlu1 %3307, %v4830_v55  }
 0xbfe   :  { %v4834_v58 = vmul.f32 %v1842_v1, %v1825_v45 }
 0xbff   :  { %v1780_v59 = vpop.permute.xlu1 %1779 }
 0xc00   :  { %v1826_v41 = vmul.f32 %v1780_v59, %v1694_v63  ;;  %1895 = vperm.xlu0 %3308, %v4834_v58  }
 0xc02   :  { %v1877_v40 = vmul.f32 %v1846_v49, %v1826_v41 }
 0xc03   :  { %v1787_v17 = vpop.permute.xlu1 %1786 }
 0xc04   :  { %v1827_v4 = vmul.f32 %v1787_v17, %v1697_v22  ;;  %1898 = vperm.xlu1 %3307, %v1877_v40  }
 0xc06   :  { %v1878_v54 = vmul.f32 %v1850_v5, %v1827_v4 }
 0xc07   :  { %v1794_v28 = vpop.permute.xlu1 %1793 }
 0xc08   :  { %v1828_v53 = vmul.f32 %v1794_v28, %v1700_v38  ;;  %1901 = vperm.xlu1 %3307, %v1878_v54  }
 0xc0a   :  { %v1879_v56 = vmul.f32 %v1854_v60, %v1828_v53 }
 0xc0b   :  { %v1801_v14 = vpop.permute.xlu1 %1800 }
 0xc0c   :  { %v1829_v11 = vmul.f32 %v1801_v14, %v1703_v31  ;;  %1904 = vperm.xlu0 %3308, %v1879_v56  }
 0xc0e   :  { %v1880_v39 = vmul.f32 %v1858_v10, %v1829_v11 }
 0xc0f   :  { %v1808_v27 = vpop.permute.xlu1 %1807 }
 0xc10   :  { %v1830_v29 = vmul.f32 %v1808_v27, %v1706_v13  ;;  %1907 = vperm.xlu1 %3307, %v1880_v39  }
 0xc12   :  { %v1881_v52 = vmul.f32 %v1862_v61, %v1830_v29 }
 0xc14   :  { %1910 = vperm.xlu0 %3308, %v1881_v52   ;;  %1913 = vperm.xlu1 %3307, %v1882_v18  }
 0xc7b   :  { %v1893_v6 = vpop.permute.xlu1 %1892 }
 0xc7c   :  { %v1918_v44 = vrot.slane %v1893_v6, %v4530_v20 }
 0xc7f   :  { %v1896_v9 = vpop.permute.xlu0 %1895 }
 0xc80   :  { %v1922_v31 = vrot.slane %v1896_v9, %v4530_v20 }
 0xc82   :  { %v1947_v63 = vsel %vm891_vm5, %v1922_v31, %v1918_v44 }
 0xc83   :  { %v1899_v7 = vpop.permute.xlu1 %1898 }
 0xc84   :  { %v1926_v57 = vrot.slane %v1899_v7, %v4530_v20 }
 0xc86   :  { %v1948_v45 = vsel %vm893_vm6, %v1926_v57, %v1947_v63 }
 0xc87   :  { %v1902_v22 = vpop.permute.xlu1 %1901 }
 0xc88   :  { %v1930_v0 = vrot.slane %v1902_v22, %v4530_v20 }
 0xc8a   :  { %v1949_v1 = vsel %vm895_vm7, %v1930_v0, %v1948_v45 }
 0xc8b   :  { %v1905_v46 = vpop.permute.xlu0 %1904 }
 0xc8c   :  { %v1934_v42 = vrot.slane %v1905_v46, %v4530_v20 }
 0xc8e   :  { %v1950_v49 = vsel %vm897_vm8, %v1934_v42, %v1949_v1 }
 0xc8f   :  { %v1908_v47 = vpop.permute.xlu1 %1907 }
 0xc90   :  { %v1938_v48 = vrot.slane %v1908_v47, %v4530_v20 }
 0xc92   :  { %v1951_v4 = vsel %vm899_vm9, %v1938_v48, %v1950_v49 }
 0xc93   :  { %v1914_v59 = vpop.permute.xlu1 %1913  ;;  %v1911_v41 = vpop.permute.xlu0 %1910 }
 0xc94   :  { %v1946_v38 = vrot.slane %v1914_v59, %v4530_v20  ;;  %v1942_v17 = vrot.slane %v1911_v41, %v4530_v20 }
 0xc96   :  { %v1952_v5 = vsel %vm901_vm10, %v1942_v17, %v1951_v4 }
 0xc97   :  { %v1953_v13 = vsel %vm903_vm11, %v1946_v38, %v1952_v5 }
 0xc98   :  { %v1955_v28 = vsel %vm1104_vm12, %v1953_v13, -inf }
 0xc99   :  { %1956 = vmax.xlane.f32.xlu0 %v1955_v28 }
 0xd26   :  { %v1957_v53 = vpop.xlane.xlu0 %1956 }
 0xd27   :  { %v1962_v60 = vrot.slane %v1957_v53, %v4468_v30  ;;  %v1966_v3 = vrot.slane %v1957_v53, %v4550_v8  ;;  %v1970_v14 = vrot.slane %v1957_v53, %v4554_v12  ;;  %v1974_v27 = vrot.slane %v1957_v53, %v4559_v24 }
 0xd28   :  { %v1978_v61 = vrot.slane %v1957_v53, %v4566_v15  ;;  %v1982_v9 = vrot.slane %v1957_v53, %v4570_v26  ;;  %v1990_v44 = vrot.slane %v1957_v53, %v4580_v33 }
 0xd29   :  { %v1999_v11 = vsub.f32 %v4830_v55, %v1962_v60  ;;  %v2000_v10 = vsub.f32 %v4834_v58, %v1966_v3  ;;  %v2001_v23 = vsub.f32 %v1877_v40, %v1970_v14  ;;  %v2002_v6 = vsub.f32 %v1878_v54, %v1974_v27 }
 0xd2a   :  { %v2003_v22 = vsub.f32 %v1879_v56, %v1978_v61  ;;  %v1986_v55 = vrot.slane %v1957_v53, %v4576_v32  ;;  %v2004_v58 = vsub.f32 %v1880_v39, %v1982_v9  ;;  %v2006_v42 = vsub.f32 %v1882_v18, %v1990_v44 }
 0xd2b   :  { %v2007_v25 = vmul.f32 1.442695, %v1999_v11  ;;  %v2009_v29 = vmul.f32 1.442695, %v2000_v10  ;;  %v2011_v7 = vmul.f32 1.442695, %v2001_v23 }
 0xd2c   :  { %v2013_v31 = vmul.f32 1.442695, %v2002_v6  ;;  %v2015_v57 = vmul.f32 1.442695, %v2003_v22  ;;  %v2005_v0 = vsub.f32 %v1881_v52, %v1986_v55  ;;  %v2017_v54 = vmul.f32 1.442695, %v2004_v58 }
 0xd2d   :  { %3398 = vpow2.f32 %v2007_v25  ;;  %v2021_v48 = vmul.f32 1.442695, %v2006_v42 }
 0xd2e   :  { %3400 = vpow2.f32 %v2009_v29  ;;  %v2019_v56 = vmul.f32 1.442695, %v2005_v0 }
 0xd2f   :  { %3402 = vpow2.f32 %v2011_v7 }
 0xd30   :  { %3404 = vpow2.f32 %v2013_v31 }
 0xd31   :  { %3406 = vpow2.f32 %v2015_v57 }
 0xd32   :  { %3408 = vpow2.f32 %v2017_v54 }
 0xd33   :  { %3410 = vpow2.f32 %v2019_v56 }
 0xd34   :  { %3412 = vpow2.f32 %v2021_v48 }
 0xd37   :  { %v3399_v46 = vpop.eup %3398 }
 0xd38   :  { %2032 = vperm.xlu1 %3307, %v3399_v46   ;;  %v3401_v40 = vpop.eup %3400 }
 0xd39   :  { %v3403_v47 = vpop.eup %3402 }
 0xd3a   :  { %v3405_v63 = vpop.eup %3404 }
 0xd3b   :  { %v3407_v45 = vpop.eup %3406 }
 0xd3c   :  { %2035 = vperm.xlu1 %3307, %v3401_v40   ;;  %v3409_v39 = vpop.eup %3408 }
 0xd3d   :  { %v3411_v1 = vpop.eup %3410 }
 0xd3e   :  { %v3413_v59 = vpop.eup %3412 }
 0xd40   :  { %2038 = vperm.xlu1 %3307, %v3403_v47  }
 0xd44   :  { %2041 = vperm.xlu1 %3307, %v3405_v63  }
 0xd48   :  { %2044 = vperm.xlu1 %3307, %v3407_v45  }
 0xd4c   :  { %2047 = vperm.xlu1 %3307, %v3409_v39  }
 0xd50   :  { %2050 = vperm.xlu1 %3307, %v3411_v1  }
 0xd54   :  { %2053 = vperm.xlu1 %3307, %v3413_v59  }
 0xdb7   :  { %v2033_v52 = vpop.permute.xlu1 %2032 }
 0xdb8   :  { %v2058_v13 = vrot.slane %v2033_v52, %v4530_v20 }
 0xdbb   :  { %v2036_v41 = vpop.permute.xlu1 %2035 }
 0xdbc   :  { %v2062_v4 = vrot.slane %v2036_v41, %v4530_v20 }
 0xdbe   :  { %v2087_v3 = vsel %vm891_vm5, %v2062_v4, %v2058_v13 }
 0xdbf   :  { %v2039_v49 = vpop.permute.xlu1 %2038 }
 0xdc0   :  { %v2066_v5 = vrot.slane %v2039_v49, %v4530_v20 }
 0xdc2   :  { %v2088_v11 = vsel %vm893_vm6, %v2066_v5, %v2087_v3 }
 0xdc3   :  { %v2042_v38 = vpop.permute.xlu1 %2041 }
 0xdc4   :  { %v2070_v28 = vrot.slane %v2042_v38, %v4530_v20 }
 0xdc6   :  { %v2089_v25 = vsel %vm895_vm7, %v2070_v28, %v2088_v11 }
 0xdc7   :  { %v2045_v18 = vpop.permute.xlu1 %2044 }
 0xdc8   :  { %v2074_v53 = vrot.slane %v2045_v18, %v4530_v20  ;;  %v3319_v18 = vld [vmem:[#allocation22] sm:$0xff]  }
 0xdc9   :  { %3198 = vmatpush3.bf16.msra.mxu0 %v3319_v18 }
 0xdca   :  { %v2090_v27 = vsel %vm897_vm8, %v2074_v53, %v2089_v25 }
 0xdcb   :  { %v2048_v17 = vpop.permute.xlu1 %2047 }
 0xdcc   :  { %v2078_v14 = vrot.slane %v2048_v17, %v4530_v20 }
 0xdce   :  { %v2091_v29 = vsel %vm899_vm9, %v2078_v14, %v2090_v27 }
 0xdcf   :  { %v2051_v60 = vpop.permute.xlu1 %2050 }
 0xdd0   :  { %v2082_v10 = vrot.slane %v2051_v60, %v4530_v20 }
 0xdd2   :  { %v2092_v6 = vsel %vm901_vm10, %v2082_v10, %v2091_v29 }
 0xdd3   :  { %v2054_v23 = vpop.permute.xlu1 %2053 }
 0xdd4   :  { %v2086_v61 = vrot.slane %v2054_v23, %v4530_v20 }
 0xdd6   :  { %v2093_v7 = vsel %vm903_vm11, %v2086_v61, %v2092_v6 }
 0xdd7   :  { %v2095_v9 = vsel %vm1104_vm12, %v2093_v7, 0.0 }
 0xdd8   :  { %2096 = vadd.xlane.f32.xlu0 %v2095_v9 }
 0xe65   :  { %v2097_v22 = vpop.xlane.xlu0 %2096 }
 0xe66   :  { %3414 = vrcp.f32 %v2097_v22 }
 0xe70   :  { %v3415_v31 = vpop.eup %3414 }
 0xe71   :  { %v2107_v55 = vrot.slane %v3415_v31, %v4550_v8  ;;  %v2103_v58 = vrot.slane %v3415_v31, %v4468_v30  ;;  %v2111_v0 = vrot.slane %v3415_v31, %v4554_v12  ;;  %v2115_v42 = vrot.slane %v3415_v31, %v4559_v24 }
 0xe72   :  { %v2119_v48 = vrot.slane %v3415_v31, %v4566_v15  ;;  %v2123_v41 = vrot.slane %v3415_v31, %v4570_v26  ;;  %v2131_v38 = vrot.slane %v3415_v31, %v4580_v33 }
 0xe73   :  { %v2141_v57 = vmul.f32 %v3401_v40, %v2107_v55  ;;  %v2140_v44 = vmul.f32 %v3399_v46, %v2103_v58  ;;  %v2142_v54 = vmul.f32 %v3403_v47, %v2111_v0  ;;  %v2143_v56 = vmul.f32 %v3405_v63, %v2115_v42  ;;  %v4893_v63 = vld [vmem:[#allocation32] sm:$0xff] }
 0xe74   :  { %v2144_v52 = vmul.f32 %v3407_v45, %v2119_v48  ;;  %v2145_v49 = vmul.f32 %v3409_v39, %v2123_v41  ;;  %v2127_v40 = vrot.slane %v3415_v31, %v4576_v32  ;;  %v2147_v47 = vmul.f32 %v3413_v59, %v2131_v38  ;;  %3211 = vmatprep.subr.bf16.mxu0 %v4893_v63 }
 0xe75   :  { %2155 = vperm.xlu0 %3308, %v2141_v57   ;;  %2150 = vperm.xlu1 %3307, %v2140_v44  }
 0xe76   :  { %v2146_v46 = vmul.f32 %v3411_v1, %v2127_v40 }
 0xe79   :  { %2160 = vperm.xlu1 %3307, %v2142_v54  }
 0xe7d   :  { %2165 = vperm.xlu1 %3307, %v2143_v56  }
 0xe81   :  { %2170 = vperm.xlu1 %3307, %v2144_v52  }
 0xe85   :  { %2175 = vperm.xlu1 %3307, %v2145_v49  }
 0xe89   :  { %2180 = vperm.xlu1 %3307, %v2146_v46  }
 0xe8d   :  { %2185 = vperm.xlu1 %3307, %v2147_v47  }
 0xef4   :  { %v2156_v45 = vpop.permute.xlu0 %2155  ;;  %v2151_v17 = vpop.permute.xlu1 %2150 }
 0xef5   :  { %v2189_v4 = vmul.f32 %v2156_v45, %v4731_v16  ;;  %v2188_v39 = vmul.f32 %v2151_v17, %v4707_v43 }
 0xef7   :  { %v2203_v5 = vsel %vm612_vm4, %v2189_v4, 0.0  ;;  %v2196_v1 = vsel %vm612_vm4, %v2188_v39, 0.0 }
 0xef8   :  { %v2161_v13 = vpop.permute.xlu1 %2160  ;;  %v2204_v28 = vrot.slane %v2203_v5, 4  ;;  %v2197_v53 = vrot.slane %v2196_v1, 4 }
 0xef9   :  { %v2190_v59 = vmul.f32 %v2161_v13, %v4715_v37 }
 0xefa   :  { %v2205_v11 = vadd.f32 %v2204_v28, %v2203_v5  ;;  %v2198_v25 = vadd.f32 %v2197_v53, %v2196_v1 }
 0xefb   :  { %v2210_v60 = vsel %vm612_vm4, %v2190_v59, 0.0 }
 0xefc   :  { %v2211_v3 = vrot.slane %v2210_v60, 4  ;;  %v2166_v14 = vpop.permute.xlu1 %2165  ;;  %v2206_v29 = vrot.slane %v2205_v11, 2  ;;  %v2199_v6 = vrot.slane %v2198_v25, 2 }
 0xefd   :  { %v2191_v10 = vmul.f32 %v2166_v14, %v4743_v35 }
 0xefe   :  { %v2212_v16 = vadd.f32 %v2211_v3, %v2210_v60  ;;  %v2207_v31 = vadd.f32 %v2206_v29, %v2205_v11  ;;  %v2200_v57 = vadd.f32 %v2199_v6, %v2198_v25 }
 0xeff   :  { %v2217_v43 = vsel %vm612_vm4, %v2191_v10, 0.0 }
 0xf00   :  { %v2218_v27 = vrot.slane %v2217_v43, 4  ;;  %v2171_v23 = vpop.permute.xlu1 %2170  ;;  %v2213_v37 = vrot.slane %v2212_v16, 2  ;;  %v2201_v49 = vrot.slane %v2200_v57, 1 }
 0xf01   :  { %v2192_v61 = vmul.f32 %v2171_v23, %v4725_v2  ;;  %v2208_v2 = vrot.slane %v2207_v31, 1 }
 0xf02   :  { %v2219_v7 = vadd.f32 %v2218_v27, %v2217_v43  ;;  %v2214_v44 = vadd.f32 %v2213_v37, %v2212_v16  ;;  %v2202_v1 = vadd.f32 %v2201_v49, %v2200_v57 }
 0xf03   :  { %v2224_v9 = vsel %vm612_vm4, %v2192_v61, 0.0  ;;  %v2209_v4 = vadd.f32 %v2208_v2, %v2207_v31 }
 0xf04   :  { %v2176_v22 = vpop.permute.xlu1 %2175  ;;  %v2220_v55 = vrot.slane %v2219_v7, 2  ;;  %v2225_v58 = vrot.slane %v2224_v9, 4  ;;  %v2215_v46 = vrot.slane %v2214_v44, 1  ;;  %v2256_v25 = vpack.c.bf16 %v2202_v1, %v2202_v1 }
 0xf05   :  { %v2193_v35 = vmul.f32 %v2176_v22, %v4748_v36  ;;  %v2257_v11 = vpack.c.bf16 %v2209_v4, %v2209_v4 }
 0xf06   :  { %v2226_v0 = vadd.f32 %v2225_v58, %v2224_v9  ;;  %v2221_v42 = vadd.f32 %v2220_v55, %v2219_v7  ;;  %v2216_v59 = vadd.f32 %v2215_v46, %v2214_v44  ;;  %v3000_v7 = vsel %vm891_vm5, %v2209_v4, %v2202_v1 }
 0xf07   :  { %v2231_v54 = vsel %vm612_vm4, %v2193_v35, 0.0  ;;  %v2275_v6 = vunpack.c.l.b16 %v2257_v11  ;;  %v2274_v9 = vunpack.c.l.b16 %v2256_v25 }
 0xf08   :  { %v2232_v56 = vrot.slane %v2231_v54, 4  ;;  %v2181_v48 = vpop.permute.xlu1 %2180  ;;  %v2227_v52 = vrot.slane %v2226_v0, 2  ;;  %v2222_v18 = vrot.slane %v2221_v42, 1  ;;  %v2258_v23 = vpack.c.bf16 %v2216_v59, %v2216_v59 }
 0xf09   :  { %v2194_v41 = vmul.f32 %v2181_v48, %v4750_v62  ;;  %v3001_v35 = vsel %vm893_vm6, %v2216_v59, %v3000_v7  ;;  %v2282_v48 = vsel %vm891_vm5, %v2275_v6, %v2274_v9  ;;  %v3323_v59 = vld [vmem:[#allocation28 + $0x8] sm:$0xff]  }
 0xf0a   :  { %v2233_v40 = vadd.f32 %v2232_v56, %v2231_v54  ;;  %v2228_v38 = vadd.f32 %v2227_v52, %v2226_v0  ;;  %v2223_v53 = vadd.f32 %v2222_v18, %v2221_v42  ;;  %v2276_v58 = vunpack.c.l.b16 %v2258_v23  ;;  %v4942_v23 = vld [vmem:[#allocation10] sm:$0xff]  }
 0xf0b   :  { %v2238_v47 = vsel %vm612_vm4, %v2194_v41, 0.0  ;;  %v3121_v9 = vunpack.c.l.bf16 %v4942_v23 }
 0xf0c   :  { %v2234_v36 = vrot.slane %v2233_v40, 2  ;;  %v2239_v45 = vrot.slane %v2238_v47, 4  ;;  %v2186_v17 = vpop.permute.xlu1 %2185  ;;  %v2229_v39 = vrot.slane %v2228_v38, 1  ;;  %v2259_v29 = vpack.c.bf16 %v2223_v53, %v2223_v53 }
 0xf0d   :  { %v2195_v5 = vmul.f32 %v2186_v17, %v4768_v51  ;;  %v3002_v44 = vsel %vm895_vm7, %v2223_v53, %v3001_v35  ;;  %v2283_v49 = vsel %vm893_vm6, %v2276_v58, %v2282_v48  ;;  %v3089_v53 = vld [vmem:[#allocation23] ss:$0 sm:$0xff] }
 0xf0e   :  { %v2235_v13 = vadd.f32 %v2234_v36, %v2233_v40  ;;  %v2240_v28 = vadd.f32 %v2239_v45, %v2238_v47  ;;  %v2230_v10 = vadd.f32 %v2229_v39, %v2228_v38  ;;  %v2277_v57 = vunpack.c.l.b16 %v2259_v29 }
 0xf0f   :  { %v2245_v62 = vsel %vm612_vm4, %v2195_v5, 0.0  ;;  %v3320_v5 = vld [vmem:[#allocation25] sm:$0xff]  }
 0xf10   :  { %v2236_v60 = vrot.slane %v2235_v13, 1  ;;  %v2241_v3 = vrot.slane %v2240_v28, 2  ;;  %v2246_v14 = vrot.slane %v2245_v62, 4  ;;  %v2260_v37 = vpack.c.bf16 %v2230_v10, %v2230_v10 }
 0xf11   :  { %v3003_v56 = vsel %vm897_vm8, %v2230_v10, %v3002_v44  ;;  %v2284_v38 = vsel %vm895_vm7, %v2277_v57, %v2283_v49 }
 0xf12   :  { %v2237_v16 = vadd.f32 %v2236_v60, %v2235_v13  ;;  %v2242_v43 = vadd.f32 %v2241_v3, %v2240_v28  ;;  %v2247_v27 = vadd.f32 %v2246_v14, %v2245_v62  ;;  %v2278_v42 = vunpack.c.l.b16 %v2260_v37  ;;  %v3321_v13 = vld [vmem:[#allocation28] sm:$0xff]   ;;  %v3322_v28 = vld [vmem:[#allocation25 + $0x8] sm:$0xff]  }
 0xf13   :  { %3220 = vmatpush3.bf16.msra.mxu1 %v3321_v13  ;;  %v4946_v37 = vld [vmem:[#allocation10 + $0x8] sm:$0xff]  }
 0xf14   :  { %v2243_v61 = vrot.slane %v2242_v43, 1  ;;  %v2248_v51 = vrot.slane %v2247_v27, 2  ;;  %v2261_v22 = vpack.c.bf16 %v2237_v16, %v2237_v16  ;;  %v3004_v52 = vsel %vm899_vm9, %v2237_v16, %v3003_v56  ;;  %3221 = vmatprep.subr.bf16.mxu1 %v4893_v63 }
 0xf15   :  { %v2285_v36 = vsel %vm897_vm8, %v2278_v42, %v2284_v38  ;;  %v3125_v44 = vunpack.c.l.bf16 %v4946_v37 }
 0xf16   :  { %v2244_v31 = vadd.f32 %v2243_v61, %v2242_v43  ;;  %v2249_v55 = vadd.f32 %v2248_v51, %v2247_v27  ;;  %v2279_v2 = vunpack.c.l.b16 %v2261_v22  ;;  %v3122_v22 = vunpack.c.h.bf16 %v4942_v23 }
 0xf17   :  { %3222 = vmatpush3.bf16.msra.mxu1 %v3323_v59 }
 0xf18   :  { %v2262_v0 = vpack.c.bf16 %v2244_v31, %v2244_v31  ;;  %v2250_v54 = vrot.slane %v2249_v55, 1  ;;  %v3005_v46 = vsel %vm901_vm10, %v2244_v31, %v3004_v52  ;;  %v2286_v45 = vsel %vm899_vm9, %v2279_v2, %v2285_v36  ;;  %3227 = vmatprep.subr.bf16.mxu1 %v4893_v63 }
 0xf1a   :  { %v2251_v41 = vadd.f32 %v2250_v54, %v2249_v55  ;;  %v2280_v40 = vunpack.c.l.b16 %v2262_v0  ;;  %v4954_v0 = vld [vmem:[#allocation10 + $0x10] sm:$0xff]  }
 0xf1b   :  { %v3130_v56 = vunpack.c.h.bf16 %v4954_v0  ;;  %v3129_v49 = vunpack.c.l.bf16 %v4954_v0 }
 0xf1c   :  { %v2263_v47 = vpack.c.bf16 %v2251_v41, %v2251_v41  ;;  %v3006_v18 = vsel %vm903_vm11, %v2251_v41, %v3005_v46  ;;  %v2287_v4 = vsel %vm901_vm10, %v2280_v40, %v2286_v45 }
 0xf1d   :  { %3008 = vst.msk [vmem:[#allocation32 + $0x10] sm:$0xff] %vm612_vm4, %v3006_v18 }
 0xf1e   :  { %v2281_v17 = vunpack.c.l.b16 %v2263_v47  ;;  %v4970_v47 = vld [vmem:[#allocation10 + $0x18] sm:$0xff]  }
 0xf20   :  { %v2288_v39 = vsel %vm903_vm11, %v2281_v17, %v2287_v4  ;;  %v3134_v17 = vunpack.c.h.bf16 %v4970_v47 }
 0xf21   :  { %v2289_v1 = vpack.c.b16 %v2288_v39, %v2288_v39  ;;  %v3126_v39 = vunpack.c.h.bf16 %v4946_v37 }
 0xf23   :  { %3200 = vmatmul.mubr.msk.bf16.vlgmr.msra.gmra.mrb[8].mxu0 %vm612_vm4, %v2289_v1 }
 0xf24   :  { %3212 = vmatpush3.bf16.msra.mxu0 %v3320_v5  ;;  %3215 = vmatprep.mubr.msk.bf16.mxu0 %vm3931_vm0, %v4893_v63 }
 0xf25   :  { %3213 = vmatprep.subr.bf16.mxu0 %v4893_v63 }
 0xf28   :  { %3214 = vmatpush3.bf16.msra.mxu0 %v3322_v28 }
 0xf29   :  { %3235 = vmatprep.subr.bf16.mxu0 %v4893_v63 }
 0xff6   :  { %v2333_v62 = vpop.f32.mrb[8].mxu0 }
 0xff7   :  { %v2386_v60 = vadd.f32 %v4457_v21, %v2333_v62  ;;  %v3201_v3 = vpop.f32.mrb[9].mxu0 }
 0xff8   :  { %v2336_v14 = vpop.f32.mrb[10].mxu0  ;;  %v3133_v3 = vunpack.c.l.bf16 %v4970_v47 }
 0xff9   :  { %v2398_v11 = vadd.f32 %v3089_v53, %v2386_v60  ;;  %v3202_v10 = vpop.f32.mrb[11].mxu0 }
 0xffb   :  { %v2399_v25 = vpack.c.bf16 %v2398_v11, %v2398_v11 }
 0xffd   :  { %3216 = vmatmul.mubr.msk.bf16.vlgmr.msra.gmra.mrb[12].mxu0 %vm369_vm2, %v2399_v25  ;;  %3224 = vmatmul.mubr.msk.bf16.vlgmr.msra.gmra.mrb[8].mxu1 %vm369_vm2, %v2399_v25 }
 0xffe   :  { %3231 = vmatprep.mubr.msk.bf16.mxu1 %vm3931_vm0, %v4893_v63  ;;  %3239 = vmatprep.mubr.msk.bf16.mxu0 %vm3931_vm0, %v4893_v63 }
0x10d0   :  { %v2453_v16 = vpop.f32.mrb[12].mxu0 }
0x10d1   :  { %v2460_v43 = vcombine.high %v2453_v16, %v2453_v16  ;;  %v2467_v27 = vrot.slane %v2453_v16, %v4455_v19  ;;  %v3217_v21 = vpop.f32.mrb[13].mxu0 }
0x10d2   :  { %v2456_v29 = vpop.f32.mrb[14].mxu0 }
0x10d3   :  { %v2474_v61 = vrot.slane %v2460_v43, %v4455_v19  ;;  %v2475_v51 = vcombine.high %v2467_v27, %v2467_v27  ;;  %v2483_v6 = vrot.slane %v2467_v27, %v4455_v19  ;;  %v3218_v7 = vpop.f32.mrb[15].mxu0 }
0x10d5   :  { %v2476_v31 = vcombine.high %v2474_v61, %v2474_v61  ;;  %v2490_v55 = vrot.slane %v2474_v61, %v4455_v19  ;;  %v2497_v58 = vrot.slane %v2475_v51, %v4455_v19  ;;  %v2505_v35 = vcombine.high %v2483_v6, %v2483_v6 }
0x10d6   :  { %v2512_v57 = vrot.slane %v2483_v6, %v4468_v30 }
0x10d7   :  { %v2516_v54 = vrot.slane %v2497_v58, %v4468_v30  ;;  %v2520_v42 = vrot.slane %v2505_v35, %v4468_v30  ;;  %v2504_v48 = vrot.slane %v2476_v31, %v4455_v19  ;;  %v2528_v40 = vrot.slane %v2490_v55, %v4468_v30 }
0x10d8   :  { %v2549_v2 = vmul.f32 %v3121_v9, %v2512_v57  ;;  %v2507_v18 = vcombine.high %v2497_v58, %v2497_v58  ;;  %v2506_v28 = vcombine.high %v2490_v55, %v2490_v55 }
0x10d9   :  { %v2550_v52 = vmul.f32 %v3122_v22, %v2516_v54  ;;  %v2532_v41 = vrot.slane %v2504_v48, %v4468_v30  ;;  %v2551_v38 = vmul.f32 %v3125_v44, %v2520_v42  ;;  %v2508_v19 = vcombine.high %v2504_v48, %v2504_v48 }
0x10da   :  { %v2557_v46 = vsel %vm369_vm2, %v2549_v2, 0.0  ;;  %v2553_v1 = vmul.f32 %v3129_v49, %v2528_v40  ;;  %v2524_v13 = vrot.slane %v2507_v18, %v4468_v30  ;;  %v2536_v14 = vrot.slane %v2506_v28, %v4468_v30  ;;  %v342_v2 = vld [vmem:[#allocation11] sm:$0xff] }
0x10db   :  { %2558 = vadd.xlane.f32.xlu0 %v2557_v46  ;;  %v2560_v36 = vsel %vm369_vm2, %v2550_v52, 0.0  ;;  %v2554_v45 = vmul.f32 %v3130_v56, %v2532_v41  ;;  %v2540_v4 = vrot.slane %v2508_v19, %v4468_v30  ;;  %v2563_v5 = vsel %vm369_vm2, %v2551_v38, 0.0 }
0x10dc   :  { %2561 = vadd.xlane.f32.xlu1 %v2560_v36  ;;  %v2569_v53 = vsel %vm369_vm2, %v2553_v1, 0.0  ;;  %v2552_v60 = vmul.f32 %v3126_v39, %v2524_v13  ;;  %v2555_v25 = vmul.f32 %v3133_v3, %v2536_v14  ;;  %vm2581_vm14 = vcmp.gt.f32.partialorder %v342_v2, 0.5 }
0x10dd   :  { %v2572_v59 = vsel %vm369_vm2, %v2554_v45, 0.0  ;;  %v2556_v62 = vmul.f32 %v3134_v17, %v2540_v4 }
0x10de   :  { %v2566_v10 = vsel %vm369_vm2, %v2552_v60, 0.0  ;;  %v2575_v16 = vsel %vm369_vm2, %v2555_v25, 0.0 }
0x10df   :  { %2564 = vadd.xlane.f32.xlu0 %v2563_v5  ;;  %v2578_v11 = vsel %vm369_vm2, %v2556_v62, 0.0 }
0x10e0   :  { %2573 = vadd.xlane.f32.xlu1 %v2572_v59 }
0x10e3   :  { %2570 = vadd.xlane.f32.xlu0 %v2569_v53 }
0x10e4   :  { %2579 = vadd.xlane.f32.xlu1 %v2578_v11 }
0x10e7   :  { %2567 = vadd.xlane.f32.xlu0 %v2566_v10 }
0x10eb   :  { %2576 = vadd.xlane.f32.xlu0 %v2575_v16 }
0x1168   :  { %v2559_v43 = vpop.xlane.xlu0 %2558 }
0x1169   :  { %v2562_v27 = vpop.xlane.xlu1 %2561  ;;  %v2593_v51 = vrot.slane %v2559_v43, %v4530_v20 }
0x116a   :  { %v2597_v29 = vrot.slane %v2562_v27, %v4530_v20 }
0x116c   :  { %v2565_v21 = vpop.xlane.xlu0 %2564  ;;  %v2622_v31 = vsel %vm891_vm5, %v2597_v29, %v2593_v51 }
0x116d   :  { %v2574_v6 = vpop.xlane.xlu1 %2573  ;;  %v2601_v7 = vrot.slane %v2565_v21, %v4530_v20 }
0x116e   :  { %v2613_v54 = vrot.slane %v2574_v6, %v4530_v20 }
0x116f   :  { %v2623_v35 = vsel %vm893_vm6, %v2601_v7, %v2622_v31 }
0x1170   :  { %v2571_v61 = vpop.xlane.xlu0 %2570 }
0x1171   :  { %v2609_v57 = vrot.slane %v2571_v61, %v4530_v20  ;;  %v2580_v42 = vpop.xlane.xlu1 %2579 }
0x1172   :  { %v2621_v38 = vrot.slane %v2580_v42, %v4530_v20 }
0x1174   :  { %v2568_v55 = vpop.xlane.xlu0 %2567 }
0x1175   :  { %v2605_v58 = vrot.slane %v2568_v55, %v4530_v20 }
0x1177   :  { %v2624_v48 = vsel %vm895_vm7, %v2605_v58, %v2623_v35 }
0x1178   :  { %v2625_v52 = vsel %vm897_vm8, %v2609_v57, %v2624_v48  ;;  %v2577_v41 = vpop.xlane.xlu0 %2576 }
0x1179   :  { %v2617_v40 = vrot.slane %v2577_v41, %v4530_v20  ;;  %v2626_v46 = vsel %vm899_vm9, %v2613_v54, %v2625_v52 }
0x117b   :  { %v2627_v19 = vsel %vm901_vm10, %v2617_v40, %v2626_v46 }
0x117c   :  { %v2628_v18 = vsel %vm903_vm11, %v2621_v38, %v2627_v19 }
0x117d   :  { %v2630_v36 = vsel %vm2581_vm14, -1e+30, %v2628_v18 }
0x117e   :  { %v2631_v45 = vsel %vm1104_vm12, %v2630_v36, -inf }
0x117f   :  { %2632 = vmax.xlane.f32.xlu0 %v2631_v45 }
0x120c   :  { %v2633_v4 = vpop.xlane.xlu0 %2632 }
0x120d   :  { %v2634_v5 = vsub.f32 %v2630_v36, %v2633_v4 }
0x120f   :  { %v2635_v1 = vmul.f32 1.442695, %v2634_v5 }
0x1211   :  { %3416 = vpow2.f32 %v2635_v1 }
0x121b   :  { %v3417_v13 = vpop.eup %3416 }
0x121c   :  { %v2637_v28 = vsel %vm1104_vm12, %v3417_v13, 0.0 }
0x121d   :  { %2638 = vadd.xlane.f32.xlu1 %v2637_v28 }
0x12aa   :  { %v2639_v59 = vpop.xlane.xlu1 %2638 }
0x12ab   :  { %3418 = vrcp.f32 %v2639_v59 }
0x12b5   :  { %v3419_v20 = vpop.eup %3418 }
0x12b6   :  { %v2641_v62 = vmul.f32 %v3419_v20, %v3417_v13 }
0x12b8   :  { %3009 = vst.msk [vmem:[#allocation32 + $0x18] sm:$0xff] %vm1104_vm12, %v2641_v62  ;;  %v2652_v53 = vrot.slane %v2641_v62, %v4550_v8  ;;  %v2645_v60 = vrot.slane %v2641_v62, %v4468_v30  ;;  %v2659_v14 = vrot.slane %v2641_v62, %v4554_v12  ;;  %v2673_v11 = vrot.slane %v2641_v62, %v4566_v15  ;;  %v3324_v8 = vld [vmem:[#allocation26] sm:$0xff]   ;;  %v3325_v12 = vld [vmem:[#allocation26 + $0x8] sm:$0xff]  }
0x12b9   :  { %v2666_v10 = vrot.slane %v2641_v62, %v4559_v24  ;;  %v2687_v25 = vrot.slane %v2641_v62, %v4576_v32  ;;  %v2680_v16 = vrot.slane %v2641_v62, %v4570_v26  ;;  %v2694_v30 = vrot.slane %v2641_v62, %v4580_v33  ;;  %3228 = vmatpush3.bf16.msra.mxu1 %v3324_v8 }
0x12ba   :  { %2654 = vbcast.lane.b32.xlu1 %v2652_v53, 256  ;;  %2647 = vbcast.lane.b32.xlu0 %v2645_v60, 256 }
0x12bb   :  { %3229 = vmatprep.subr.bf16.mxu1 %v4893_v63 }
0x12bd   :  { %3230 = vmatpush3.bf16.msra.mxu1 %v3325_v12 }
0x12be   :  { %2661 = vbcast.lane.b32.xlu1 %v2659_v14, 256  ;;  %2675 = vbcast.lane.b32.xlu0 %v2673_v11, 256 }
0x12c2   :  { %2668 = vbcast.lane.b32.xlu1 %v2666_v10, 256  ;;  %2689 = vbcast.lane.b32.xlu0 %v2687_v25, 256 }
0x12c6   :  { %2682 = vbcast.lane.b32.xlu1 %v2680_v16, 256  ;;  %2983 = vrot.lane.b32.xlu0 %v4404_v50, %s3932_s18 }
0x12ca   :  { %2696 = vbcast.lane.b32.xlu1 %v2694_v30, 256 }
0x12ce   :  { %2988 = vrot.lane.b32.xlu1 %v4384_v34, %s3940_s23 }
0x132c   :  { %v2655_v24 = vpop.permute.xlu1 %2654  ;;  %v2648_v15 = vpop.permute.xlu0 %2647 }
0x132d   :  { %v2699_v26 = vmul.f32 %v3122_v22, %v2655_v24  ;;  %v2698_v50 = vmul.f32 %v3121_v9, %v2648_v15 }
0x132f   :  { %v2713_v32 = vsel %vm369_vm2, %v2699_v26, 0.0  ;;  %v2706_v33 = vsel %vm369_vm2, %v2698_v50, 0.0 }
0x1330   :  { %v2714_v43 = vrot.slane %v2713_v32, 4  ;;  %v2707_v34 = vrot.slane %v2706_v33, 4  ;;  %v2662_v27 = vpop.permute.xlu1 %2661  ;;  %v2676_v21 = vpop.permute.xlu0 %2675 }
0x1331   :  { %v2700_v29 = vmul.f32 %v3125_v44, %v2662_v27  ;;  %v2702_v61 = vmul.f32 %v3129_v49, %v2676_v21 }
0x1332   :  { %v2715_v51 = vadd.f32 %v2714_v43, %v2713_v32  ;;  %v2708_v6 = vadd.f32 %v2707_v34, %v2706_v33 }
0x1333   :  { %v2720_v22 = vsel %vm369_vm2, %v2700_v29, 0.0  ;;  %v2734_v23 = vsel %vm369_vm2, %v2702_v61, 0.0 }
0x1334   :  { %v2716_v9 = vrot.slane %v2715_v51, 2  ;;  %v2709_v7 = vrot.slane %v2708_v6, 2  ;;  %v2721_v31 = vrot.slane %v2720_v22, 4  ;;  %v2735_v55 = vrot.slane %v2734_v23, 4  ;;  %v2669_v58 = vpop.permute.xlu1 %2668  ;;  %v2690_v35 = vpop.permute.xlu0 %2689 }
0x1335   :  { %v2701_v57 = vmul.f32 %v3126_v39, %v2669_v58  ;;  %v2704_v44 = vmul.f32 %v3133_v3, %v2690_v35 }
0x1336   :  { %v2717_v54 = vadd.f32 %v2716_v9, %v2715_v51  ;;  %v2710_v49 = vadd.f32 %v2709_v7, %v2708_v6  ;;  %v2722_v42 = vadd.f32 %v2721_v31, %v2720_v22  ;;  %v2736_v48 = vadd.f32 %v2735_v55, %v2734_v23 }
0x1337   :  { %v2727_v2 = vsel %vm369_vm2, %v2701_v57, 0.0  ;;  %v2748_v52 = vsel %vm369_vm2, %v2704_v44, 0.0 }
0x1338   :  { %v2718_v41 = vrot.slane %v2717_v54, 1  ;;  %v2711_v40 = vrot.slane %v2710_v49, 1  ;;  %v2723_v46 = vrot.slane %v2722_v42, 2  ;;  %v2737_v38 = vrot.slane %v2736_v48, 2  ;;  %v2683_v19 = vpop.permute.xlu1 %2682  ;;  %v2984_v18 = vpop.permute.xlu0 %2983 }
0x1339   :  { %v2728_v36 = vrot.slane %v2727_v2, 4  ;;  %v2749_v37 = vrot.slane %v2748_v52, 4  ;;  %v2703_v39 = vmul.f32 %v3130_v56, %v2683_v19  ;;  %2986 = vst.msk [vmem:[#allocation32] sm:$0xff] %vm369_vm2, %v2984_v18  ;;  %v3326_v18 = vld [vmem:[#allocation29] sm:$0xff]  }
0x133a   :  { %v2719_v3 = vadd.f32 %v2718_v41, %v2717_v54  ;;  %v2712_v45 = vadd.f32 %v2711_v40, %v2710_v49  ;;  %v2724_v4 = vadd.f32 %v2723_v46, %v2722_v42  ;;  %v2738_v5 = vadd.f32 %v2737_v38, %v2736_v48  ;;  %3236 = vmatpush3.bf16.msra.mxu0 %v3326_v18 }
0x133b   :  { %v2729_v1 = vadd.f32 %v2728_v36, %v2727_v2  ;;  %v2750_v13 = vadd.f32 %v2749_v37, %v2748_v52  ;;  %v2741_v28 = vsel %vm369_vm2, %v2703_v39, 0.0  ;;  %v3327_v36 = vld [vmem:[#allocation29 + $0x8] sm:$0xff]   ;;  %3237 = vmatprep.subr.bf16.mxu0 %v4893_v63 }
0x133c   :  { %v2725_v59 = vrot.slane %v2724_v4, 1  ;;  %v2697_v20 = vpop.permute.xlu1 %2696  ;;  %v2742_v60 = vrot.slane %v2741_v28, 4  ;;  %v2763_v0 = vpack.c.bf16 %v2719_v3, %v2719_v3  ;;  %v2762_v56 = vpack.c.bf16 %v2712_v45, %v2712_v45 }
0x133d   :  { %v2730_v62 = vrot.slane %v2729_v1, 2  ;;  %v2751_v53 = vrot.slane %v2750_v13, 2  ;;  %v2705_v14 = vmul.f32 %v3134_v17, %v2697_v20  ;;  %v2739_v10 = vrot.slane %v2738_v5, 1 }
0x133e   :  { %v2726_v11 = vadd.f32 %v2725_v59, %v2724_v4  ;;  %v2743_v30 = vadd.f32 %v2742_v60, %v2741_v28  ;;  %v2839_v17 = vunpack.c.l.b16 %v2763_v0  ;;  %v2838_v43 = vunpack.c.l.b16 %v2762_v56  ;;  %3238 = vmatpush3.bf16.msra.mxu0 %v3327_v36 }
0x133f   :  { %v2731_v25 = vadd.f32 %v2730_v62, %v2729_v1  ;;  %v2752_v16 = vadd.f32 %v2751_v53, %v2750_v13  ;;  %v2755_v8 = vsel %vm369_vm2, %v2705_v14, 0.0  ;;  %v2740_v33 = vadd.f32 %v2739_v10, %v2738_v5 }
0x1340   :  { %v2764_v12 = vpack.c.bf16 %v2726_v11, %v2726_v11  ;;  %v2756_v24 = vrot.slane %v2755_v8, 4  ;;  %v2989_v15 = vpop.permute.xlu1 %2988  ;;  %v2744_v32 = vrot.slane %v2743_v30, 2  ;;  %v2846_v9 = vsel %vm891_vm5, %v2839_v17, %v2838_v43 }
0x1341   :  { %v2732_v26 = vrot.slane %v2731_v25, 1  ;;  %v2753_v50 = vrot.slane %v2752_v16, 1  ;;  %2991 = vst.msk [vmem:[#allocation32 + $0x8] sm:$0xff] %vm369_vm2, %v2989_v15  ;;  %v2766_v22 = vpack.c.bf16 %v2740_v33, %v2740_v33 }
0x1342   :  { %v2757_v47 = vadd.f32 %v2756_v24, %v2755_v8  ;;  %v2745_v27 = vadd.f32 %v2744_v32, %v2743_v30  ;;  %v2840_v21 = vunpack.c.l.b16 %v2764_v12 }
0x1343   :  { %v2733_v34 = vadd.f32 %v2732_v26, %v2731_v25  ;;  %v2754_v51 = vadd.f32 %v2753_v50, %v2752_v16  ;;  %v2842_v54 = vunpack.c.l.b16 %v2766_v22 }
0x1344   :  { %v2758_v29 = vrot.slane %v2757_v47, 2  ;;  %v2746_v6 = vrot.slane %v2745_v27, 1  ;;  %v2847_v55 = vsel %vm893_vm6, %v2840_v21, %v2846_v9 }
0x1345   :  { %v2765_v61 = vpack.c.bf16 %v2733_v34, %v2733_v34  ;;  %v2768_v57 = vpack.c.bf16 %v2754_v51, %v2754_v51 }
0x1346   :  { %v2759_v23 = vadd.f32 %v2758_v29, %v2757_v47  ;;  %v2747_v31 = vadd.f32 %v2746_v6, %v2745_v27 }
0x1347   :  { %v2841_v7 = vunpack.c.l.b16 %v2765_v61  ;;  %v2844_v52 = vunpack.c.l.b16 %v2768_v57 }
0x1348   :  { %v2760_v58 = vrot.slane %v2759_v23, 1  ;;  %v2767_v44 = vpack.c.bf16 %v2747_v31, %v2747_v31 }
0x1349   :  { %v2848_v35 = vsel %vm895_vm7, %v2841_v7, %v2847_v55 }
0x134a   :  { %v2761_v49 = vadd.f32 %v2760_v58, %v2759_v23  ;;  %v2843_v42 = vunpack.c.l.b16 %v2767_v44  ;;  %v2849_v48 = vsel %vm897_vm8, %v2842_v54, %v2848_v35 }
0x134c   :  { %v2769_v2 = vpack.c.bf16 %v2761_v49, %v2761_v49  ;;  %v2850_v41 = vsel %vm899_vm9, %v2843_v42, %v2849_v48 }
0x134d   :  { %v2851_v46 = vsel %vm901_vm10, %v2844_v52, %v2850_v41 }
0x134e   :  { %v2845_v40 = vunpack.c.l.b16 %v2769_v2 }
0x1350   :  { %v2852_v38 = vsel %vm903_vm11, %v2845_v40, %v2851_v46 }
0x1351   :  { %v2853_v19 = vpack.c.b16 %v2852_v38, %v2852_v38 }
0x1353   :  { %3232 = vmatmul.mubr.msk.bf16.vlgmr.msra.gmra.mrb[8].mxu1 %vm369_vm2, %v2853_v19 }
0x1426   :  { %v2903_v37 = vpop.f32.mrb[8].mxu1 }
0x1427   :  { %3420 = vtanh.f32 %v2903_v37  ;;  %v3233_v39 = vpop.f32.mrb[9].mxu1 }
0x1428   :  { %v2906_v3 = vpop.f32.mrb[10].mxu1 }
0x1429   :  { %v3234_v45 = vpop.f32.mrb[11].mxu1 }
0x1431   :  { %v3421_v4 = vpop.eup %3420 }
0x1432   :  { %v2910_v5 = vpack.c.bf16 %v3421_v4, %v3421_v4 }
0x1434   :  { %3240 = vmatmul.mubr.msk.bf16.vlgmr.msra.gmra.mrb[16].mxu0 %vm369_vm2, %v2910_v5 }
0x1435   :  { %3852 = shalt.err (!%p3849_p2)
}
0x1436   :  { %s5129_s4 = sld [smem:[#allocation53_spill]] }
0x143c   :  { %s3853_s2 = scalar_lea.hbm %s5129_s4, 512 }
0x143d   :  { %p3854_p3 = scmp.ne.s32.totalorder %s5129_s4, %s3853_s2  ;;  %p3857_p4 = scmp.lt.u32.totalorder %s3853_s2, %s5129_s4 }
0x143f   :  { %p3859_p5 = pnand %p3857_p4, %p3854_p3 }
0x1441   :  { %3862 = shalt.err (!%p3859_p5)
}
0x1442   :  { %3050 = dma.vmem_to_hbm [thread:$0]  %s3045_s28, 512, %s5129_s4, [#allocation34], %s3911_s22, %s3911_s22, %s3912_s3   ;;  %v3099_v63 = vld [vmem:[#allocation31] ss:$0 sm:$0xff]  ;;  %vm3010_vm15 = vcmask 48128  }
0x1443   :  { %s3943_s21 = smov [#allocation32]  }
0x1444   :  { %s3035_s15 = sshll.u32 %s3943_s21, 4  ;;  %s3036_s15 = int_to_ptr.vmem [resolvable:$true] %s3035_s15 }
0x1445   :  { %s3863_s9 = scalar_lea.vmem %s3036_s15, 640  ;;  %p3868_p7 = scmp.lt.s32.totalorder %s3036_s15, %s3036_s15 }
0x1446   :  { %p3864_p6 = scmp.ne.s32.totalorder %s3036_s15, %s3863_s9  ;;  %p3869_p8 = scmp.lt.s32.totalorder %s3863_s9, %s3863_s9 }
0x1448   :  { %p3870_p9 = por %p3869_p8, %p3868_p7 }
0x144a   :  { %p3871_p10 = pnand %p3870_p9, %p3864_p6 }
0x1507   :  { %v2971_v1 = vpop.f32.mrb[16].mxu0 }
0x1508   :  { %v2972_v13 = vadd.f32 %v3099_v63, %v2971_v1  ;;  %v3241_v28 = vpop.f32.mrb[17].mxu0 }
0x1509   :  { %v2974_v59 = vpop.f32.mrb[18].mxu0 }
0x150a   :  { %3011 = vst.msk [vmem:[#allocation32 + $0x20] sm:$0xff] %vm3010_vm15, %v2972_v13  ;;  %v3242_v20 = vpop.f32.mrb[19].mxu0 }
0x150b   :  { %3874 = shalt.err (!%p3871_p10)
}
0x150c   :  { %s5130_s3 = sld [smem:[#allocation52_spill]] }
0x1512   :  { %s3875_s19 = scalar_lea.hbm %s5130_s3, 640 }
0x1513   :  { %p3876_p11 = scmp.ne.s32.totalorder %s5130_s3, %s3875_s19  ;;  %p3879_p12 = scmp.lt.u32.totalorder %s3875_s19, %s5130_s3 }
0x1515   :  { %p3881_p13 = pnand %p3879_p12, %p3876_p11 }
0x1517   :  { %3884 = shalt.err (!%p3881_p13)
}
0x1518   :  { %3038 = dma.vmem_to_hbm [thread:$0]  %s3036_s15, 640, %s5130_s3, [#allocation4]  }
0x1519   :  { %3905 = dma.done.wait [#allocation4], 640  }
0x151a   :  { %3906 = vsyncadd [#allocation4], 4294966656 }
0x151b   :  { %3907 = dma.done.wait [#allocation34], 512  }
0x151c   :  { %3908 = vsyncadd [#allocation34], 4294966784 }
0x151d   :  { %3057 = vsyncpa [#allocation3], 1 }
0x151e   :  { %3058 = vsyncpa [#allocation6], 1 }
0x151f   :  { %3059 = vsyncpa [#allocation9], 1 }
0x1520   :  { %3060 = vsyncpa [#allocation12], 1 }
0x1521   :  { %3061 = vsyncpa [#allocation15], 1 }
0x1522   :  { %3062 = vsyncpa [#allocation18], 1 }
0x1523   :  { %3063 = vsyncpa [#allocation21], 1 }
0x1524   :  { %3064 = vsyncpa [#allocation24], 1 }
0x1525   :  { %3065 = vsyncpa [#allocation27], 1 }
0x1526   :  { %3066 = vsyncpa [#allocation30], 1 }
0x1527   :  { %3067 = vsyncpa [#allocation4], 1 }
0x1528   :  { %3068 = vsyncpa [#allocation34], 1 }

</bundles_post_ra>
